<compile_context>
chip_gen: v7x
topology: tpu7x:2x2x1
jax: 0.10.0
libtpu: 0.0.40
codegen_flags: <defaults>
</compile_context>

<pallas_src>
import functools

import jax
import jax.numpy as jnp
import numpy as np
from jax.experimental import pallas as pl
from jax.experimental.pallas import tpu as pltpu


# Architecture constants fixed by the PyTorch module.
_CONV_CFG = [
    # (out_channels, kernel, stride, pad)
    (32, 8, 4, 1),
    (64, 4, 2, 0),
    (64, 3, 2, 0),
]
_FC_HIDDEN = (128, 64)
_FC_INPUT_SIZE = 320          # hard-coded in the PyTorch module
_LANE = 128
_SUBLANE = 8


def _round_up(x, m):
    return ((x + m - 1) // m) * m


def _conv_out(size, k, s, p):
    return (size + 2 * p - k) // s + 1


def _geometry(h, w, cin, batch):
    """All static layout numbers of the fused kernel (rows = (b, i), lanes = (w, c))."""
    (oc1, k1, s1, p1), (oc2, k2, s2, p2), (oc3, k3, s3, p3) = _CONV_CFG
    r0, c0w = h + 2 * p1, w + 2 * p1                   # spatially padded conv1 input
    oh1, ow1 = _conv_out(h, k1, s1, p1), _conv_out(w, k1, s1, p1)
    oh2, ow2 = _conv_out(oh1, k2, s2, p2), _conv_out(ow1, k2, s2, p2)
    oh3, ow3 = _conv_out(oh2, k3, s3, p3), _conv_out(ow2, k3, s3, p3)
    g = {
        "batch": batch,
        "bpad": _round_up(batch, _SUBLANE),
        "rows": (r0, oh1, oh2, oh3),                   # valid per-batch rows
        "rows_pad": tuple(_round_up(r, _SUBLANE) for r in (r0, oh1, oh2, oh3)),
        "lanes": (c0w * cin, ow1 * oc1, ow2 * oc2, ow3 * oc3),
        "ow": (c0w, ow1, ow2, ow3),
    }
    g["lanes_pad"] = tuple(_round_up(l, _LANE) for l in g["lanes"])
    return g


# ----------------------------------------------------------------------------
# One-time (prepare_params) constant builders.
# ----------------------------------------------------------------------------
def _build_row_select(batch, out_valid, out_pad, in_pad, stride, taps):
    """sel[di, b*out_pad + i, b*in_pad + stride*i + di] = 1 for valid (b, i)."""
    sel = np.zeros((taps, batch * out_pad, batch * in_pad), np.float32)
    for di in range(taps):
        for b in range(batch):
            for i in range(out_valid):
                sel[di, b * out_pad + i, b * in_pad + stride * i + di] = 1.0
    return jnp.asarray(sel)


def _build_flatten_select(batch, bpad, oh3, r3_pad):
    """tsel[p, b, b*r3_pad + p] = 1  (picks conv3 output row i == p per batch)."""
    tsel = np.zeros((oh3, bpad, batch * r3_pad), np.float32)
    for p in range(oh3):
        for b in range(batch):
            tsel[p, b, b * r3_pad + p] = 1.0
    return jnp.asarray(tsel)


def _scatter_conv_weight(w, stride, out_w, in_lanes, out_lanes):
    """(OC, Cin, kh, kw) torch conv weight -> (kh*in_lanes, out_lanes) matmul weight
    with the (dj, j) column/tap gather folded in as zero-padded rows:
      row = di*in_lanes + (stride*j + dj)*Cin + c ,  col = j*OC + oc."""
    w = np.asarray(w, np.float32)
    oc, cin, kh, kw = w.shape
    wp = np.zeros((kh, in_lanes, out_lanes), np.float32)
    for di in range(kh):
        for dj in range(kw):
            wt = w[:, :, di, dj].T                     # (Cin, OC)
            for j in range(out_w):
                r0 = (stride * j + dj) * cin
                wp[di, r0:r0 + cin, j * oc:(j + 1) * oc] = wt
    return jnp.asarray(wp.reshape(kh * in_lanes, out_lanes))


def _widen_bias(b, out_w, out_lanes):
    b = np.asarray(b, np.float32)
    oc = b.shape[0]
    bw = np.zeros((1, out_lanes), np.float32)
    for j in range(out_w):
        bw[0, j * oc:(j + 1) * oc] = b
    return jnp.asarray(bw)


def _fold_flatten_into_fc1(f1_w, oh3, ow3, c3, in_lanes):
    """fc1 weight (320, H1) with rows in PyTorch NCHW-flatten order, folded into
    a widened matrix:  F1w[j*C3 + c, p*H1 + o] = F1[c*oh3*ow3 + p*ow3 + j, o]."""
    f1 = np.asarray(f1_w, np.float32)
    h1 = f1.shape[1]
    out = np.zeros((in_lanes, oh3 * h1), np.float32)
    for c in range(c3):
        for p in range(oh3):
            for j in range(ow3):
                out[j * c3 + c, p * h1:(p + 1) * h1] = f1[c * oh3 * ow3 + p * ow3 + j, :]
    return jnp.asarray(out)


# ----------------------------------------------------------------------------
# Parameter initialization (PyTorch nn.Module layout) and one-time conversion.
# ----------------------------------------------------------------------------
def init_params(key, input_channels, num_outputs):
    """Deterministic synthetic parameters in the PyTorch nn.Module layout."""
    ks = jax.random.split(key, 12)

    def w(k, shape, fan_in):
        return jax.random.normal(k, shape, jnp.float32) / jnp.sqrt(jnp.float32(fan_in))

    def b(k, n, fan_in):
        return jax.random.normal(k, (n,), jnp.float32) * (0.1 / float(np.sqrt(fan_in)))

    p = {}
    cin = input_channels
    for li, (oc, kk, _, _) in enumerate(_CONV_CFG):
        p[f"c{li + 1}_w"] = w(ks[2 * li], (oc, cin, kk, kk), cin * kk * kk)
        p[f"c{li + 1}_b"] = b(ks[2 * li + 1], oc, cin * kk * kk)
        cin = oc
    fc_sizes = [(_FC_INPUT_SIZE, _FC_HIDDEN[0]),
                (_FC_HIDDEN[0], _FC_HIDDEN[1]),
                (_FC_HIDDEN[1], num_outputs)]
    for li, (fin, fout) in enumerate(fc_sizes):
        p[f"f{li + 1}_w"] = w(ks[6 + 2 * li], (fin, fout), fin)
        p[f"f{li + 1}_b"] = b(ks[7 + 2 * li], fout, fin)
    return p


def prepare_params(pt_params, input_hw, input_channels, batch):
    """One-time conversion to the fused-kernel layout: folded/zero-padded conv
    weight matrices, widened biases, 0/1 row/flatten selectors, fc1 fold."""
    h, w = input_hw
    g = _geometry(h, w, input_channels, batch)
    (oc1, k1, s1, _), (oc2, k2, s2, _), (oc3, k3, s3, _) = _CONV_CFG
    oh3, ow3 = g["rows"][3], g["ow"][3]
    assert oh3 * ow3 * oc3 == _FC_INPUT_SIZE, (g, _FC_INPUT_SIZE)

    rp, lp = g["rows_pad"], g["lanes_pad"]
    strides, taps, out_ws = (s1, s2, s3), (k1, k2, k3), (g["ow"][1], g["ow"][2], g["ow"][3])

    kp = {}
    for li in range(3):
        kp[f"wp{li + 1}"] = _scatter_conv_weight(
            pt_params[f"c{li + 1}_w"], strides[li], out_ws[li], lp[li], lp[li + 1])
        kp[f"bw{li + 1}"] = _widen_bias(pt_params[f"c{li + 1}_b"], out_ws[li], lp[li + 1])
        kp[f"sel{li + 1}"] = _build_row_select(
            batch, g["rows"][li + 1], rp[li + 1], rp[li], strides[li], taps[li])
    kp["tsel"] = _build_flatten_select(batch, g["bpad"], oh3, rp[3])
    kp["f1w"] = _fold_flatten_into_fc1(pt_params["f1_w"], oh3, ow3, oc3, lp[3])
    kp["fb1"] = jnp.asarray(np.asarray(pt_params["f1_b"], np.float32).reshape(1, -1))
    kp["f2"] = pt_params["f2_w"]
    kp["fb2"] = pt_params["f2_b"].reshape(1, -1)
    kp["f3"] = pt_params["f3_w"]
    kp["fb3"] = pt_params["f3_b"].reshape(1, -1)
    return kp


# ----------------------------------------------------------------------------
# The fused kernel.
# ----------------------------------------------------------------------------
def _fused_forward_kernel(a1_ref,
                          s1_ref, w1_ref, b1_ref,
                          s2_ref, w2_ref, b2_ref,
                          s3_ref, w3_ref, b3_ref,
                          tsel_ref, f1w_ref, fb1_ref,
                          f2_ref, fb2_ref, f3_ref, fb3_ref,
                          mu_ref, *, batch, taps, oh3, h1):
    f32 = jnp.float32

    def conv_relu(a, sel_ref, w_ref, b_ref, k):
        # Row gather (strided height taps) as k 0/1 MXU matmuls; the k results
        # are concatenated on the lane axis at 128-aligned offsets, then ONE
        # folded zero-padded weight matmul does the (dj, j) column gather plus
        # the channel contraction.  Output is already widened channels-last.
        gs = [jnp.dot(sel_ref[di], a, preferred_element_type=f32) for di in range(k)]
        g = gs[0] if k == 1 else jnp.concatenate(gs, axis=1)
        y = jnp.dot(g, w_ref[...], preferred_element_type=f32)
        return jnp.maximum(y + b_ref[...], 0.0)

    a = conv_relu(a1_ref[...], s1_ref, w1_ref, b1_ref, taps[0])   # (B*24, 256)
    a = conv_relu(a, s2_ref, w2_ref, b2_ref, taps[1])             # (B*16, 256)
    a = conv_relu(a, s3_ref, w3_ref, b3_ref, taps[2])             # (B*8, 128)

    # NCHW flatten + fc1 folded: Z = y3 @ F1_wide, then pick the
    # (row i == lane-block p) diagonal with tiny 0/1 matmuls on 128-aligned
    # lane slices and accumulate.
    z = jnp.dot(a, f1w_ref[...], preferred_element_type=f32)      # (B*8, oh3*128)
    acc = jnp.dot(tsel_ref[0], z[:, 0:h1], preferred_element_type=f32)
    for p in range(1, oh3):
        acc = acc + jnp.dot(tsel_ref[p], z[:, p * h1:(p + 1) * h1],
                            preferred_element_type=f32)

    h = jnp.tanh(acc + fb1_ref[...])
    h = jnp.tanh(jnp.dot(h, f2_ref[...], preferred_element_type=f32) + fb2_ref[...])
    mu = jnp.dot(h, f3_ref[...], preferred_element_type=f32) + fb3_ref[...]
    mu_ref[...] = mu[:batch, :].astype(mu_ref.dtype)


# ----------------------------------------------------------------------------
# Forward pass: TrpoActorCNN(x) -> (mu, std)
# ----------------------------------------------------------------------------
def _widen_input(x, pad, rows_pad, lanes_pad):
    """NCHW -> widened channels-last: rows (b, i_padded), lanes (w_padded, c)."""
    b, c, h, w = x.shape
    xt = jnp.transpose(x, (0, 2, 3, 1))                           # NHWC
    xt = jnp.pad(xt, ((0, 0), (pad, pad), (pad, pad), (0, 0)))
    hp, wp = h + 2 * pad, w + 2 * pad
    a = xt.reshape(b, hp, wp * c)
    a = jnp.pad(a, ((0, 0), (0, rows_pad - hp), (0, lanes_pad - wp * c)))
    return a.reshape(b * rows_pad, lanes_pad)


@jax.jit
def trpo_actor_cnn_forward(kparams, x):
    batch, cin, h, w = x.shape
    g = _geometry(h, w, cin, batch)
    (_, k1, _, p1), (_, k2, _, _), (_, k3, _, _) = _CONV_CFG
    oh3 = g["rows"][3]
    nout = kparams["f3"].shape[1]
    h1 = kparams["fb1"].shape[1]
    rp, lp = g["rows_pad"], g["lanes_pad"]

    a1 = _widen_input(x, p1, rp[0], lp[0])

    operands = (a1,
                kparams["sel1"], kparams["wp1"], kparams["bw1"],
                kparams["sel2"], kparams["wp2"], kparams["bw2"],
                kparams["sel3"], kparams["wp3"], kparams["bw3"],
                kparams["tsel"], kparams["f1w"], kparams["fb1"],
                kparams["f2"], kparams["fb2"], kparams["f3"], kparams["fb3"])

    # Advisory cost estimate (helps XLA schedule around the custom call).
    def mm(m, k, n):
        return 2 * m * k * n
    flops = 0
    for li, kt in enumerate((k1, k2, k3)):
        m_out = batch * rp[li + 1]
        flops += kt * mm(m_out, batch * rp[li], lp[li])        # row-gather matmuls
        flops += mm(m_out, kt * lp[li], lp[li + 1])            # folded conv matmul
    flops += mm(batch * rp[3], lp[3], oh3 * h1)                # flatten/fc1 fold
    flops += oh3 * mm(g["bpad"], batch * rp[3], h1)
    flops += mm(g["bpad"], h1, kparams["f2"].shape[1])
    flops += mm(g["bpad"], kparams["f2"].shape[1], nout)
    bytes_accessed = sum(int(np.prod(o.shape)) * 4 for o in operands) + batch * nout * 4
    cost = pl.CostEstimate(flops=int(flops),
                           transcendentals=int(g["bpad"] * (h1 + kparams["f2"].shape[1])),
                           bytes_accessed=int(bytes_accessed))

    kernel = functools.partial(_fused_forward_kernel, batch=batch,
                               taps=(k1, k2, k3), oh3=oh3, h1=h1)
    vmem = pl.BlockSpec(memory_space=pltpu.MemorySpace.VMEM)

    mu = pl.pallas_call(
        kernel,
        out_shape=jax.ShapeDtypeStruct((batch, nout), jnp.float32),
        in_specs=[vmem] * len(operands),
        out_specs=vmem,
        cost_estimate=cost,
    )(*operands)

    std = jnp.ones_like(mu)       # exp(zeros) == 1, computed without the exp
    return mu, std


# ----------------------------------------------------------------------------
# Pure-JAX/XLA reference of the PyTorch module (correctness cross-check).
# ----------------------------------------------------------------------------
def _reference_forward(pt_params, x):
    hi = jax.lax.Precision.HIGHEST
    h = x
    for li, (_, k, s, p) in enumerate(_CONV_CFG):
        w = pt_params[f"c{li + 1}_w"]
        b = pt_params[f"c{li + 1}_b"]
        h = jax.lax.conv_general_dilated(
            h, w, window_strides=(s, s), padding=[(p, p), (p, p)],
            dimension_numbers=("NCHW", "OIHW", "NCHW"), precision=hi)
        h = jnp.maximum(h + b[None, :, None, None], 0.0)
    h = h.reshape(x.shape[0], -1)                           # NCHW flatten (c,h,w)
    h = jnp.tanh(jnp.dot(h, pt_params["f1_w"], precision=hi) + pt_params["f1_b"])
    h = jnp.tanh(jnp.dot(h, pt_params["f2_w"], precision=hi) + pt_params["f2_b"])
    mu = jnp.dot(h, pt_params["f3_w"], precision=hi) + pt_params["f3_b"]
    return mu, jnp.ones_like(mu)


if __name__ == "__main__":
    key = jax.random.PRNGKey(0)
    k_param, k_x = jax.random.split(key)

    input_channels = 4
    num_outputs = 6
    batch = 2
    # Spatial size (98, 34): the conv stack flattens to exactly 320 features
    # (64 ch x 5 x 1), matching the module's hard-coded fc_input_size=320.
    spatial = (98, 34)
    x = jax.random.normal(k_x, (batch, input_channels) + spatial, jnp.float32)

    pt_params = init_params(k_param, input_channels, num_outputs)
    kparams = prepare_params(pt_params, spatial, input_channels, batch)

    mu, std = trpo_actor_cnn_forward(kparams, x)
    mu = jax.block_until_ready(mu)
    std = jax.block_until_ready(std)

    assert mu.shape == (batch, num_outputs)
    assert std.shape == (batch, num_outputs)
    assert bool(jnp.all(std == 1.0))

    # Numerical cross-check against the XLA reference of the PyTorch module.
    mu_ref, _ = _reference_forward(pt_params, x)
    assert bool(jnp.allclose(mu, mu_ref, rtol=2e-2, atol=2e-2)), (
        float(jnp.max(jnp.abs(mu - mu_ref))))

    print("KERNEL_OK")
</pallas_src>

<mosaic_0001>
module attributes {stable_mosaic.version = 11 : i64} {
  func.func @_fused_forward_kernel(%arg0: memref<208x256xf32, #tpu.memory_space<vmem>>, %arg1: memref<8x48x208xf32, #tpu.memory_space<vmem>>, %arg2: memref<2048x256xf32, #tpu.memory_space<vmem>>, %arg3: memref<1x256xf32, #tpu.memory_space<vmem>>, %arg4: memref<4x32x48xf32, #tpu.memory_space<vmem>>, %arg5: memref<1024x256xf32, #tpu.memory_space<vmem>>, %arg6: memref<1x256xf32, #tpu.memory_space<vmem>>, %arg7: memref<3x16x32xf32, #tpu.memory_space<vmem>>, %arg8: memref<768x128xf32, #tpu.memory_space<vmem>>, %arg9: memref<1x128xf32, #tpu.memory_space<vmem>>, %arg10: memref<5x8x16xf32, #tpu.memory_space<vmem>>, %arg11: memref<128x640xf32, #tpu.memory_space<vmem>>, %arg12: memref<1x128xf32, #tpu.memory_space<vmem>>, %arg13: memref<128x64xf32, #tpu.memory_space<vmem>>, %arg14: memref<1x64xf32, #tpu.memory_space<vmem>>, %arg15: memref<64x6xf32, #tpu.memory_space<vmem>>, %arg16: memref<1x6xf32, #tpu.memory_space<vmem>>, %arg17: memref<2x6xf32, #tpu.memory_space<vmem>>) attributes {dimension_semantics = [], scalar_prefetch = 0 : i64, scratch_operands = 0 : i64, tpu.core_type = #tpu.core_type<tc>} {
    %c0 = arith.constant 0 : index
    %c0_0 = arith.constant 0 : index
    %0 = vector.load %arg0[%c0, %c0_0] : memref<208x256xf32, #tpu.memory_space<vmem>>, vector<208x256xf32>
    %c0_1 = arith.constant 0 : index
    %c0_2 = arith.constant 0 : index
    %c0_3 = arith.constant 0 : index
    %1 = vector.load %arg1[%c0_1, %c0_2, %c0_3] : memref<8x48x208xf32, #tpu.memory_space<vmem>>, vector<1x48x208xf32>
    %2 = vector.shape_cast %1 : vector<1x48x208xf32> to vector<48x208xf32>
    %cst = arith.constant dense<0.000000e+00> : vector<48x256xf32>
    %3 = tpu.matmul %2, %0, %cst {dimension_numbers = #tpu.dot_dimension_numbers<[1], [0], [0], [1], [0, 0, 1, 1], [], []>} : vector<48x208xf32>, vector<208x256xf32>, vector<48x256xf32> -> vector<48x256xf32>
    %c1 = arith.constant 1 : index
    %c0_4 = arith.constant 0 : index
    %c0_5 = arith.constant 0 : index
    %4 = vector.load %arg1[%c1, %c0_4, %c0_5] : memref<8x48x208xf32, #tpu.memory_space<vmem>>, vector<1x48x208xf32>
    %5 = vector.shape_cast %4 : vector<1x48x208xf32> to vector<48x208xf32>
    %cst_6 = arith.constant dense<0.000000e+00> : vector<48x256xf32>
    %6 = tpu.matmul %5, %0, %cst_6 {dimension_numbers = #tpu.dot_dimension_numbers<[1], [0], [0], [1], [0, 0, 1, 1], [], []>} : vector<48x208xf32>, vector<208x256xf32>, vector<48x256xf32> -> vector<48x256xf32>
    %c2 = arith.constant 2 : index
    %c0_7 = arith.constant 0 : index
    %c0_8 = arith.constant 0 : index
    %7 = vector.load %arg1[%c2, %c0_7, %c0_8] : memref<8x48x208xf32, #tpu.memory_space<vmem>>, vector<1x48x208xf32>
    %8 = vector.shape_cast %7 : vector<1x48x208xf32> to vector<48x208xf32>
    %cst_9 = arith.constant dense<0.000000e+00> : vector<48x256xf32>
    %9 = tpu.matmul %8, %0, %cst_9 {dimension_numbers = #tpu.dot_dimension_numbers<[1], [0], [0], [1], [0, 0, 1, 1], [], []>} : vector<48x208xf32>, vector<208x256xf32>, vector<48x256xf32> -> vector<48x256xf32>
    %c3 = arith.constant 3 : index
    %c0_10 = arith.constant 0 : index
    %c0_11 = arith.constant 0 : index
    %10 = vector.load %arg1[%c3, %c0_10, %c0_11] : memref<8x48x208xf32, #tpu.memory_space<vmem>>, vector<1x48x208xf32>
    %11 = vector.shape_cast %10 : vector<1x48x208xf32> to vector<48x208xf32>
    %cst_12 = arith.constant dense<0.000000e+00> : vector<48x256xf32>
    %12 = tpu.matmul %11, %0, %cst_12 {dimension_numbers = #tpu.dot_dimension_numbers<[1], [0], [0], [1], [0, 0, 1, 1], [], []>} : vector<48x208xf32>, vector<208x256xf32>, vector<48x256xf32> -> vector<48x256xf32>
    %c4 = arith.constant 4 : index
    %c0_13 = arith.constant 0 : index
    %c0_14 = arith.constant 0 : index
    %13 = vector.load %arg1[%c4, %c0_13, %c0_14] : memref<8x48x208xf32, #tpu.memory_space<vmem>>, vector<1x48x208xf32>
    %14 = vector.shape_cast %13 : vector<1x48x208xf32> to vector<48x208xf32>
    %cst_15 = arith.constant dense<0.000000e+00> : vector<48x256xf32>
    %15 = tpu.matmul %14, %0, %cst_15 {dimension_numbers = #tpu.dot_dimension_numbers<[1], [0], [0], [1], [0, 0, 1, 1], [], []>} : vector<48x208xf32>, vector<208x256xf32>, vector<48x256xf32> -> vector<48x256xf32>
    %c5 = arith.constant 5 : index
    %c0_16 = arith.constant 0 : index
    %c0_17 = arith.constant 0 : index
    %16 = vector.load %arg1[%c5, %c0_16, %c0_17] : memref<8x48x208xf32, #tpu.memory_space<vmem>>, vector<1x48x208xf32>
    %17 = vector.shape_cast %16 : vector<1x48x208xf32> to vector<48x208xf32>
    %cst_18 = arith.constant dense<0.000000e+00> : vector<48x256xf32>
    %18 = tpu.matmul %17, %0, %cst_18 {dimension_numbers = #tpu.dot_dimension_numbers<[1], [0], [0], [1], [0, 0, 1, 1], [], []>} : vector<48x208xf32>, vector<208x256xf32>, vector<48x256xf32> -> vector<48x256xf32>
    %c6 = arith.constant 6 : index
    %c0_19 = arith.constant 0 : index
    %c0_20 = arith.constant 0 : index
    %19 = vector.load %arg1[%c6, %c0_19, %c0_20] : memref<8x48x208xf32, #tpu.memory_space<vmem>>, vector<1x48x208xf32>
    %20 = vector.shape_cast %19 : vector<1x48x208xf32> to vector<48x208xf32>
    %cst_21 = arith.constant dense<0.000000e+00> : vector<48x256xf32>
    %21 = tpu.matmul %20, %0, %cst_21 {dimension_numbers = #tpu.dot_dimension_numbers<[1], [0], [0], [1], [0, 0, 1, 1], [], []>} : vector<48x208xf32>, vector<208x256xf32>, vector<48x256xf32> -> vector<48x256xf32>
    %c7 = arith.constant 7 : index
    %c0_22 = arith.constant 0 : index
    %c0_23 = arith.constant 0 : index
    %22 = vector.load %arg1[%c7, %c0_22, %c0_23] : memref<8x48x208xf32, #tpu.memory_space<vmem>>, vector<1x48x208xf32>
    %23 = vector.shape_cast %22 : vector<1x48x208xf32> to vector<48x208xf32>
    %cst_24 = arith.constant dense<0.000000e+00> : vector<48x256xf32>
    %24 = tpu.matmul %23, %0, %cst_24 {dimension_numbers = #tpu.dot_dimension_numbers<[1], [0], [0], [1], [0, 0, 1, 1], [], []>} : vector<48x208xf32>, vector<208x256xf32>, vector<48x256xf32> -> vector<48x256xf32>
    %25 = tpu.concatenate %3, %6, %9, %12, %15, %18, %21, %24 in 1 : vector<48x256xf32>, vector<48x256xf32>, vector<48x256xf32>, vector<48x256xf32>, vector<48x256xf32>, vector<48x256xf32>, vector<48x256xf32>, vector<48x256xf32> -> vector<48x2048xf32>
    %c0_25 = arith.constant 0 : index
    %c0_26 = arith.constant 0 : index
    %26 = vector.load %arg2[%c0_25, %c0_26] : memref<2048x256xf32, #tpu.memory_space<vmem>>, vector<2048x256xf32>
    %cst_27 = arith.constant dense<0.000000e+00> : vector<48x256xf32>
    %27 = tpu.matmul %25, %26, %cst_27 {dimension_numbers = #tpu.dot_dimension_numbers<[1], [0], [0], [1], [0, 0, 1, 1], [], []>} : vector<48x2048xf32>, vector<2048x256xf32>, vector<48x256xf32> -> vector<48x256xf32>
    %c0_28 = arith.constant 0 : index
    %c0_29 = arith.constant 0 : index
    %28 = vector.load %arg3[%c0_28, %c0_29] : memref<1x256xf32, #tpu.memory_space<vmem>>, vector<1x256xf32>
    %29 = vector.broadcast %28 : vector<1x256xf32> to vector<48x256xf32>
    %30 = arith.addf %27, %29 : vector<48x256xf32>
    %cst_30 = arith.constant 0.000000e+00 : f32
    %31 = vector.broadcast %cst_30 : f32 to vector<48x256xf32>
    %32 = arith.maximumf %30, %31 : vector<48x256xf32>
    %c0_31 = arith.constant 0 : index
    %c0_32 = arith.constant 0 : index
    %c0_33 = arith.constant 0 : index
    %33 = vector.load %arg4[%c0_31, %c0_32, %c0_33] : memref<4x32x48xf32, #tpu.memory_space<vmem>>, vector<1x32x48xf32>
    %34 = vector.shape_cast %33 : vector<1x32x48xf32> to vector<32x48xf32>
    %cst_34 = arith.constant dense<0.000000e+00> : vector<32x256xf32>
    %35 = tpu.matmul %34, %32, %cst_34 {dimension_numbers = #tpu.dot_dimension_numbers<[1], [0], [0], [1], [0, 0, 1, 1], [], []>} : vector<32x48xf32>, vector<48x256xf32>, vector<32x256xf32> -> vector<32x256xf32>
    %c1_35 = arith.constant 1 : index
    %c0_36 = arith.constant 0 : index
    %c0_37 = arith.constant 0 : index
    %36 = vector.load %arg4[%c1_35, %c0_36, %c0_37] : memref<4x32x48xf32, #tpu.memory_space<vmem>>, vector<1x32x48xf32>
    %37 = vector.shape_cast %36 : vector<1x32x48xf32> to vector<32x48xf32>
    %cst_38 = arith.constant dense<0.000000e+00> : vector<32x256xf32>
    %38 = tpu.matmul %37, %32, %cst_38 {dimension_numbers = #tpu.dot_dimension_numbers<[1], [0], [0], [1], [0, 0, 1, 1], [], []>} : vector<32x48xf32>, vector<48x256xf32>, vector<32x256xf32> -> vector<32x256xf32>
    %c2_39 = arith.constant 2 : index
    %c0_40 = arith.constant 0 : index
    %c0_41 = arith.constant 0 : index
    %39 = vector.load %arg4[%c2_39, %c0_40, %c0_41] : memref<4x32x48xf32, #tpu.memory_space<vmem>>, vector<1x32x48xf32>
    %40 = vector.shape_cast %39 : vector<1x32x48xf32> to vector<32x48xf32>
    %cst_42 = arith.constant dense<0.000000e+00> : vector<32x256xf32>
    %41 = tpu.matmul %40, %32, %cst_42 {dimension_numbers = #tpu.dot_dimension_numbers<[1], [0], [0], [1], [0, 0, 1, 1], [], []>} : vector<32x48xf32>, vector<48x256xf32>, vector<32x256xf32> -> vector<32x256xf32>
    %c3_43 = arith.constant 3 : index
    %c0_44 = arith.constant 0 : index
    %c0_45 = arith.constant 0 : index
    %42 = vector.load %arg4[%c3_43, %c0_44, %c0_45] : memref<4x32x48xf32, #tpu.memory_space<vmem>>, vector<1x32x48xf32>
    %43 = vector.shape_cast %42 : vector<1x32x48xf32> to vector<32x48xf32>
    %cst_46 = arith.constant dense<0.000000e+00> : vector<32x256xf32>
    %44 = tpu.matmul %43, %32, %cst_46 {dimension_numbers = #tpu.dot_dimension_numbers<[1], [0], [0], [1], [0, 0, 1, 1], [], []>} : vector<32x48xf32>, vector<48x256xf32>, vector<32x256xf32> -> vector<32x256xf32>
    %45 = tpu.concatenate %35, %38, %41, %44 in 1 : vector<32x256xf32>, vector<32x256xf32>, vector<32x256xf32>, vector<32x256xf32> -> vector<32x1024xf32>
    %c0_47 = arith.constant 0 : index
    %c0_48 = arith.constant 0 : index
    %46 = vector.load %arg5[%c0_47, %c0_48] : memref<1024x256xf32, #tpu.memory_space<vmem>>, vector<1024x256xf32>
    %cst_49 = arith.constant dense<0.000000e+00> : vector<32x256xf32>
    %47 = tpu.matmul %45, %46, %cst_49 {dimension_numbers = #tpu.dot_dimension_numbers<[1], [0], [0], [1], [0, 0, 1, 1], [], []>} : vector<32x1024xf32>, vector<1024x256xf32>, vector<32x256xf32> -> vector<32x256xf32>
    %c0_50 = arith.constant 0 : index
    %c0_51 = arith.constant 0 : index
    %48 = vector.load %arg6[%c0_50, %c0_51] : memref<1x256xf32, #tpu.memory_space<vmem>>, vector<1x256xf32>
    %49 = vector.broadcast %48 : vector<1x256xf32> to vector<32x256xf32>
    %50 = arith.addf %47, %49 : vector<32x256xf32>
    %cst_52 = arith.constant 0.000000e+00 : f32
    %51 = vector.broadcast %cst_52 : f32 to vector<32x256xf32>
    %52 = arith.maximumf %50, %51 : vector<32x256xf32>
    %c0_53 = arith.constant 0 : index
    %c0_54 = arith.constant 0 : index
    %c0_55 = arith.constant 0 : index
    %53 = vector.load %arg7[%c0_53, %c0_54, %c0_55] : memref<3x16x32xf32, #tpu.memory_space<vmem>>, vector<1x16x32xf32>
    %54 = vector.shape_cast %53 : vector<1x16x32xf32> to vector<16x32xf32>
    %cst_56 = arith.constant dense<0.000000e+00> : vector<16x256xf32>
    %55 = tpu.matmul %54, %52, %cst_56 {dimension_numbers = #tpu.dot_dimension_numbers<[1], [0], [0], [1], [0, 0, 1, 1], [], []>} : vector<16x32xf32>, vector<32x256xf32>, vector<16x256xf32> -> vector<16x256xf32>
    %c1_57 = arith.constant 1 : index
    %c0_58 = arith.constant 0 : index
    %c0_59 = arith.constant 0 : index
    %56 = vector.load %arg7[%c1_57, %c0_58, %c0_59] : memref<3x16x32xf32, #tpu.memory_space<vmem>>, vector<1x16x32xf32>
    %57 = vector.shape_cast %56 : vector<1x16x32xf32> to vector<16x32xf32>
    %cst_60 = arith.constant dense<0.000000e+00> : vector<16x256xf32>
    %58 = tpu.matmul %57, %52, %cst_60 {dimension_numbers = #tpu.dot_dimension_numbers<[1], [0], [0], [1], [0, 0, 1, 1], [], []>} : vector<16x32xf32>, vector<32x256xf32>, vector<16x256xf32> -> vector<16x256xf32>
    %c2_61 = arith.constant 2 : index
    %c0_62 = arith.constant 0 : index
    %c0_63 = arith.constant 0 : index
    %59 = vector.load %arg7[%c2_61, %c0_62, %c0_63] : memref<3x16x32xf32, #tpu.memory_space<vmem>>, vector<1x16x32xf32>
    %60 = vector.shape_cast %59 : vector<1x16x32xf32> to vector<16x32xf32>
    %cst_64 = arith.constant dense<0.000000e+00> : vector<16x256xf32>
    %61 = tpu.matmul %60, %52, %cst_64 {dimension_numbers = #tpu.dot_dimension_numbers<[1], [0], [0], [1], [0, 0, 1, 1], [], []>} : vector<16x32xf32>, vector<32x256xf32>, vector<16x256xf32> -> vector<16x256xf32>
    %62 = tpu.concatenate %55, %58, %61 in 1 : vector<16x256xf32>, vector<16x256xf32>, vector<16x256xf32> -> vector<16x768xf32>
    %c0_65 = arith.constant 0 : index
    %c0_66 = arith.constant 0 : index
    %63 = vector.load %arg8[%c0_65, %c0_66] : memref<768x128xf32, #tpu.memory_space<vmem>>, vector<768x128xf32>
    %cst_67 = arith.constant dense<0.000000e+00> : vector<16x128xf32>
    %64 = tpu.matmul %62, %63, %cst_67 {dimension_numbers = #tpu.dot_dimension_numbers<[1], [0], [0], [1], [0, 0, 1, 1], [], []>} : vector<16x768xf32>, vector<768x128xf32>, vector<16x128xf32> -> vector<16x128xf32>
    %c0_68 = arith.constant 0 : index
    %c0_69 = arith.constant 0 : index
    %65 = vector.load %arg9[%c0_68, %c0_69] : memref<1x128xf32, #tpu.memory_space<vmem>>, vector<1x128xf32>
    %66 = vector.broadcast %65 : vector<1x128xf32> to vector<16x128xf32>
    %67 = arith.addf %64, %66 : vector<16x128xf32>
    %cst_70 = arith.constant 0.000000e+00 : f32
    %68 = vector.broadcast %cst_70 : f32 to vector<16x128xf32>
    %69 = arith.maximumf %67, %68 : vector<16x128xf32>
    %c0_71 = arith.constant 0 : index
    %c0_72 = arith.constant 0 : index
    %70 = vector.load %arg11[%c0_71, %c0_72] : memref<128x640xf32, #tpu.memory_space<vmem>>, vector<128x640xf32>
    %cst_73 = arith.constant dense<0.000000e+00> : vector<16x640xf32>
    %71 = tpu.matmul %69, %70, %cst_73 {dimension_numbers = #tpu.dot_dimension_numbers<[1], [0], [0], [1], [0, 0, 1, 1], [], []>} : vector<16x128xf32>, vector<128x640xf32>, vector<16x640xf32> -> vector<16x640xf32>
    %c0_74 = arith.constant 0 : index
    %c0_75 = arith.constant 0 : index
    %c0_76 = arith.constant 0 : index
    %72 = vector.load %arg10[%c0_74, %c0_75, %c0_76] : memref<5x8x16xf32, #tpu.memory_space<vmem>>, vector<1x8x16xf32>
    %73 = vector.shape_cast %72 : vector<1x8x16xf32> to vector<8x16xf32>
    %74 = vector.extract_strided_slice %71 {offsets = [0, 0], sizes = [16, 128], strides = [1, 1]} : vector<16x640xf32> to vector<16x128xf32>
    %cst_77 = arith.constant dense<0.000000e+00> : vector<8x128xf32>
    %75 = tpu.matmul %73, %74, %cst_77 {dimension_numbers = #tpu.dot_dimension_numbers<[1], [0], [0], [1], [0, 0, 1, 1], [], []>} : vector<8x16xf32>, vector<16x128xf32>, vector<8x128xf32> -> vector<8x128xf32>
    %c1_78 = arith.constant 1 : index
    %c0_79 = arith.constant 0 : index
    %c0_80 = arith.constant 0 : index
    %76 = vector.load %arg10[%c1_78, %c0_79, %c0_80] : memref<5x8x16xf32, #tpu.memory_space<vmem>>, vector<1x8x16xf32>
    %77 = vector.shape_cast %76 : vector<1x8x16xf32> to vector<8x16xf32>
    %78 = vector.extract_strided_slice %71 {offsets = [0, 128], sizes = [16, 128], strides = [1, 1]} : vector<16x640xf32> to vector<16x128xf32>
    %cst_81 = arith.constant dense<0.000000e+00> : vector<8x128xf32>
    %79 = tpu.matmul %77, %78, %cst_81 {dimension_numbers = #tpu.dot_dimension_numbers<[1], [0], [0], [1], [0, 0, 1, 1], [], []>} : vector<8x16xf32>, vector<16x128xf32>, vector<8x128xf32> -> vector<8x128xf32>
    %80 = arith.addf %75, %79 : vector<8x128xf32>
    %c2_82 = arith.constant 2 : index
    %c0_83 = arith.constant 0 : index
    %c0_84 = arith.constant 0 : index
    %81 = vector.load %arg10[%c2_82, %c0_83, %c0_84] : memref<5x8x16xf32, #tpu.memory_space<vmem>>, vector<1x8x16xf32>
    %82 = vector.shape_cast %81 : vector<1x8x16xf32> to vector<8x16xf32>
    %83 = vector.extract_strided_slice %71 {offsets = [0, 256], sizes = [16, 128], strides = [1, 1]} : vector<16x640xf32> to vector<16x128xf32>
    %cst_85 = arith.constant dense<0.000000e+00> : vector<8x128xf32>
    %84 = tpu.matmul %82, %83, %cst_85 {dimension_numbers = #tpu.dot_dimension_numbers<[1], [0], [0], [1], [0, 0, 1, 1], [], []>} : vector<8x16xf32>, vector<16x128xf32>, vector<8x128xf32> -> vector<8x128xf32>
    %85 = arith.addf %80, %84 : vector<8x128xf32>
    %c3_86 = arith.constant 3 : index
    %c0_87 = arith.constant 0 : index
    %c0_88 = arith.constant 0 : index
    %86 = vector.load %arg10[%c3_86, %c0_87, %c0_88] : memref<5x8x16xf32, #tpu.memory_space<vmem>>, vector<1x8x16xf32>
    %87 = vector.shape_cast %86 : vector<1x8x16xf32> to vector<8x16xf32>
    %88 = vector.extract_strided_slice %71 {offsets = [0, 384], sizes = [16, 128], strides = [1, 1]} : vector<16x640xf32> to vector<16x128xf32>
    %cst_89 = arith.constant dense<0.000000e+00> : vector<8x128xf32>
    %89 = tpu.matmul %87, %88, %cst_89 {dimension_numbers = #tpu.dot_dimension_numbers<[1], [0], [0], [1], [0, 0, 1, 1], [], []>} : vector<8x16xf32>, vector<16x128xf32>, vector<8x128xf32> -> vector<8x128xf32>
    %90 = arith.addf %85, %89 : vector<8x128xf32>
    %c4_90 = arith.constant 4 : index
    %c0_91 = arith.constant 0 : index
    %c0_92 = arith.constant 0 : index
    %91 = vector.load %arg10[%c4_90, %c0_91, %c0_92] : memref<5x8x16xf32, #tpu.memory_space<vmem>>, vector<1x8x16xf32>
    %92 = vector.shape_cast %91 : vector<1x8x16xf32> to vector<8x16xf32>
    %93 = vector.extract_strided_slice %71 {offsets = [0, 512], sizes = [16, 128], strides = [1, 1]} : vector<16x640xf32> to vector<16x128xf32>
    %cst_93 = arith.constant dense<0.000000e+00> : vector<8x128xf32>
    %94 = tpu.matmul %92, %93, %cst_93 {dimension_numbers = #tpu.dot_dimension_numbers<[1], [0], [0], [1], [0, 0, 1, 1], [], []>} : vector<8x16xf32>, vector<16x128xf32>, vector<8x128xf32> -> vector<8x128xf32>
    %95 = arith.addf %90, %94 : vector<8x128xf32>
    %c0_94 = arith.constant 0 : index
    %c0_95 = arith.constant 0 : index
    %96 = vector.load %arg12[%c0_94, %c0_95] : memref<1x128xf32, #tpu.memory_space<vmem>>, vector<1x128xf32>
    %97 = vector.broadcast %96 : vector<1x128xf32> to vector<8x128xf32>
    %98 = arith.addf %95, %97 : vector<8x128xf32>
    %99 = math.tanh %98 : vector<8x128xf32>
    %c0_96 = arith.constant 0 : index
    %c0_97 = arith.constant 0 : index
    %100 = vector.load %arg13[%c0_96, %c0_97] : memref<128x64xf32, #tpu.memory_space<vmem>>, vector<128x64xf32>
    %cst_98 = arith.constant dense<0.000000e+00> : vector<8x64xf32>
    %101 = tpu.matmul %99, %100, %cst_98 {dimension_numbers = #tpu.dot_dimension_numbers<[1], [0], [0], [1], [0, 0, 1, 1], [], []>} : vector<8x128xf32>, vector<128x64xf32>, vector<8x64xf32> -> vector<8x64xf32>
    %c0_99 = arith.constant 0 : index
    %c0_100 = arith.constant 0 : index
    %102 = vector.load %arg14[%c0_99, %c0_100] : memref<1x64xf32, #tpu.memory_space<vmem>>, vector<1x64xf32>
    %103 = vector.broadcast %102 : vector<1x64xf32> to vector<8x64xf32>
    %104 = arith.addf %101, %103 : vector<8x64xf32>
    %105 = math.tanh %104 : vector<8x64xf32>
    %c0_101 = arith.constant 0 : index
    %c0_102 = arith.constant 0 : index
    %106 = vector.load %arg15[%c0_101, %c0_102] : memref<64x6xf32, #tpu.memory_space<vmem>>, vector<64x6xf32>
    %cst_103 = arith.constant dense<0.000000e+00> : vector<8x6xf32>
    %107 = tpu.matmul %105, %106, %cst_103 {dimension_numbers = #tpu.dot_dimension_numbers<[1], [0], [0], [1], [0, 0, 1, 1], [], []>} : vector<8x64xf32>, vector<64x6xf32>, vector<8x6xf32> -> vector<8x6xf32>
    %c0_104 = arith.constant 0 : index
    %c0_105 = arith.constant 0 : index
    %108 = vector.load %arg16[%c0_104, %c0_105] : memref<1x6xf32, #tpu.memory_space<vmem>>, vector<1x6xf32>
    %109 = vector.broadcast %108 : vector<1x6xf32> to vector<8x6xf32>
    %110 = arith.addf %107, %109 : vector<8x6xf32>
    %111 = vector.extract_strided_slice %110 {offsets = [0, 0], sizes = [2, 6], strides = [1, 1]} : vector<8x6xf32> to vector<2x6xf32>
    %c0_106 = arith.constant 0 : index
    %c0_107 = arith.constant 0 : index
    %112 = vector.load %arg17[%c0_106, %c0_107] : memref<2x6xf32, #tpu.memory_space<vmem>>, vector<2x6xf32>
    tpu.vector_store %arg17[%c0_106, %c0_107], %111 {strides = array<i32>} : memref<2x6xf32, #tpu.memory_space<vmem>>, vector<2x6xf32>,
    return
  }
}

</mosaic_0001>

<bundles_post_ra>
// kernel: trpo_actor_cnn_forward.1
= control target key start
LH: loop header
LB: loop body
LE: loop exit
PB: predicated region body
PF: predicated region fallthrough
CT: control target
= control target key end

     0   :  { %s8942_s0 = inlined_call_operand.vmem [shape: f32[208,256], index: 0, kind: input, shape index: {}]   ;;  %s8943_s1 = inlined_call_operand.hbm [shape: f32[8,48,208], index: 1, kind: input, shape index: {}]   ;;  %s8944_s2 = inlined_call_operand.hbm [shape: f32[2048,256], index: 2, kind: input, shape index: {}]   ;;  %s8945_s3 = inlined_call_operand.hbm [shape: f32[1,256], index: 3, kind: input, shape index: {}]   ;;  %s8946_s4 = inlined_call_operand.hbm [shape: f32[4,32,48], index: 4, kind: input, shape index: {}]   ;;  %s8947_s5 = inlined_call_operand.hbm [shape: f32[1024,256], index: 5, kind: input, shape index: {}]   ;;  %s8948_s6 = inlined_call_operand.hbm [shape: f32[1,256], index: 6, kind: input, shape index: {}]   ;;  %s8949_s7 = inlined_call_operand.hbm [shape: f32[3,16,32], index: 7, kind: input, shape index: {}]   ;;  %s8950_s8 = inlined_call_operand.hbm [shape: f32[768,128], index: 8, kind: input, shape index: {}]   ;;  %s8951_s9 = inlined_call_operand.hbm [shape: f32[1,128], index: 9, kind: input, shape index: {}]   ;;  %s8952_s10 = inlined_call_operand.hbm [shape: f32[5,8,16], index: 10, kind: input, shape index: {}]   ;;  %s8953_s11 = inlined_call_operand.hbm [shape: f32[128,640], index: 11, kind: input, shape index: {}]   ;;  %s8954_s12 = inlined_call_operand.hbm [shape: f32[1,128], index: 12, kind: input, shape index: {}]   ;;  %s8955_s13 = inlined_call_operand.vmem [shape: f32[128,64], index: 13, kind: input, shape index: {}]   ;;  %s8956_s14 = inlined_call_operand.hbm [shape: f32[1,64], index: 14, kind: input, shape index: {}]   ;;  %s8957_s15 = inlined_call_operand.vmem [shape: f32[64,6], index: 15, kind: input, shape index: {}]   ;;  %s8958_s16 = inlined_call_operand.hbm [shape: f32[1,6], index: 16, kind: input, shape index: {}]   ;;  %s8959_s17 = inlined_call_operand.hbm [shape: f32[2,6], index: 17, kind: output, shape index: {}]  }
   0x1   :  { %8966 = sst [smem:[#allocation35_spill]] %s8942_s0 }
   0x2   :  { %8967 = sst [smem:[#allocation36_spill]] %s8943_s1 }
   0x3   :  { %22 = vsyncpa [#allocation3], 0 }
   0x4   :  { %23 = vsyncpa [#allocation6], 0 }
   0x5   :  { %24 = vsyncpa [#allocation9], 0 }
   0x6   :  { %25 = vsyncpa [#allocation12], 0 }
   0x7   :  { %26 = vsyncpa [#allocation15], 0 }
   0x8   :  { %27 = vsyncpa [#allocation18], 0 }
   0x9   :  { %28 = vsyncpa [#allocation21], 0 }
   0xa   :  { %29 = vsyncpa [#allocation24], 0 }
   0xb   :  { %30 = vsyncpa [#allocation4], 0  ;;  %s7614_s24 = smov [#allocation5]   ;;  %s7615_s26 = smov [#allocation8]  }
   0xc   :  { %s50_s25 = sshll.u32 %s7614_s24, 4  ;;  %s72_s27 = sshll.u32 %s7615_s26, 4  ;;  %s51_s25 = int_to_ptr.vmem [resolvable:$true] %s50_s25  ;;  %s7728_s27 = int_to_ptr.vmem [resolvable:$true] %s72_s27 }
   0xd   :  { %s7266_s0 = scalar_lea.hbm %s8944_s2, 65536 }
   0xe   :  { %p7267_p0 = scmp.ne.s32.totalorder %s8944_s2, %s7266_s0  ;;  %p7270_p1 = scmp.lt.u32.totalorder %s7266_s0, %s8944_s2 }
  0x10   :  { %p7272_p2 = pnand %p7270_p1, %p7267_p0 }
  0x12   :  { %7275 = shalt.err (!%p7272_p2)
}
  0x13   :  { %s7276_s20 = scalar_lea.vmem %s51_s25, 65536  ;;  %p7281_p4 = scmp.lt.s32.totalorder %s51_s25, %s51_s25 }
  0x14   :  { %p7277_p3 = scmp.ne.s32.totalorder %s51_s25, %s7276_s20  ;;  %p7282_p5 = scmp.lt.s32.totalorder %s7276_s20, %s7276_s20 }
  0x16   :  { %p7283_p6 = por %p7282_p5, %p7281_p4 }
  0x18   :  { %p7284_p7 = pnand %p7283_p6, %p7277_p3 }
  0x1a   :  { %7287 = shalt.err (!%p7284_p7)
}
  0x1b   :  { %s8962_s21 = smov 256   ;;  %s8964_s22 = smov 16  }
  0x1c   :  { %56 = dma.hbm_to_vmem [thread:$0]  %s8944_s2, 65536, %s51_s25, [#allocation6], %s8962_s21, %s8962_s21, %s8964_s22  }
  0x1d   :  { %s7288_s29 = scalar_lea.hbm %s8946_s4, 2048 }
  0x1e   :  { %p7289_p8 = scmp.ne.s32.totalorder %s8946_s4, %s7288_s29  ;;  %p7292_p9 = scmp.lt.u32.totalorder %s7288_s29, %s8946_s4 }
  0x20   :  { %p7294_p10 = pnand %p7292_p9, %p7289_p8 }
  0x22   :  { %7297 = shalt.err (!%p7294_p10)
}
  0x23   :  { %s7298_s1 = scalar_lea.vmem %s7728_s27, 2048  ;;  %p7303_p12 = scmp.lt.s32.totalorder %s7728_s27, %s7728_s27 }
  0x24   :  { %p7299_p11 = scmp.ne.s32.totalorder %s7728_s27, %s7298_s1  ;;  %p7304_p13 = scmp.lt.s32.totalorder %s7298_s1, %s7298_s1 }
  0x26   :  { %p7305_p0 = por %p7304_p13, %p7303_p12 }
  0x28   :  { %p7306_p1 = pnand %p7305_p0, %p7299_p11 }
  0x2a   :  { %7309 = shalt.err (!%p7306_p1)
}
  0x2b   :  { %s7618_s2 = smov 128   ;;  %s7619_s25 = smov 8  }
  0x2c   :  { %78 = dma.hbm_to_vmem [thread:$0]  %s8946_s4, 2048, %s7728_s27, [#allocation9], %s7618_s2, %s7618_s2, %s7619_s25  }
  0x2d   :  { %s7620_s24 = smov [#allocation11]   ;;  %s7621_s28 = smov [#allocation14]  }
  0x2e   :  { %s97_s26 = sshll.u32 %s7620_s24, 4  ;;  %s118_s29 = sshll.u32 %s7621_s28, 4  ;;  %s98_s26 = int_to_ptr.vmem [resolvable:$true] %s97_s26  ;;  %s7765_s29 = int_to_ptr.vmem [resolvable:$true] %s118_s29 }
  0x2f   :  { %s7310_s18 = scalar_lea.hbm %s8948_s6, 32 }
  0x30   :  { %p7311_p2 = scmp.ne.s32.totalorder %s8948_s6, %s7310_s18  ;;  %p7314_p3 = scmp.lt.u32.totalorder %s7310_s18, %s8948_s6 }
  0x32   :  { %p7316_p4 = pnand %p7314_p3, %p7311_p2 }
  0x34   :  { %7319 = shalt.err (!%p7316_p4)
}
  0x35   :  { %s7320_s4 = scalar_lea.vmem %s98_s26, 32  ;;  %p7325_p6 = scmp.lt.s32.totalorder %s98_s26, %s98_s26 }
  0x36   :  { %p7321_p5 = scmp.ne.s32.totalorder %s98_s26, %s7320_s4  ;;  %p7326_p7 = scmp.lt.s32.totalorder %s7320_s4, %s7320_s4 }
  0x38   :  { %p7327_p8 = por %p7326_p7, %p7325_p6 }
  0x3a   :  { %p7328_p9 = pnand %p7327_p8, %p7321_p5 }
  0x3c   :  { %7331 = shalt.err (!%p7328_p9)
}
  0x3d   :  { %100 = dma.hbm_to_vmem [thread:$0]  %s8948_s6, 32, %s98_s26, [#allocation12]  }
  0x3e   :  { %s7332_s28 = scalar_lea.hbm %s8950_s8, 12288 }
  0x3f   :  { %p7333_p10 = scmp.ne.s32.totalorder %s8950_s8, %s7332_s28  ;;  %p7336_p11 = scmp.lt.u32.totalorder %s7332_s28, %s8950_s8 }
  0x41   :  { %p7338_p12 = pnand %p7336_p11, %p7333_p10 }
  0x43   :  { %7341 = shalt.err (!%p7338_p12)
}
  0x44   :  { %s7342_s18 = scalar_lea.vmem %s7765_s29, 12288  ;;  %p7347_p0 = scmp.lt.s32.totalorder %s7765_s29, %s7765_s29 }
  0x45   :  { %p7343_p13 = scmp.ne.s32.totalorder %s7765_s29, %s7342_s18  ;;  %p7348_p1 = scmp.lt.s32.totalorder %s7342_s18, %s7342_s18 }
  0x47   :  { %p7349_p2 = por %p7348_p1, %p7347_p0 }
  0x49   :  { %p7350_p3 = pnand %p7349_p2, %p7343_p13 }
  0x4b   :  { %7353 = shalt.err (!%p7350_p3)
}
  0x4c   :  { %124 = dma.hbm_to_vmem [thread:$0]  %s8950_s8, 12288, %s7765_s29, [#allocation15], %s7618_s2, %s7618_s2, %s7619_s25  }
  0x4d   :  { %s7622_s19 = smov [#allocation17]   ;;  %s7623_s4 = smov [#allocation20]  }
  0x4e   :  { %s140_s1 = sshll.u32 %s7622_s19, 4  ;;  %s165_s27 = sshll.u32 %s7623_s4, 4  ;;  %s141_s1 = int_to_ptr.vmem [resolvable:$true] %s140_s1  ;;  %s166_s27 = int_to_ptr.vmem [resolvable:$true] %s165_s27 }
  0x4f   :  { %s7354_s24 = scalar_lea.hbm %s8952_s10, 640 }
  0x50   :  { %p7355_p4 = scmp.ne.s32.totalorder %s8952_s10, %s7354_s24  ;;  %p7358_p5 = scmp.lt.u32.totalorder %s7354_s24, %s8952_s10 }
  0x52   :  { %p7360_p6 = pnand %p7358_p5, %p7355_p4 }
  0x54   :  { %7363 = shalt.err (!%p7360_p6)
}
  0x55   :  { %s7364_s8 = scalar_lea.vmem %s141_s1, 640  ;;  %p7369_p8 = scmp.lt.s32.totalorder %s141_s1, %s141_s1 }
  0x56   :  { %p7365_p7 = scmp.ne.s32.totalorder %s141_s1, %s7364_s8  ;;  %p7370_p9 = scmp.lt.s32.totalorder %s7364_s8, %s7364_s8 }
  0x58   :  { %p7371_p10 = por %p7370_p9, %p7369_p8 }
  0x5a   :  { %p7372_p11 = pnand %p7371_p10, %p7365_p7 }
  0x5c   :  { %7375 = shalt.err (!%p7372_p11)
}
  0x5d   :  { %146 = dma.hbm_to_vmem [thread:$0]  %s8952_s10, 640, %s141_s1, [#allocation18], %s7618_s2, %s7618_s2, %s7619_s25  }
  0x5e   :  { %s7376_s26 = scalar_lea.hbm %s8954_s12, 16 }
  0x5f   :  { %p7377_p12 = scmp.ne.s32.totalorder %s8954_s12, %s7376_s26  ;;  %p7380_p13 = scmp.lt.u32.totalorder %s7376_s26, %s8954_s12 }
  0x61   :  { %p7382_p0 = pnand %p7380_p13, %p7377_p12 }
  0x63   :  { %7385 = shalt.err (!%p7382_p0)
}
  0x64   :  { %s7386_s24 = scalar_lea.vmem %s166_s27, 16  ;;  %s7390_s28 = scalar_lea.vmem %s166_s27, 32 }
  0x65   :  { %p7387_p1 = scmp.ne.s32.totalorder %s166_s27, %s7386_s24  ;;  %p7391_p2 = scmp.lt.s32.totalorder %s166_s27, %s166_s27 }
  0x66   :  { %p7392_p3 = scmp.lt.s32.totalorder %s7390_s28, %s7386_s24 }
  0x68   :  { %p7393_p4 = por %p7392_p3, %p7391_p2 }
  0x6a   :  { %p7394_p5 = pnand %p7393_p4, %p7387_p1 }
  0x6c   :  { %7397 = shalt.err (!%p7394_p5)
}
  0x6d   :  { %168 = dma.hbm_to_vmem [thread:$0]  %s8954_s12, 16, %s166_s27, [#allocation21]  }
  0x6e   :  { %s7624_s0 = smov [#allocation2]   ;;  %s7625_s22 = smov [#allocation7]  }
  0x6f   :  { %s38_s21 = sshll.u32 %s7624_s0, 4  ;;  %s63_s8 = sshll.u32 %s7625_s22, 4  ;;  %s39_s21 = int_to_ptr.vmem [resolvable:$true] %s38_s21  ;;  %s64_s8 = int_to_ptr.vmem [resolvable:$true] %s63_s8 }
  0x70   :  { %s8968_s18 = sld [smem:[#allocation36_spill]] }
  0x76   :  { %s7398_s6 = scalar_lea.hbm %s8968_s18, 12288 }
  0x77   :  { %p7399_p6 = scmp.ne.s32.totalorder %s8968_s18, %s7398_s6  ;;  %p7402_p7 = scmp.lt.u32.totalorder %s7398_s6, %s8968_s18 }
  0x79   :  { %p7404_p8 = pnand %p7402_p7, %p7399_p6 }
  0x7b   :  { %7407 = shalt.err (!%p7404_p8)
}
  0x7c   :  { %s7408_s12 = scalar_lea.vmem %s39_s21, 12288  ;;  %p7413_p10 = scmp.lt.s32.totalorder %s39_s21, %s39_s21 }
  0x7d   :  { %p7409_p9 = scmp.ne.s32.totalorder %s39_s21, %s7408_s12  ;;  %p7414_p11 = scmp.lt.s32.totalorder %s7408_s12, %s7408_s12 }
  0x7f   :  { %p7415_p12 = por %p7414_p11, %p7413_p10 }
  0x81   :  { %p7416_p13 = pnand %p7415_p12, %p7409_p9 }
  0x83   :  { %7419 = shalt.err (!%p7416_p13)
}
  0x84   :  { %s8969_s27 = smov 16   ;;  %s8970_s23 = smov 256  }
  0x85   :  { %44 = dma.hbm_to_vmem [thread:$0]  %s8968_s18, 12288, %s39_s21, [#allocation3], %s8970_s23, %s8970_s23, %s8969_s27  }
  0x86   :  { %s7420_s0 = scalar_lea.hbm %s8945_s3, 32 }
  0x87   :  { %p7421_p0 = scmp.ne.s32.totalorder %s8945_s3, %s7420_s0  ;;  %p7424_p1 = scmp.lt.u32.totalorder %s7420_s0, %s8945_s3 }
  0x89   :  { %p7426_p2 = pnand %p7424_p1, %p7421_p0 }
  0x8b   :  { %7429 = shalt.err (!%p7426_p2)
}
  0x8c   :  { %s7430_s26 = scalar_lea.vmem %s64_s8, 32  ;;  %p7435_p4 = scmp.lt.s32.totalorder %s64_s8, %s64_s8 }
  0x8d   :  { %p7431_p3 = scmp.ne.s32.totalorder %s64_s8, %s7430_s26  ;;  %p7436_p5 = scmp.lt.s32.totalorder %s7430_s26, %s7430_s26 }
  0x8f   :  { %p7437_p6 = por %p7436_p5, %p7435_p4 }
  0x91   :  { %p7438_p7 = pnand %p7437_p6, %p7431_p3 }
  0x93   :  { %7441 = shalt.err (!%p7438_p7)
}
  0x94   :  { %66 = dma.hbm_to_vmem [thread:$0]  %s8945_s3, 32, %s64_s8, [#allocation6]  }
  0x95   :  { %s7626_s19 = smov [#allocation10]   ;;  %s7627_s20 = smov [#allocation13]  }
  0x96   :  { %s84_s4 = sshll.u32 %s7626_s19, 4  ;;  %s106_s12 = sshll.u32 %s7627_s20, 4  ;;  %s85_s4 = int_to_ptr.vmem [resolvable:$true] %s84_s4  ;;  %s7853_s12 = int_to_ptr.vmem [resolvable:$true] %s106_s12 }
  0x97   :  { %s7442_s10 = scalar_lea.hbm %s8947_s5, 32768 }
  0x98   :  { %p7443_p8 = scmp.ne.s32.totalorder %s8947_s5, %s7442_s10  ;;  %p7446_p9 = scmp.lt.u32.totalorder %s7442_s10, %s8947_s5 }
  0x9a   :  { %p7448_p10 = pnand %p7446_p9, %p7443_p8 }
  0x9c   :  { %7451 = shalt.err (!%p7448_p10)
}
  0x9d   :  { %s7452_s3 = scalar_lea.vmem %s85_s4, 32768  ;;  %p7457_p12 = scmp.lt.s32.totalorder %s85_s4, %s85_s4 }
  0x9e   :  { %p7453_p11 = scmp.ne.s32.totalorder %s85_s4, %s7452_s3  ;;  %p7458_p13 = scmp.lt.s32.totalorder %s7452_s3, %s7452_s3 }
  0xa0   :  { %p7459_p0 = por %p7458_p13, %p7457_p12 }
  0xa2   :  { %p7460_p1 = pnand %p7459_p0, %p7453_p11 }
  0xa4   :  { %7463 = shalt.err (!%p7460_p1)
}
  0xa5   :  { %90 = dma.hbm_to_vmem [thread:$0]  %s8947_s5, 32768, %s85_s4, [#allocation9], %s8970_s23, %s8970_s23, %s8969_s27  }
  0xa6   :  { %s7464_s21 = scalar_lea.hbm %s8949_s7, 768 }
  0xa7   :  { %p7465_p2 = scmp.ne.s32.totalorder %s8949_s7, %s7464_s21  ;;  %p7468_p3 = scmp.lt.u32.totalorder %s7464_s21, %s8949_s7 }
  0xa9   :  { %p7470_p4 = pnand %p7468_p3, %p7465_p2 }
  0xab   :  { %7473 = shalt.err (!%p7470_p4)
}
  0xac   :  { %s7474_s28 = scalar_lea.vmem %s7853_s12, 768  ;;  %p7479_p6 = scmp.lt.s32.totalorder %s7853_s12, %s7853_s12 }
  0xad   :  { %p7475_p5 = scmp.ne.s32.totalorder %s7853_s12, %s7474_s28  ;;  %p7480_p7 = scmp.lt.s32.totalorder %s7474_s28, %s7474_s28 }
  0xaf   :  { %p7481_p8 = por %p7480_p7, %p7479_p6 }
  0xb1   :  { %p7482_p9 = pnand %p7481_p8, %p7475_p5 }
  0xb3   :  { %7485 = shalt.err (!%p7482_p9)
}
  0xb4   :  { %112 = dma.hbm_to_vmem [thread:$0]  %s8949_s7, 768, %s7853_s12, [#allocation12], %s7618_s2, %s7618_s2, %s7619_s25  }
  0xb5   :  { %s7628_s23 = smov [#allocation16]   ;;  %s7629_s10 = smov [#allocation19]  }
  0xb6   :  { %s131_s4 = sshll.u32 %s7628_s23, 4  ;;  %s152_s1 = sshll.u32 %s7629_s10, 4  ;;  %s132_s4 = int_to_ptr.vmem [resolvable:$true] %s131_s4  ;;  %s7890_s1 = int_to_ptr.vmem [resolvable:$true] %s152_s1 }
  0xb7   :  { %s7486_s29 = scalar_lea.hbm %s8951_s9, 16 }
  0xb8   :  { %p7487_p10 = scmp.ne.s32.totalorder %s8951_s9, %s7486_s29  ;;  %p7490_p11 = scmp.lt.u32.totalorder %s7486_s29, %s8951_s9 }
  0xba   :  { %p7492_p12 = pnand %p7490_p11, %p7487_p10 }
  0xbc   :  { %7495 = shalt.err (!%p7492_p12)
}
  0xbd   :  { %s7496_s7 = scalar_lea.vmem %s132_s4, 16  ;;  %s7500_s2 = scalar_lea.vmem %s132_s4, 32 }
  0xbe   :  { %p7497_p13 = scmp.ne.s32.totalorder %s132_s4, %s7496_s7  ;;  %p7501_p0 = scmp.lt.s32.totalorder %s132_s4, %s132_s4 }
  0xbf   :  { %p7502_p1 = scmp.lt.s32.totalorder %s7500_s2, %s7496_s7 }
  0xc1   :  { %p7503_p2 = por %p7502_p1, %p7501_p0 }
  0xc3   :  { %p7504_p3 = pnand %p7503_p2, %p7497_p13 }
  0xc5   :  { %7507 = shalt.err (!%p7504_p3)
}
  0xc6   :  { %134 = dma.hbm_to_vmem [thread:$0]  %s8951_s9, 16, %s132_s4, [#allocation15]  }
  0xc7   :  { %s7508_s18 = scalar_lea.hbm %s8953_s11, 10240 }
  0xc8   :  { %p7509_p4 = scmp.ne.s32.totalorder %s8953_s11, %s7508_s18  ;;  %p7512_p5 = scmp.lt.u32.totalorder %s7508_s18, %s8953_s11 }
  0xca   :  { %p7514_p6 = pnand %p7512_p5, %p7509_p4 }
  0xcc   :  { %7517 = shalt.err (!%p7514_p6)
}
  0xcd   :  { %s7518_s5 = scalar_lea.vmem %s7890_s1, 10240  ;;  %p7523_p8 = scmp.lt.s32.totalorder %s7890_s1, %s7890_s1 }
  0xce   :  { %p7519_p7 = scmp.ne.s32.totalorder %s7890_s1, %s7518_s5  ;;  %p7524_p9 = scmp.lt.s32.totalorder %s7518_s5, %s7518_s5 }
  0xd0   :  { %p7525_p10 = por %p7524_p9, %p7523_p8 }
  0xd2   :  { %p7526_p11 = pnand %p7525_p10, %p7519_p7 }
  0xd4   :  { %7529 = shalt.err (!%p7526_p11)
}
  0xd5   :  { %s7630_s9 = smov 640   ;;  %s7631_s27 = smov 40  }
  0xd6   :  { %158 = dma.hbm_to_vmem [thread:$0]  %s8953_s11, 10240, %s7890_s1, [#allocation18], %s7630_s9, %s7630_s9, %s7631_s27  }
  0xd7   :  { %s7632_s10 = smov [#allocation22]   ;;  %s7633_s22 = smov [#allocation23]  }
  0xd8   :  { %s177_s0 = sshll.u32 %s7632_s10, 4  ;;  %s189_s29 = sshll.u32 %s7633_s22, 4  ;;  %s178_s0 = int_to_ptr.vmem [resolvable:$true] %s177_s0  ;;  %s190_s29 = int_to_ptr.vmem [resolvable:$true] %s189_s29 }
  0xd9   :  { %s7530_s30 = scalar_lea.hbm %s8956_s14, 16 }
  0xda   :  { %p7531_p12 = scmp.ne.s32.totalorder %s8956_s14, %s7530_s30  ;;  %p7534_p13 = scmp.lt.u32.totalorder %s7530_s30, %s8956_s14 }
  0xdc   :  { %p7536_p0 = pnand %p7534_p13, %p7531_p12 }
  0xde   :  { %7539 = shalt.err (!%p7536_p0)
}
  0xdf   :  { %s7540_s11 = scalar_lea.vmem %s178_s0, 16  ;;  %s7544_s1 = scalar_lea.vmem %s178_s0, 32 }
  0xe0   :  { %p7541_p1 = scmp.ne.s32.totalorder %s178_s0, %s7540_s11  ;;  %p7545_p2 = scmp.lt.s32.totalorder %s178_s0, %s178_s0 }
  0xe1   :  { %p7546_p3 = scmp.lt.s32.totalorder %s7544_s1, %s7540_s11 }
  0xe3   :  { %p7547_p4 = por %p7546_p3, %p7545_p2 }
  0xe5   :  { %p7548_p5 = pnand %p7547_p4, %p7541_p1 }
  0xe7   :  { %7551 = shalt.err (!%p7548_p5)
}
  0xe8   :  { %180 = dma.hbm_to_vmem [thread:$0]  %s8956_s14, 16, %s178_s0, [#allocation21]  }
  0xe9   :  { %s7552_s19 = scalar_lea.hbm %s8958_s16, 16 }
  0xea   :  { %p7553_p6 = scmp.ne.s32.totalorder %s8958_s16, %s7552_s19  ;;  %p7556_p7 = scmp.lt.u32.totalorder %s7552_s19, %s8958_s16 }
  0xec   :  { %p7558_p8 = pnand %p7556_p7, %p7553_p6 }
  0xee   :  { %7561 = shalt.err (!%p7558_p8)
}
  0xef   :  { %s7562_s9 = scalar_lea.vmem %s190_s29, 16  ;;  %s7566_s27 = scalar_lea.vmem %s190_s29, 32 }
  0xf0   :  { %p7563_p9 = scmp.ne.s32.totalorder %s190_s29, %s7562_s9  ;;  %p7567_p10 = scmp.lt.s32.totalorder %s190_s29, %s190_s29 }
  0xf1   :  { %p7568_p11 = scmp.lt.s32.totalorder %s7566_s27, %s7562_s9 }
  0xf3   :  { %p7569_p12 = por %p7568_p11, %p7567_p10 }
  0xf5   :  { %p7570_p13 = pnand %p7569_p12, %p7563_p9 }
  0xf7   :  { %7573 = shalt.err (!%p7570_p13)
}
  0xf8   :  { %192 = dma.hbm_to_vmem [thread:$0]  %s8958_s16, 16, %s190_s29, [#allocation24]  }
  0xf9   :  { %7596 = dma.done.wait [#allocation3], 12288  }
  0xfa   :  { %7597 = vsyncadd [#allocation3], 4294955008 }
  0xfb   :  { %7598 = dma.done.wait [#allocation6], 65568  }
  0xfc   :  { %7599 = vsyncadd [#allocation6], 4294901728 }
  0xfd   :  { %7600 = dma.done.wait [#allocation9], 34816  }
  0xfe   :  { %7601 = vsyncadd [#allocation9], 4294932480 }
  0xff   :  { %7602 = dma.done.wait [#allocation12], 800  }
 0x100   :  { %7603 = vsyncadd [#allocation12], 4294966496 }
 0x101   :  { %7604 = dma.done.wait [#allocation15], 12304  }
 0x102   :  { %7605 = vsyncadd [#allocation15], 4294954992 }
 0x103   :  { %7606 = dma.done.wait [#allocation18], 10880  }
 0x104   :  { %7607 = vsyncadd [#allocation18], 4294956416 }
 0x105   :  { %7608 = dma.done.wait [#allocation21], 32  }
 0x106   :  { %7609 = vsyncadd [#allocation21], 4294967264 }
 0x107   :  { %7610 = dma.done.wait [#allocation24], 16  }
 0x108   :  { %7611 = vsyncadd [#allocation24], 4294967280  ;;  %s8971_s0 = sld [smem:[#allocation35_spill]]  ;;  %vm299_vm0 = vcmask 654336   ;;  %v288_v35 = vld [vmem:[#allocation2 + $0x8] sm:$0xff]  ;;  %vm2691_vm1 = vcmask 392192  }
 0x109   :  { %5234 = vmatprep.mubr.msk.f32.mxu0 %vm299_vm0, %v288_v35  ;;  %v421_v44 = vld [vmem:[#allocation2 + $0x68] sm:$0xff]  ;;  %v291_v35 = vld [vmem:[#allocation2 + $0x20] sm:$0xff]  ;;  %vm3745_vm2 = vcmask 261120   ;;  %vm7636_vm3 = vmmov 0   ;;  %vm4643_vm4 = vcmask 130048   ;;  %vm5136_vm5 = vcmask 523264  }
 0x10a   :  { %5240 = vmatprep.mubr.msk.f32.mxu1 %vm299_vm0, %v421_v44  ;;  %v429_v44 = vld [vmem:[#allocation2 + $0xa8] sm:$0xff]  ;;  %s7637_s12 = smov [#allocation25]   ;;  %vm5210_vm6 = vcmask 41984  }
 0x10b   :  { %s5218_s26 = sshll.u32 %s7637_s12, 4  ;;  %s5219_s26 = int_to_ptr.vmem [resolvable:$true] %s5218_s26 }
 0x10c   :  { %p7579_p1 = scmp.lt.s32.totalorder %s5219_s26, %s5219_s26 }
 0x10e   :  { %v236_v0 = vld [vmem:[%s8971_s0 + $0x8] sm:$0xff]  ;;  %v238_v1 = vld [vmem:[%s8971_s0 + $0x18] sm:$0xff]  ;;  %v235_v2 = vld [vmem:[%s8971_s0] sm:$0xff] }
 0x10f   :  { %v7954_v3 = vpack.c.bf16 %v238_v1, %v236_v0  ;;  %v237_v4 = vld [vmem:[%s8971_s0 + $0x10] sm:$0xff]  ;;  %v240_v5 = vld [vmem:[%s8971_s0 + $0x28] sm:$0xff]  ;;  %v242_v6 = vld [vmem:[%s8971_s0 + $0x38] sm:$0xff] }
 0x110   :  { %v7965_v7 = vpack.c.bf16 %v237_v4, %v235_v2  ;;  %v7967_v8 = vpack.c.bf16 %v242_v6, %v240_v5  ;;  %v239_v9 = vld [vmem:[%s8971_s0 + $0x20] sm:$0xff]  ;;  %v241_v10 = vld [vmem:[%s8971_s0 + $0x30] sm:$0xff]  ;;  %v244_v11 = vld [vmem:[%s8971_s0 + $0x48] sm:$0xff] }
 0x111   :  { %5612 = vmatprep.subr.bf16.mxu0 %v7954_v3  ;;  %v246_v12 = vld [vmem:[%s8971_s0 + $0x58] sm:$0xff]  ;;  %5664 = vmatprep.subr.bf16.mxu1 %v7954_v3  ;;  %v7984_v13 = vpack.c.bf16 %v241_v10, %v239_v9  ;;  %v243_v15 = vld [vmem:[%s8971_s0 + $0x40] sm:$0xff]  ;;  %v245_v16 = vld [vmem:[%s8971_s0 + $0x50] sm:$0xff] }
 0x112   :  { %5614 = vmatpush1.bf16.msra.mxu0 %v7965_v7  ;;  %5666 = vmatpush1.bf16.msra.mxu1 %v7965_v7  ;;  %v7988_v14 = vpack.c.bf16 %v246_v12, %v244_v11  ;;  %v248_v17 = vld [vmem:[%s8971_s0 + $0x68] sm:$0xff]  ;;  %v250_v18 = vld [vmem:[%s8971_s0 + $0x78] sm:$0xff]  ;;  %v8004_v19 = vpack.c.bf16 %v245_v16, %v243_v15  ;;  %v247_v21 = vld [vmem:[%s8971_s0 + $0x60] sm:$0xff] }
 0x113   :  { %5616 = vmatprep.subr.bf16.mxu0 %v7967_v8  ;;  %5668 = vmatprep.subr.bf16.mxu1 %v7967_v8  ;;  %v8008_v20 = vpack.c.bf16 %v250_v18, %v248_v17  ;;  %v249_v22 = vld [vmem:[%s8971_s0 + $0x70] sm:$0xff]  ;;  %v252_v23 = vld [vmem:[%s8971_s0 + $0x88] sm:$0xff]  ;;  %v254_v24 = vld [vmem:[%s8971_s0 + $0x98] sm:$0xff] }
 0x114   :  { %v8024_v25 = vpack.c.bf16 %v249_v22, %v247_v21  ;;  %v8028_v26 = vpack.c.bf16 %v254_v24, %v252_v23  ;;  %v251_v27 = vld [vmem:[%s8971_s0 + $0x80] sm:$0xff]  ;;  %v253_v28 = vld [vmem:[%s8971_s0 + $0x90] sm:$0xff]  ;;  %v256_v29 = vld [vmem:[%s8971_s0 + $0xa8] sm:$0xff] }
 0x115   :  { %v258_v30 = vld [vmem:[%s8971_s0 + $0xb8] sm:$0xff]  ;;  %v8044_v31 = vpack.c.bf16 %v253_v28, %v251_v27  ;;  %v255_v33 = vld [vmem:[%s8971_s0 + $0xa0] sm:$0xff]  ;;  %v257_v34 = vld [vmem:[%s8971_s0 + $0xb0] sm:$0xff] }
 0x116   :  { %5618 = vmatpush1.bf16.msra.mxu0 %v7984_v13  ;;  %5670 = vmatpush1.bf16.msra.mxu1 %v7984_v13  ;;  %v8048_v32 = vpack.c.bf16 %v258_v30, %v256_v29  ;;  %v260_v36 = vld [vmem:[%s8971_s0 + $0xc8] sm:$0xff]  ;;  %v262_v37 = vld [vmem:[%s8971_s0 + $0xd8] sm:$0xff]  ;;  %v8065_v38 = vpack.c.bf16 %v257_v34, %v255_v33  ;;  %v259_v40 = vld [vmem:[%s8971_s0 + $0xc0] sm:$0xff] }
 0x117   :  { %5620 = vmatprep.subr.bf16.mxu0 %v7988_v14  ;;  %5672 = vmatprep.subr.bf16.mxu1 %v7988_v14  ;;  %v8069_v39 = vpack.c.bf16 %v262_v37, %v260_v36  ;;  %v261_v41 = vld [vmem:[%s8971_s0 + $0xd0] sm:$0xff]  ;;  %v264_v42 = vld [vmem:[%s8971_s0 + $0xe8] sm:$0xff]  ;;  %v266_v43 = vld [vmem:[%s8971_s0 + $0xf8] sm:$0xff] }
 0x118   :  { %v8086_v45 = vpack.c.bf16 %v261_v41, %v259_v40  ;;  %v8090_v46 = vpack.c.bf16 %v266_v43, %v264_v42  ;;  %v263_v47 = vld [vmem:[%s8971_s0 + $0xe0] sm:$0xff]  ;;  %v265_v48 = vld [vmem:[%s8971_s0 + $0xf0] sm:$0xff]  ;;  %v268_v49 = vld [vmem:[%s8971_s0 + $0x108] sm:$0xff] }
 0x119   :  { %v270_v50 = vld [vmem:[%s8971_s0 + $0x118] sm:$0xff]  ;;  %v8106_v51 = vpack.c.bf16 %v265_v48, %v263_v47  ;;  %v267_v53 = vld [vmem:[%s8971_s0 + $0x100] sm:$0xff]  ;;  %v269_v54 = vld [vmem:[%s8971_s0 + $0x110] sm:$0xff] }
 0x11a   :  { %5622 = vmatpush1.bf16.msra.mxu0 %v8004_v19  ;;  %5674 = vmatpush1.bf16.msra.mxu1 %v8004_v19  ;;  %v8110_v52 = vpack.c.bf16 %v270_v50, %v268_v49  ;;  %v272_v55 = vld [vmem:[%s8971_s0 + $0x128] sm:$0xff]  ;;  %v274_v56 = vld [vmem:[%s8971_s0 + $0x138] sm:$0xff]  ;;  %v8126_v57 = vpack.c.bf16 %v269_v54, %v267_v53  ;;  %v271_v59 = vld [vmem:[%s8971_s0 + $0x120] sm:$0xff] }
 0x11b   :  { %5624 = vmatprep.subr.bf16.mxu0 %v8008_v20  ;;  %5676 = vmatprep.subr.bf16.mxu1 %v8008_v20  ;;  %v8130_v58 = vpack.c.bf16 %v274_v56, %v272_v55  ;;  %v273_v60 = vld [vmem:[%s8971_s0 + $0x130] sm:$0xff]  ;;  %v276_v61 = vld [vmem:[%s8971_s0 + $0x148] sm:$0xff]  ;;  %v278_v62 = vld [vmem:[%s8971_s0 + $0x158] sm:$0xff] }
 0x11c   :  { %v8146_v63 = vpack.c.bf16 %v273_v60, %v271_v59  ;;  %v8150_v0 = vpack.c.bf16 %v278_v62, %v276_v61  ;;  %v275_v1 = vld [vmem:[%s8971_s0 + $0x140] sm:$0xff]  ;;  %v277_v2 = vld [vmem:[%s8971_s0 + $0x150] sm:$0xff]  ;;  %v280_v4 = vld [vmem:[%s8971_s0 + $0x168] sm:$0xff] }
 0x11d   :  { %v282_v5 = vld [vmem:[%s8971_s0 + $0x178] sm:$0xff]  ;;  %v8166_v6 = vpack.c.bf16 %v277_v2, %v275_v1  ;;  %v279_v10 = vld [vmem:[%s8971_s0 + $0x160] sm:$0xff]  ;;  %v281_v11 = vld [vmem:[%s8971_s0 + $0x170] sm:$0xff] }
 0x11e   :  { %5626 = vmatpush1.bf16.msra.mxu0 %v8024_v25  ;;  %5678 = vmatpush1.bf16.msra.mxu1 %v8024_v25  ;;  %v8170_v9 = vpack.c.bf16 %v282_v5, %v280_v4  ;;  %v284_v12 = vld [vmem:[%s8971_s0 + $0x188] sm:$0xff]  ;;  %v286_v15 = vld [vmem:[%s8971_s0 + $0x198] sm:$0xff]  ;;  %v8186_v16 = vpack.c.bf16 %v281_v11, %v279_v10  ;;  %v283_v18 = vld [vmem:[%s8971_s0 + $0x180] sm:$0xff] }
 0x11f   :  { %5628 = vmatprep.subr.bf16.mxu0 %v8028_v26  ;;  %5680 = vmatprep.subr.bf16.mxu1 %v8028_v26  ;;  %v8190_v17 = vpack.c.bf16 %v286_v15, %v284_v12  ;;  %v285_v21 = vld [vmem:[%s8971_s0 + $0x190] sm:$0xff]  ;;  %v287_v23 = vld [vmem:[#allocation2] sm:$0xff]  ;;  %v290_v27 = vld [vmem:[#allocation2 + $0x18] sm:$0xff] }
 0x120   :  { %v8200_v22 = vpack.c.bf16 %v285_v21, %v283_v18  ;;  %v420_v24 = vld [vmem:[#allocation2 + $0x60] sm:$0xff]  ;;  %v423_v28 = vld [vmem:[#allocation2 + $0x78] sm:$0xff]  ;;  %v289_v29 = vld [vmem:[#allocation2 + $0x10] sm:$0xff] }
 0x121   :  { %v422_v30 = vld [vmem:[#allocation2 + $0x70] sm:$0xff]  ;;  %v292_v33 = vld [vmem:[#allocation2 + $0x28] sm:$0xff]  ;;  %v424_v36 = vld [vmem:[#allocation2 + $0x80] sm:$0xff] }
 0x122   :  { %5630 = vmatpush1.bf16.msra.mxu0 %v8044_v31  ;;  %5682 = vmatpush1.bf16.msra.mxu1 %v8044_v31  ;;  %v425_v34 = vld [vmem:[#allocation2 + $0x88] sm:$0xff]  ;;  %v294_v37 = vld [vmem:[#allocation2 + $0x38] sm:$0xff]  ;;  %v293_v41 = vld [vmem:[#allocation2 + $0x30] sm:$0xff] }
 0x123   :  { %5632 = vmatprep.subr.bf16.mxu0 %v8048_v32  ;;  %5684 = vmatprep.subr.bf16.mxu1 %v8048_v32  ;;  %v427_v40 = vld [vmem:[#allocation2 + $0x98] sm:$0xff]  ;;  %v426_v42 = vld [vmem:[#allocation2 + $0x90] sm:$0xff]  ;;  %v296_v43 = vld [vmem:[#allocation2 + $0x48] sm:$0xff] }
 0x124   :  { %v295_v47 = vld [vmem:[#allocation2 + $0x40] sm:$0xff]  ;;  %v298_v49 = vld [vmem:[#allocation2 + $0x58] sm:$0xff]  ;;  %v297_v53 = vld [vmem:[#allocation2 + $0x50] sm:$0xff] }
 0x125   :  { %v428_v48 = vld [vmem:[#allocation2 + $0xa0] sm:$0xff]  ;;  %v431_v50 = vld [vmem:[#allocation2 + $0xb8] sm:$0xff]  ;;  %v430_v54 = vld [vmem:[#allocation2 + $0xb0] sm:$0xff] }
 0x126   :  { %5634 = vmatpush1.bf16.msra.mxu0 %v8065_v38  ;;  %5686 = vmatpush1.bf16.msra.mxu1 %v8065_v38  ;;  %v553_v55 = vld [vmem:[#allocation2 + $0xc8] sm:$0xff]  ;;  %v552_v56 = vld [vmem:[#allocation2 + $0xc0] sm:$0xff]  ;;  %v555_v59 = vld [vmem:[#allocation2 + $0xd8] sm:$0xff] }
 0x127   :  { %5636 = vmatprep.subr.bf16.mxu0 %v8069_v39  ;;  %5688 = vmatprep.subr.bf16.mxu1 %v8069_v39  ;;  %v554_v60 = vld [vmem:[#allocation2 + $0xd0] sm:$0xff]  ;;  %v557_v61 = vld [vmem:[#allocation2 + $0xe8] sm:$0xff]  ;;  %v556_v62 = vld [vmem:[#allocation2 + $0xe0] sm:$0xff] }
 0x128   :  { %v559_v1 = vld [vmem:[#allocation2 + $0xf8] sm:$0xff]  ;;  %v558_v2 = vld [vmem:[#allocation2 + $0xf0] sm:$0xff]  ;;  %v561_v4 = vld [vmem:[#allocation2 + $0x108] sm:$0xff] }
 0x129   :  { %v560_v5 = vld [vmem:[#allocation2 + $0x100] sm:$0xff]  ;;  %v563_v10 = vld [vmem:[#allocation2 + $0x118] sm:$0xff]  ;;  %v685_v11 = vld [vmem:[#allocation2 + $0x128] sm:$0xff] }
 0x12a   :  { %5638 = vmatpush1.bf16.msra.mxu0 %v8086_v45  ;;  %5690 = vmatpush1.bf16.msra.mxu1 %v8086_v45  ;;  %v562_v12 = vld [vmem:[#allocation2 + $0x110] sm:$0xff]  ;;  %v684_v15 = vld [vmem:[#allocation2 + $0x120] sm:$0xff]  ;;  %v817_v18 = vld [vmem:[#allocation2 + $0x188] sm:$0xff] }
 0x12b   :  { %5640 = vmatprep.subr.bf16.mxu0 %v8090_v46  ;;  %5692 = vmatprep.subr.bf16.mxu1 %v8090_v46  ;;  %v687_v21 = vld [vmem:[#allocation2 + $0x138] sm:$0xff] }
 0x12e   :  { %5642 = vmatpush1.bf16.msra.mxu0 %v8106_v51  ;;  %5694 = vmatpush1.bf16.msra.mxu1 %v8106_v51 }
 0x12f   :  { %5644 = vmatprep.subr.bf16.mxu0 %v8110_v52  ;;  %5696 = vmatprep.subr.bf16.mxu1 %v8110_v52 }
 0x132   :  { %5646 = vmatpush1.bf16.msra.mxu0 %v8126_v57  ;;  %5698 = vmatpush1.bf16.msra.mxu1 %v8126_v57 }
 0x133   :  { %5648 = vmatprep.subr.bf16.mxu0 %v8130_v58  ;;  %5700 = vmatprep.subr.bf16.mxu1 %v8130_v58 }
 0x136   :  { %5650 = vmatpush1.bf16.msra.mxu0 %v8146_v63  ;;  %5702 = vmatpush1.bf16.msra.mxu1 %v8146_v63 }
 0x137   :  { %5652 = vmatprep.subr.bf16.mxu0 %v8150_v0  ;;  %5704 = vmatprep.subr.bf16.mxu1 %v8150_v0 }
 0x13a   :  { %5654 = vmatpush1.bf16.msra.mxu0 %v8166_v6  ;;  %5706 = vmatpush1.bf16.msra.mxu1 %v8166_v6 }
 0x13b   :  { %5656 = vmatprep.subr.bf16.mxu0 %v8170_v9  ;;  %5708 = vmatprep.subr.bf16.mxu1 %v8170_v9 }
 0x13e   :  { %5658 = vmatpush1.bf16.msra.mxu0 %v8186_v16  ;;  %5710 = vmatpush1.bf16.msra.mxu1 %v8186_v16 }
 0x13f   :  { %5660 = vmatprep.subr.bf16.mxu0 %v8190_v17  ;;  %5712 = vmatprep.subr.bf16.mxu1 %v8190_v17 }
 0x142   :  { %5662 = vmatpush1.bf16.msra.mxu0 %v8200_v22  ;;  %5714 = vmatpush1.bf16.msra.mxu1 %v8200_v22 }
 0x143   :  { %5716 = vmatprep.subr.bf16.mxu0 %v7954_v3  ;;  %5768 = vmatprep.subr.bf16.mxu1 %v7954_v3 }
 0x145   :  { %383 = vmatmul.mubr.f32.vlgmr.msra.gmra.mrb[0].mxu0 %v287_v23  ;;  %515 = vmatmul.mubr.f32.vlgmr.msra.gmra.mrb[0].mxu1 %v420_v24  ;;  %v686_v23 = vld [vmem:[#allocation2 + $0x130] sm:$0xff]  ;;  %v689_v24 = vld [vmem:[#allocation2 + $0x148] sm:$0xff] }
 0x146   :  { %5718 = vmatpush1.bf16.msra.mxu0 %v7965_v7  ;;  %5235 = vmatprep.mubr.msk.f32.mxu0 %vm299_vm0, %v290_v27  ;;  %v688_v27 = vld [vmem:[#allocation2 + $0x140] sm:$0xff] }
 0x147   :  { %5720 = vmatprep.subr.bf16.mxu0 %v7967_v8  ;;  %5241 = vmatprep.mubr.msk.f32.mxu1 %vm299_vm0, %v423_v28  ;;  %v691_v28 = vld [vmem:[#allocation2 + $0x158] sm:$0xff] }
 0x148   :  { %5770 = vmatpush1.bf16.msra.mxu1 %v7965_v7 }
 0x149   :  { %389 = vmatmul.mubr.f32.gmra.mrb[2].mxu0 %v289_v29  ;;  %521 = vmatmul.mubr.f32.gmra.mrb[2].mxu1 %v422_v30  ;;  %v690_v29 = vld [vmem:[#allocation2 + $0x150] sm:$0xff]  ;;  %v693_v30 = vld [vmem:[#allocation2 + $0x168] sm:$0xff] }
 0x14a   :  { %5722 = vmatpush1.bf16.msra.mxu0 %v7984_v13  ;;  %5236 = vmatprep.mubr.msk.f32.mxu0 %vm299_vm0, %v292_v33  ;;  %v692_v33 = vld [vmem:[#allocation2 + $0x160] sm:$0xff] }
 0x14b   :  { %5724 = vmatprep.subr.bf16.mxu0 %v7988_v14  ;;  %5242 = vmatprep.mubr.msk.f32.mxu1 %vm299_vm0, %v425_v34  ;;  %v695_v34 = vld [vmem:[#allocation2 + $0x178] sm:$0xff] }
 0x14c   :  { %5772 = vmatprep.subr.bf16.mxu1 %v7967_v8 }
 0x14d   :  { %395 = vmatmul.mubr.f32.gmra.mrb[4].mxu0 %v291_v35  ;;  %527 = vmatmul.mubr.f32.gmra.mrb[4].mxu1 %v424_v36  ;;  %v694_v35 = vld [vmem:[#allocation2 + $0x170] sm:$0xff]  ;;  %v816_v36 = vld [vmem:[#allocation2 + $0x180] sm:$0xff] }
 0x14e   :  { %5726 = vmatpush1.bf16.msra.mxu0 %v8004_v19  ;;  %5237 = vmatprep.mubr.msk.f32.mxu0 %vm299_vm0, %v294_v37  ;;  %v819_v37 = vld [vmem:[#allocation2 + $0x198] sm:$0xff] }
 0x14f   :  { %5728 = vmatprep.subr.bf16.mxu0 %v8008_v20  ;;  %5243 = vmatprep.mubr.msk.f32.mxu1 %vm299_vm0, %v427_v40  ;;  %v818_v40 = vld [vmem:[#allocation2 + $0x190] sm:$0xff] }
 0x150   :  { %5774 = vmatpush1.bf16.msra.mxu1 %v7984_v13 }
 0x151   :  { %401 = vmatmul.mubr.f32.gmra.mrb[6].mxu0 %v293_v41  ;;  %533 = vmatmul.mubr.f32.gmra.mrb[6].mxu1 %v426_v42  ;;  %v821_v41 = vld [vmem:[#allocation2 + $0x1a8] sm:$0xff]  ;;  %v820_v42 = vld [vmem:[#allocation2 + $0x1a0] sm:$0xff] }
 0x152   :  { %5730 = vmatpush1.bf16.msra.mxu0 %v8024_v25  ;;  %5238 = vmatprep.mubr.msk.f32.mxu0 %vm299_vm0, %v296_v43  ;;  %v823_v43 = vld [vmem:[#allocation2 + $0x1b8] sm:$0xff] }
 0x153   :  { %5732 = vmatprep.subr.bf16.mxu0 %v8028_v26  ;;  %5244 = vmatprep.mubr.msk.f32.mxu1 %vm299_vm0, %v429_v44  ;;  %v822_v44 = vld [vmem:[#allocation2 + $0x1b0] sm:$0xff] }
 0x154   :  { %5776 = vmatprep.subr.bf16.mxu1 %v7988_v14 }
 0x155   :  { %407 = vmatmul.mubr.f32.gmra.mrb[8].mxu0 %v295_v47  ;;  %539 = vmatmul.mubr.f32.gmra.mrb[8].mxu1 %v428_v48  ;;  %v825_v47 = vld [vmem:[#allocation2 + $0x1c8] sm:$0xff]  ;;  %v824_v48 = vld [vmem:[#allocation2 + $0x1c0] sm:$0xff] }
 0x156   :  { %5734 = vmatpush1.bf16.msra.mxu0 %v8044_v31  ;;  %5239 = vmatprep.mubr.msk.f32.mxu0 %vm299_vm0, %v298_v49  ;;  %v827_v49 = vld [vmem:[#allocation2 + $0x1d8] sm:$0xff] }
 0x157   :  { %5736 = vmatprep.subr.bf16.mxu0 %v8048_v32  ;;  %5245 = vmatprep.mubr.msk.f32.mxu1 %vm299_vm0, %v431_v50  ;;  %v826_v50 = vld [vmem:[#allocation2 + $0x1d0] sm:$0xff] }
 0x158   :  { %5778 = vmatpush1.bf16.msra.mxu1 %v8004_v19 }
 0x159   :  { %413 = vmatmul.mubr.f32.gmra.mrb[10].mxu0 %v297_v53  ;;  %545 = vmatmul.mubr.f32.gmra.mrb[10].mxu1 %v430_v54  ;;  %v1081_v53 = vld [vmem:[#allocation2 + $0x248] sm:$0xff]  ;;  %v1346_v54 = vld [vmem:[#allocation5 + $0x18] sm:$0xff] }
 0x15a   :  { %5738 = vmatpush1.bf16.msra.mxu0 %v8065_v38  ;;  %5246 = vmatprep.mubr.msk.f32.mxu0 %vm299_vm0, %v553_v55 }
 0x15b   :  { %5740 = vmatprep.subr.bf16.mxu0 %v8069_v39  ;;  %5780 = vmatprep.subr.bf16.mxu1 %v8008_v20 }
 0x15c   :  { %5782 = vmatpush1.bf16.msra.mxu1 %v8024_v25  ;;  %5252 = vmatprep.mubr.msk.f32.mxu1 %vm299_vm0, %v685_v11  ;;  %v1352_v11 = vld [vmem:[#allocation5 + $0x48] sm:$0xff] }
 0x15d   :  { %5784 = vmatprep.subr.bf16.mxu1 %v8028_v26 }
 0x15e   :  { %5742 = vmatpush1.bf16.msra.mxu0 %v8086_v45 }
 0x15f   :  { %5744 = vmatprep.subr.bf16.mxu0 %v8090_v46 }
 0x160   :  { %5786 = vmatpush1.bf16.msra.mxu1 %v8044_v31 }
 0x161   :  { %5788 = vmatprep.subr.bf16.mxu1 %v8048_v32 }
 0x162   :  { %5746 = vmatpush1.bf16.msra.mxu0 %v8106_v51 }
 0x163   :  { %5748 = vmatprep.subr.bf16.mxu0 %v8110_v52 }
 0x164   :  { %5790 = vmatpush1.bf16.msra.mxu1 %v8065_v38 }
 0x165   :  { %5792 = vmatprep.subr.bf16.mxu1 %v8069_v39 }
 0x166   :  { %5750 = vmatpush1.bf16.msra.mxu0 %v8126_v57 }
 0x167   :  { %5752 = vmatprep.subr.bf16.mxu0 %v8130_v58 }
 0x168   :  { %5794 = vmatpush1.bf16.msra.mxu1 %v8086_v45 }
 0x169   :  { %5796 = vmatprep.subr.bf16.mxu1 %v8090_v46 }
 0x16a   :  { %5754 = vmatpush1.bf16.msra.mxu0 %v8146_v63 }
 0x16b   :  { %5756 = vmatprep.subr.bf16.mxu0 %v8150_v0 }
 0x16c   :  { %5798 = vmatpush1.bf16.msra.mxu1 %v8106_v51 }
 0x16d   :  { %5800 = vmatprep.subr.bf16.mxu1 %v8110_v52 }
 0x16e   :  { %5758 = vmatpush1.bf16.msra.mxu0 %v8166_v6 }
 0x16f   :  { %5760 = vmatprep.subr.bf16.mxu0 %v8170_v9 }
 0x170   :  { %5802 = vmatpush1.bf16.msra.mxu1 %v8126_v57 }
 0x171   :  { %5804 = vmatprep.subr.bf16.mxu1 %v8130_v58 }
 0x172   :  { %5762 = vmatpush1.bf16.msra.mxu0 %v8186_v16 }
 0x173   :  { %5764 = vmatprep.subr.bf16.mxu0 %v8190_v17 }
 0x174   :  { %5806 = vmatpush1.bf16.msra.mxu1 %v8146_v63 }
 0x175   :  { %5808 = vmatprep.subr.bf16.mxu1 %v8150_v0 }
 0x176   :  { %5766 = vmatpush1.bf16.msra.mxu0 %v8200_v22 }
 0x177   :  { %5820 = vmatprep.subr.bf16.mxu0 %v7954_v3 }
 0x178   :  { %5810 = vmatpush1.bf16.msra.mxu1 %v8166_v6 }
 0x179   :  { %647 = vmatmul.mubr.f32.vlgmr.msra.gmra.mrb[12].mxu0 %v552_v56  ;;  %5812 = vmatprep.subr.bf16.mxu1 %v8170_v9  ;;  %v1343_v56 = vld [vmem:[#allocation5] sm:$0xff] }
 0x17a   :  { %5822 = vmatpush1.bf16.msra.mxu0 %v7965_v7  ;;  %5247 = vmatprep.mubr.msk.f32.mxu0 %vm299_vm0, %v555_v59  ;;  %v1345_v59 = vld [vmem:[#allocation5 + $0x10] sm:$0xff] }
 0x17b   :  { %5824 = vmatprep.subr.bf16.mxu0 %v7967_v8 }
 0x17c   :  { %5814 = vmatpush1.bf16.msra.mxu1 %v8186_v16 }
 0x17d   :  { %653 = vmatmul.mubr.f32.gmra.mrb[14].mxu0 %v554_v60  ;;  %5816 = vmatprep.subr.bf16.mxu1 %v8190_v17  ;;  %v1348_v60 = vld [vmem:[#allocation5 + $0x28] sm:$0xff] }
 0x17e   :  { %5826 = vmatpush1.bf16.msra.mxu0 %v7984_v13  ;;  %5248 = vmatprep.mubr.msk.f32.mxu0 %vm299_vm0, %v557_v61  ;;  %v1350_v61 = vld [vmem:[#allocation5 + $0x38] sm:$0xff] }
 0x17f   :  { %5828 = vmatprep.subr.bf16.mxu0 %v7988_v14 }
 0x180   :  { %5818 = vmatpush1.bf16.msra.mxu1 %v8200_v22 }
 0x181   :  { %659 = vmatmul.mubr.f32.gmra.mrb[16].mxu0 %v556_v62  ;;  %5872 = vmatprep.subr.bf16.mxu1 %v7954_v3  ;;  %v1080_v62 = vld [vmem:[#allocation2 + $0x240] sm:$0xff] }
 0x182   :  { %5830 = vmatpush1.bf16.msra.mxu0 %v8004_v19  ;;  %5249 = vmatprep.mubr.msk.f32.mxu0 %vm299_vm0, %v559_v1  ;;  %v6029_v1 = vpack.c.bf16 %v1345_v59, %v1343_v56  ;;  %v1363_v56 = vld [vmem:[#allocation5 + $0xa0] sm:$0xff]  ;;  %v1365_v59 = vld [vmem:[#allocation5 + $0xb0] sm:$0xff] }
 0x183   :  { %5832 = vmatprep.subr.bf16.mxu0 %v8008_v20  ;;  %779 = vmatmul.mubr.f32.vlgmr.msra.gmra.mrb[12].mxu1 %v684_v15 }
 0x184   :  { %5253 = vmatprep.mubr.msk.f32.mxu1 %vm299_vm0, %v687_v21  ;;  %5874 = vmatpush1.bf16.msra.mxu1 %v7965_v7 }
 0x185   :  { %665 = vmatmul.mubr.f32.gmra.mrb[18].mxu0 %v558_v2  ;;  %5876 = vmatprep.subr.bf16.mxu1 %v7967_v8  ;;  %v6031_v2 = vpack.c.bf16 %v1350_v61, %v1348_v60  ;;  %v1091_v60 = vld [vmem:[#allocation2 + $0x298] sm:$0xff]  ;;  %v1368_v61 = vld [vmem:[#allocation5 + $0xc8] sm:$0xff] }
 0x186   :  { %5834 = vmatpush1.bf16.msra.mxu0 %v8024_v25  ;;  %5250 = vmatprep.mubr.msk.f32.mxu0 %vm299_vm0, %v561_v4  ;;  %v1347_v4 = vld [vmem:[#allocation5 + $0x20] sm:$0xff] }
 0x187   :  { %5836 = vmatprep.subr.bf16.mxu0 %v8028_v26  ;;  %785 = vmatmul.mubr.f32.gmra.mrb[14].mxu1 %v686_v23  ;;  %v1351_v23 = vld [vmem:[#allocation5 + $0x40] sm:$0xff] }
 0x188   :  { %5254 = vmatprep.mubr.msk.f32.mxu1 %vm299_vm0, %v689_v24  ;;  %5878 = vmatpush1.bf16.msra.mxu1 %v7984_v13  ;;  %v1353_v24 = vld [vmem:[#allocation5 + $0x50] sm:$0xff] }
 0x189   :  { %671 = vmatmul.mubr.f32.gmra.mrb[20].mxu0 %v560_v5  ;;  %5880 = vmatprep.subr.bf16.mxu1 %v7988_v14  ;;  %v1349_v5 = vld [vmem:[#allocation5 + $0x30] sm:$0xff] }
 0x18a   :  { %5838 = vmatpush1.bf16.msra.mxu0 %v8044_v31  ;;  %5251 = vmatprep.mubr.msk.f32.mxu0 %vm299_vm0, %v563_v10  ;;  %v1083_v10 = vld [vmem:[#allocation2 + $0x258] sm:$0xff]  ;;  %v6033_v15 = vpack.c.bf16 %v1349_v5, %v1347_v4  ;;  %v1367_v5 = vld [vmem:[#allocation5 + $0xc0] sm:$0xff] }
 0x18b   :  { %5840 = vmatprep.subr.bf16.mxu0 %v8048_v32  ;;  %791 = vmatmul.mubr.f32.gmra.mrb[16].mxu1 %v688_v27  ;;  %v1085_v27 = vld [vmem:[#allocation2 + $0x268] sm:$0xff] }
 0x18c   :  { %5255 = vmatprep.mubr.msk.f32.mxu1 %vm299_vm0, %v691_v28  ;;  %5882 = vmatpush1.bf16.msra.mxu1 %v8004_v19  ;;  %v1356_v28 = vld [vmem:[#allocation5 + $0x68] sm:$0xff] }
 0x18d   :  { %677 = vmatmul.mubr.f32.gmra.mrb[22].mxu0 %v562_v12  ;;  %5884 = vmatprep.subr.bf16.mxu1 %v8008_v20  ;;  %v1354_v12 = vld [vmem:[#allocation5 + $0x58] sm:$0xff] }
 0x18e   :  { %5842 = vmatpush1.bf16.msra.mxu0 %v8065_v38  ;;  %5258 = vmatprep.mubr.msk.f32.mxu0 %vm299_vm0, %v817_v18  ;;  %v1082_v18 = vld [vmem:[#allocation2 + $0x250] sm:$0xff]  ;;  %v6035_v21 = vpack.c.bf16 %v1354_v12, %v1352_v11  ;;  %v1372_v11 = vld [vmem:[#allocation5 + $0xe8] sm:$0xff]  ;;  %v1374_v12 = vld [vmem:[#allocation5 + $0xf8] sm:$0xff] }
 0x18f   :  { %5844 = vmatprep.subr.bf16.mxu0 %v8069_v39  ;;  %797 = vmatmul.mubr.f32.gmra.mrb[18].mxu1 %v690_v29  ;;  %v1358_v29 = vld [vmem:[#allocation5 + $0x78] sm:$0xff] }
 0x190   :  { %5886 = vmatpush1.bf16.msra.mxu1 %v8024_v25  ;;  %5256 = vmatprep.mubr.msk.f32.mxu1 %vm299_vm0, %v693_v30  ;;  %v6037_v30 = vpack.c.bf16 %v1353_v24, %v1351_v23  ;;  %v1373_v23 = vld [vmem:[#allocation5 + $0xf0] sm:$0xff]  ;;  %v1376_v24 = vld [vmem:[#allocation5 + $0x108] sm:$0xff] }
 0x191   :  { %5888 = vmatprep.subr.bf16.mxu1 %v8028_v26 }
 0x192   :  { %5846 = vmatpush1.bf16.msra.mxu0 %v8086_v45 }
 0x193   :  { %5848 = vmatprep.subr.bf16.mxu0 %v8090_v46  ;;  %803 = vmatmul.mubr.f32.gmra.mrb[20].mxu1 %v692_v33  ;;  %v1084_v33 = vld [vmem:[#allocation2 + $0x260] sm:$0xff] }
 0x194   :  { %5257 = vmatprep.mubr.msk.f32.mxu1 %vm299_vm0, %v695_v34  ;;  %5890 = vmatpush1.bf16.msra.mxu1 %v8044_v31  ;;  %v6039_v34 = vpack.c.bf16 %v1358_v29, %v1356_v28 }
 0x195   :  { %5892 = vmatprep.subr.bf16.mxu1 %v8048_v32 }
 0x196   :  { %5850 = vmatpush1.bf16.msra.mxu0 %v8106_v51 }
 0x197   :  { %5852 = vmatprep.subr.bf16.mxu0 %v8110_v52  ;;  %809 = vmatmul.mubr.f32.gmra.mrb[22].mxu1 %v694_v35  ;;  %v1355_v35 = vld [vmem:[#allocation5 + $0x60] sm:$0xff] }
 0x198   :  { %5894 = vmatpush1.bf16.msra.mxu1 %v8065_v38 }
 0x199   :  { %5896 = vmatprep.subr.bf16.mxu1 %v8069_v39 }
 0x19a   :  { %5854 = vmatpush1.bf16.msra.mxu0 %v8126_v57 }
 0x19b   :  { %5856 = vmatprep.subr.bf16.mxu0 %v8130_v58 }
 0x19c   :  { %5898 = vmatpush1.bf16.msra.mxu1 %v8086_v45 }
 0x19d   :  { %5900 = vmatprep.subr.bf16.mxu1 %v8090_v46 }
 0x19e   :  { %5858 = vmatpush1.bf16.msra.mxu0 %v8146_v63 }
 0x19f   :  { %5860 = vmatprep.subr.bf16.mxu0 %v8150_v0 }
 0x1a0   :  { %5902 = vmatpush1.bf16.msra.mxu1 %v8106_v51 }
 0x1a1   :  { %5904 = vmatprep.subr.bf16.mxu1 %v8110_v52 }
 0x1a2   :  { %5862 = vmatpush1.bf16.msra.mxu0 %v8166_v6 }
 0x1a3   :  { %5864 = vmatprep.subr.bf16.mxu0 %v8170_v9 }
 0x1a4   :  { %5906 = vmatpush1.bf16.msra.mxu1 %v8126_v57 }
 0x1a5   :  { %5908 = vmatprep.subr.bf16.mxu1 %v8130_v58 }
 0x1a6   :  { %5866 = vmatpush1.bf16.msra.mxu0 %v8186_v16 }
 0x1a7   :  { %5868 = vmatprep.subr.bf16.mxu0 %v8190_v17 }
 0x1a8   :  { %5910 = vmatpush1.bf16.msra.mxu1 %v8146_v63 }
 0x1a9   :  { %5912 = vmatprep.subr.bf16.mxu1 %v8150_v0 }
 0x1aa   :  { %5870 = vmatpush1.bf16.msra.mxu0 %v8200_v22 }
 0x1ab   :  { %5924 = vmatprep.subr.bf16.mxu0 %v7954_v3 }
 0x1ac   :  { %5914 = vmatpush1.bf16.msra.mxu1 %v8166_v6 }
 0x1ad   :  { %911 = vmatmul.mubr.f32.vlgmr.msra.gmra.mrb[24].mxu0 %v816_v36  ;;  %5916 = vmatprep.subr.bf16.mxu1 %v8170_v9  ;;  %v1357_v36 = vld [vmem:[#allocation5 + $0x70] sm:$0xff] }
 0x1ae   :  { %5926 = vmatpush1.bf16.msra.mxu0 %v7965_v7  ;;  %5259 = vmatprep.mubr.msk.f32.mxu0 %vm299_vm0, %v819_v37  ;;  %v1087_v37 = vld [vmem:[#allocation2 + $0x278] sm:$0xff] }
 0x1af   :  { %5928 = vmatprep.subr.bf16.mxu0 %v7967_v8 }
 0x1b0   :  { %5918 = vmatpush1.bf16.msra.mxu1 %v8186_v16 }
 0x1b1   :  { %917 = vmatmul.mubr.f32.gmra.mrb[26].mxu0 %v818_v40  ;;  %5920 = vmatprep.subr.bf16.mxu1 %v8190_v17  ;;  %v1360_v40 = vld [vmem:[#allocation5 + $0x88] sm:$0xff] }
 0x1b2   :  { %5930 = vmatpush1.bf16.msra.mxu0 %v7984_v13  ;;  %5260 = vmatprep.mubr.msk.f32.mxu0 %vm299_vm0, %v821_v41  ;;  %v1362_v41 = vld [vmem:[#allocation5 + $0x98] sm:$0xff] }
 0x1b3   :  { %5932 = vmatprep.subr.bf16.mxu0 %v7988_v14 }
 0x1b4   :  { %5922 = vmatpush1.bf16.msra.mxu1 %v8200_v22 }
 0x1b5   :  { %923 = vmatmul.mubr.f32.gmra.mrb[28].mxu0 %v820_v42  ;;  %5976 = vmatprep.subr.bf16.mxu1 %v7954_v3  ;;  %v1344_v3 = vld [vmem:[#allocation5 + $0x8] sm:$0xff]  ;;  %v6041_v42 = vpack.c.bf16 %v1357_v36, %v1355_v35  ;;  %v1382_v35 = vld [vmem:[#allocation5 + $0x138] sm:$0xff] }
 0x1b6   :  { %5934 = vmatpush1.bf16.msra.mxu0 %v8004_v19  ;;  %5261 = vmatprep.mubr.msk.f32.mxu0 %vm299_vm0, %v823_v43  ;;  %v6027_v55 = vpack.c.bf16 %v1346_v54, %v1344_v3  ;;  %v1086_v43 = vld [vmem:[#allocation2 + $0x270] sm:$0xff]  ;;  %v1088_v54 = vld [vmem:[#allocation2 + $0x280] sm:$0xff] }
 0x1b7   :  { %5936 = vmatprep.subr.bf16.mxu0 %v8008_v20 }
 0x1b9   :  { %929 = vmatmul.mubr.f32.gmra.mrb[30].mxu0 %v822_v44  ;;  %v6043_v44 = vpack.c.bf16 %v1362_v41, %v1360_v40  ;;  %v1379_v40 = vld [vmem:[#allocation5 + $0x120] sm:$0xff]  ;;  %v1381_v41 = vld [vmem:[#allocation5 + $0x130] sm:$0xff] }
 0x1ba   :  { %5938 = vmatpush1.bf16.msra.mxu0 %v8024_v25  ;;  %5262 = vmatprep.mubr.msk.f32.mxu0 %vm299_vm0, %v825_v47  ;;  %v1359_v47 = vld [vmem:[#allocation5 + $0x80] sm:$0xff] }
 0x1bb   :  { %5940 = vmatprep.subr.bf16.mxu0 %v8028_v26 }
 0x1bd   :  { %935 = vmatmul.mubr.f32.gmra.mrb[32].mxu0 %v824_v48  ;;  %v1361_v48 = vld [vmem:[#allocation5 + $0x90] sm:$0xff] }
 0x1be   :  { %5942 = vmatpush1.bf16.msra.mxu0 %v8044_v31  ;;  %5263 = vmatprep.mubr.msk.f32.mxu0 %vm299_vm0, %v827_v49  ;;  %v1089_v49 = vld [vmem:[#allocation2 + $0x288] sm:$0xff]  ;;  %v6045_v3 = vpack.c.bf16 %v1361_v48, %v1359_v47  ;;  %v1383_v48 = vld [vmem:[#allocation5 + $0x140] sm:$0xff] }
 0x1bf   :  { %5944 = vmatprep.subr.bf16.mxu0 %v8048_v32 }
 0x1c1   :  { %941 = vmatmul.mubr.f32.gmra.mrb[34].mxu0 %v826_v50  ;;  %v1364_v50 = vld [vmem:[#allocation5 + $0xa8] sm:$0xff] }
 0x1c2   :  { %5946 = vmatpush1.bf16.msra.mxu0 %v8065_v38  ;;  %5270 = vmatprep.mubr.msk.f32.mxu0 %vm299_vm0, %v1081_v53  ;;  %v1366_v53 = vld [vmem:[#allocation5 + $0xb8] sm:$0xff] }
 0x1c3   :  { %5948 = vmatprep.subr.bf16.mxu0 %v8069_v39 }
 0x1c6   :  { %5950 = vmatpush1.bf16.msra.mxu0 %v8086_v45 }
 0x1c7   :  { %5952 = vmatprep.subr.bf16.mxu0 %v8090_v46 }
 0x1ca   :  { %5954 = vmatpush1.bf16.msra.mxu0 %v8106_v51 }
 0x1cb   :  { %5956 = vmatprep.subr.bf16.mxu0 %v8110_v52 }
 0x1ce   :  { %5958 = vmatpush1.bf16.msra.mxu0 %v8126_v57 }
 0x1cf   :  { %5960 = vmatprep.subr.bf16.mxu0 %v8130_v58 }
 0x1d2   :  { %5962 = vmatpush1.bf16.msra.mxu0 %v8146_v63 }
 0x1d3   :  { %5964 = vmatprep.subr.bf16.mxu0 %v8150_v0 }
 0x1d6   :  { %5966 = vmatpush1.bf16.msra.mxu0 %v8166_v6 }
 0x1d7   :  { %5968 = vmatprep.subr.bf16.mxu0 %v8170_v9 }
 0x1da   :  { %5970 = vmatpush1.bf16.msra.mxu0 %v8186_v16 }
 0x1db   :  { %5972 = vmatprep.subr.bf16.mxu0 %v8190_v17 }
 0x1de   :  { %5974 = vmatpush1.bf16.msra.mxu0 %v8200_v22 }
 0x1df   :  { %6028 = vmatprep.subr.bf16.mxu0 %v6027_v55  ;;  %v6047_v55 = vpack.c.bf16 %v1366_v53, %v1364_v50  ;;  %v1388_v50 = vld [vmem:[#allocation5 + $0x168] sm:$0xff]  ;;  %v1390_v53 = vld [vmem:[#allocation5 + $0x178] sm:$0xff] }
 0x1e1   :  { %1175 = vmatmul.mubr.f32.vlgmr.msra.gmra.mrb[36].mxu0 %v1080_v62  ;;  %v1370_v62 = vld [vmem:[#allocation5 + $0xd8] sm:$0xff] }
 0x1e2   :  { %6030 = vmatpush1.bf16.msra.mxu0 %v6029_v1  ;;  %5271 = vmatprep.mubr.msk.f32.mxu0 %vm299_vm0, %v1083_v10  ;;  %v6049_v1 = vpack.c.bf16 %v1365_v59, %v1363_v56  ;;  %v6051_v4 = vpack.c.bf16 %v1370_v62, %v1368_v61  ;;  %v1369_v10 = vld [vmem:[#allocation5 + $0xd0] sm:$0xff]  ;;  %v949_v59 = vld [vmem:[#allocation2 + $0x1e8] sm:$0xff]  ;;  %v1394_v61 = vld [vmem:[#allocation5 + $0x198] sm:$0xff] }
 0x1e3   :  { %6032 = vmatprep.subr.bf16.mxu0 %v6031_v2  ;;  %v1090_v2 = vld [vmem:[#allocation2 + $0x290] sm:$0xff]  ;;  %5264 = vmatprep.mubr.msk.f32.mxu1 %vm299_vm0, %v949_v59  ;;  %v1412_v59 = vld [vmem:[#allocation5 + $0x228] sm:$0xff] }
 0x1e4   :  { %v1389_v56 = vld [vmem:[#allocation5 + $0x170] sm:$0xff] }
 0x1e5   :  { %1181 = vmatmul.mubr.f32.gmra.mrb[38].mxu0 %v1082_v18  ;;  %v6055_v18 = vpack.c.bf16 %v1374_v12, %v1372_v11  ;;  %v1396_v11 = vld [vmem:[#allocation5 + $0x1a8] sm:$0xff]  ;;  %v1398_v12 = vld [vmem:[#allocation5 + $0x1b8] sm:$0xff] }
 0x1e6   :  { %6034 = vmatpush1.bf16.msra.mxu0 %v6033_v15  ;;  %5272 = vmatprep.mubr.msk.f32.mxu0 %vm299_vm0, %v1085_v27  ;;  %v6053_v15 = vpack.c.bf16 %v1369_v10, %v1367_v5  ;;  %v1378_v27 = vld [vmem:[#allocation5 + $0x118] sm:$0xff]  ;;  %v1393_v5 = vld [vmem:[#allocation5 + $0x190] sm:$0xff] }
 0x1e7   :  { %6036 = vmatprep.subr.bf16.mxu0 %v6035_v21  ;;  %v1371_v21 = vld [vmem:[#allocation5 + $0xe0] sm:$0xff]  ;;  %v6059_v29 = vpack.c.bf16 %v1378_v27, %v1376_v24  ;;  %v951_v10 = vld [vmem:[#allocation2 + $0x1f8] sm:$0xff]  ;;  %v1397_v24 = vld [vmem:[#allocation5 + $0x1b0] sm:$0xff] }
 0x1e8   :  { %v6057_v28 = vpack.c.bf16 %v1373_v23, %v1371_v21  ;;  %v6079_v21 = vpack.c.bf16 %v1398_v12, %v1396_v11  ;;  %v1395_v23 = vld [vmem:[#allocation5 + $0x1a0] sm:$0xff]  ;;  %v953_v27 = vld [vmem:[#allocation2 + $0x208] sm:$0xff]  ;;  %v1418_v12 = vld [vmem:[#allocation5 + $0x258] sm:$0xff] }
 0x1e9   :  { %1187 = vmatmul.mubr.f32.gmra.mrb[40].mxu0 %v1084_v33  ;;  %v1377_v33 = vld [vmem:[#allocation5 + $0x110] sm:$0xff]  ;;  %v1416_v11 = vld [vmem:[#allocation5 + $0x248] sm:$0xff] }
 0x1ea   :  { %6038 = vmatpush1.bf16.msra.mxu0 %v6037_v30  ;;  %5273 = vmatprep.mubr.msk.f32.mxu0 %vm299_vm0, %v1087_v37  ;;  %v1375_v30 = vld [vmem:[#allocation5 + $0x100] sm:$0xff] }
 0x1eb   :  { %6040 = vmatprep.subr.bf16.mxu0 %v6039_v34  ;;  %v1380_v34 = vld [vmem:[#allocation5 + $0x128] sm:$0xff]  ;;  %v6061_v36 = vpack.c.bf16 %v1377_v33, %v1375_v30  ;;  %v1399_v33 = vld [vmem:[#allocation5 + $0x1c0] sm:$0xff] }
 0x1ec   :  { %v6063_v37 = vpack.c.bf16 %v1382_v35, %v1380_v34  ;;  %v1401_v34 = vld [vmem:[#allocation5 + $0x1d0] sm:$0xff]  ;;  %v955_v35 = vld [vmem:[#allocation2 + $0x218] sm:$0xff] }
 0x1ed   :  { %1193 = vmatmul.mubr.f32.gmra.mrb[42].mxu0 %v1086_v43  ;;  %v1386_v43 = vld [vmem:[#allocation5 + $0x158] sm:$0xff] }
 0x1ee   :  { %6042 = vmatpush1.bf16.msra.mxu0 %v6041_v42  ;;  %5274 = vmatprep.mubr.msk.f32.mxu0 %vm299_vm0, %v1089_v49  ;;  %v1384_v42 = vld [vmem:[#allocation5 + $0x148] sm:$0xff]  ;;  %v1385_v49 = vld [vmem:[#allocation5 + $0x150] sm:$0xff] }
 0x1ef   :  { %6044 = vmatprep.subr.bf16.mxu0 %v6043_v44  ;;  %v6065_v44 = vpack.c.bf16 %v1381_v41, %v1379_v40  ;;  %v6067_v47 = vpack.c.bf16 %v1386_v43, %v1384_v42  ;;  %v1403_v41 = vld [vmem:[#allocation5 + $0x1e0] sm:$0xff]  ;;  %v1405_v42 = vld [vmem:[#allocation5 + $0x1f0] sm:$0xff]  ;;  %v957_v43 = vld [vmem:[#allocation2 + $0x228] sm:$0xff] }
 0x1f1   :  { %1199 = vmatmul.mubr.f32.gmra.mrb[44].mxu0 %v1088_v54  ;;  %v6071_v54 = vpack.c.bf16 %v1390_v53, %v1388_v50  ;;  %v6089_v50 = vpack.c.bf16 %v1405_v42, %v1403_v41  ;;  %v956_v53 = vld [vmem:[#allocation2 + $0x220] sm:$0xff] }
 0x1f2   :  { %6046 = vmatpush1.bf16.msra.mxu0 %v6045_v3  ;;  %5275 = vmatprep.mubr.msk.f32.mxu0 %vm299_vm0, %v1091_v60  ;;  %v6069_v3 = vpack.c.bf16 %v1385_v49, %v1383_v48  ;;  %v1392_v60 = vld [vmem:[#allocation5 + $0x188] sm:$0xff]  ;;  %v1410_v48 = vld [vmem:[#allocation5 + $0x218] sm:$0xff]  ;;  %v1423_v42 = vld [vmem:[#allocation5 + $0x280] sm:$0xff] }
 0x1f3   :  { %6048 = vmatprep.subr.bf16.mxu0 %v6047_v55  ;;  %v1387_v55 = vld [vmem:[#allocation5 + $0x160] sm:$0xff] }
 0x1f4   :  { %v6073_v62 = vpack.c.bf16 %v1389_v56, %v1387_v55  ;;  %v1409_v55 = vld [vmem:[#allocation5 + $0x210] sm:$0xff]  ;;  %v959_v56 = vld [vmem:[#allocation2 + $0x238] sm:$0xff] }
 0x1f5   :  { %1205 = vmatmul.mubr.f32.gmra.mrb[46].mxu0 %v1090_v2  ;;  %v6075_v2 = vpack.c.bf16 %v1394_v61, %v1392_v60  ;;  %v1414_v60 = vld [vmem:[#allocation5 + $0x238] sm:$0xff] }
 0x1f6   :  { %6050 = vmatpush1.bf16.msra.mxu0 %v6049_v1  ;;  %v948_v1 = vld [vmem:[#allocation2 + $0x1e0] sm:$0xff] }
 0x1f7   :  { %6052 = vmatprep.subr.bf16.mxu0 %v6051_v4  ;;  %v1391_v4 = vld [vmem:[#allocation5 + $0x180] sm:$0xff]  ;;  %1043 = vmatmul.mubr.f32.vlgmr.msra.gmra.mrb[24].mxu1 %v948_v1 }
 0x1f8   :  { %5265 = vmatprep.mubr.msk.f32.mxu1 %vm299_vm0, %v951_v10  ;;  %5978 = vmatpush1.bf16.msra.mxu1 %v7965_v7  ;;  %v6081_v7 = vpack.c.bf16 %v1397_v24, %v1395_v23  ;;  %v1413_v10 = vld [vmem:[#allocation5 + $0x230] sm:$0xff]  ;;  %v6099_v23 = vpack.c.bf16 %v1418_v12, %v1416_v11  ;;  %v1415_v24 = vld [vmem:[#allocation5 + $0x240] sm:$0xff]  ;;  %v1444_v12 = vld [vmem:[#allocation5 + $0x328] sm:$0xff] }
 0x1f9   :  { %5980 = vmatprep.subr.bf16.mxu1 %v7967_v8  ;;  %v952_v8 = vld [vmem:[#allocation2 + $0x200] sm:$0xff] }
 0x1fa   :  { %6054 = vmatpush1.bf16.msra.mxu0 %v6053_v15  ;;  %v6077_v15 = vpack.c.bf16 %v1393_v5, %v1391_v4  ;;  %v6095_v4 = vpack.c.bf16 %v1414_v60, %v1412_v59  ;;  %v1411_v5 = vld [vmem:[#allocation5 + $0x220] sm:$0xff]  ;;  %v1433_v60 = vld [vmem:[#allocation5 + $0x2d0] sm:$0xff] }
 0x1fb   :  { %6056 = vmatprep.subr.bf16.mxu0 %v6055_v18  ;;  %v950_v18 = vld [vmem:[#allocation2 + $0x1f0] sm:$0xff]  ;;  %v1439_v11 = vld [vmem:[#allocation5 + $0x300] sm:$0xff] }
 0x1fc   :  { %1049 = vmatmul.mubr.f32.gmra.mrb[26].mxu1 %v950_v18 }
 0x1fd   :  { %5266 = vmatprep.mubr.msk.f32.mxu1 %vm299_vm0, %v953_v27  ;;  %5982 = vmatpush1.bf16.msra.mxu1 %v7984_v13  ;;  %v6085_v13 = vpack.c.bf16 %v1401_v34, %v1399_v33  ;;  %v1417_v27 = vld [vmem:[#allocation5 + $0x250] sm:$0xff]  ;;  %v1419_v34 = vld [vmem:[#allocation5 + $0x260] sm:$0xff] }
 0x1fe   :  { %6058 = vmatpush1.bf16.msra.mxu0 %v6057_v28  ;;  %v1400_v28 = vld [vmem:[#allocation5 + $0x1c8] sm:$0xff]  ;;  %5984 = vmatprep.subr.bf16.mxu1 %v7988_v14  ;;  %v954_v14 = vld [vmem:[#allocation2 + $0x210] sm:$0xff] }
 0x1ff   :  { %6060 = vmatprep.subr.bf16.mxu0 %v6059_v29  ;;  %v1402_v29 = vld [vmem:[#allocation5 + $0x1d8] sm:$0xff] }
 0x200   :  { %v6083_v30 = vpack.c.bf16 %v1402_v29, %v1400_v28  ;;  %1055 = vmatmul.mubr.f32.gmra.mrb[28].mxu1 %v952_v8  ;;  %v1420_v28 = vld [vmem:[#allocation5 + $0x268] sm:$0xff]  ;;  %v1422_v29 = vld [vmem:[#allocation5 + $0x278] sm:$0xff] }
 0x201   :  { %5267 = vmatprep.mubr.msk.f32.mxu1 %vm299_vm0, %v955_v35  ;;  %5986 = vmatpush1.bf16.msra.mxu1 %v8004_v19  ;;  %v6103_v33 = vpack.c.bf16 %v1422_v29, %v1420_v28  ;;  %v1421_v35 = vld [vmem:[#allocation5 + $0x270] sm:$0xff]  ;;  %v1447_v28 = vld [vmem:[#allocation5 + $0x340] sm:$0xff] }
 0x202   :  { %6062 = vmatpush1.bf16.msra.mxu0 %v6061_v36  ;;  %v1404_v36 = vld [vmem:[#allocation5 + $0x1e8] sm:$0xff]  ;;  %5988 = vmatprep.subr.bf16.mxu1 %v8008_v20  ;;  %v1449_v29 = vld [vmem:[#allocation5 + $0x350] sm:$0xff] }
 0x203   :  { %6064 = vmatprep.subr.bf16.mxu0 %v6063_v37  ;;  %v1406_v37 = vld [vmem:[#allocation5 + $0x1f8] sm:$0xff] }
 0x204   :  { %v6087_v40 = vpack.c.bf16 %v1406_v37, %v1404_v36  ;;  %1061 = vmatmul.mubr.f32.gmra.mrb[30].mxu1 %v954_v14  ;;  %v1424_v36 = vld [vmem:[#allocation5 + $0x288] sm:$0xff]  ;;  %v1426_v37 = vld [vmem:[#allocation5 + $0x298] sm:$0xff] }
 0x205   :  { %5268 = vmatprep.mubr.msk.f32.mxu1 %vm299_vm0, %v957_v43  ;;  %5990 = vmatpush1.bf16.msra.mxu1 %v8024_v25  ;;  %v6107_v41 = vpack.c.bf16 %v1426_v37, %v1424_v36  ;;  %v1425_v43 = vld [vmem:[#allocation5 + $0x290] sm:$0xff]  ;;  %v1458_v36 = vld [vmem:[#allocation5 + $0x398] sm:$0xff] }
 0x206   :  { %6066 = vmatpush1.bf16.msra.mxu0 %v6065_v44  ;;  %5992 = vmatprep.subr.bf16.mxu1 %v8028_v26 }
 0x207   :  { %6068 = vmatprep.subr.bf16.mxu0 %v6067_v47  ;;  %v1408_v47 = vld [vmem:[#allocation5 + $0x208] sm:$0xff] }
 0x208   :  { %1067 = vmatmul.mubr.f32.gmra.mrb[32].mxu1 %v956_v53 }
 0x209   :  { %5269 = vmatprep.mubr.msk.f32.mxu1 %vm299_vm0, %v959_v56  ;;  %5994 = vmatpush1.bf16.msra.mxu1 %v8044_v31  ;;  %v1434_v56 = vld [vmem:[#allocation5 + $0x2d8] sm:$0xff] }
 0x20a   :  { %6070 = vmatpush1.bf16.msra.mxu0 %v6069_v3  ;;  %v6091_v3 = vpack.c.bf16 %v1410_v48, %v1408_v47  ;;  %5996 = vmatprep.subr.bf16.mxu1 %v8048_v32  ;;  %v6097_v32 = vpack.c.bf16 %v1413_v10, %v1411_v5  ;;  %v1430_v47 = vld [vmem:[#allocation5 + $0x2b8] sm:$0xff] }
 0x20b   :  { %6072 = vmatprep.subr.bf16.mxu0 %v6071_v54  ;;  %v1407_v54 = vld [vmem:[#allocation5 + $0x200] sm:$0xff]  ;;  %v1442_v5 = vld [vmem:[#allocation5 + $0x318] sm:$0xff] }
 0x20c   :  { %v6093_v1 = vpack.c.bf16 %v1409_v55, %v1407_v54  ;;  %v1429_v54 = vld [vmem:[#allocation5 + $0x2b0] sm:$0xff]  ;;  %v1432_v55 = vld [vmem:[#allocation5 + $0x2c8] sm:$0xff] }
 0x20d   :  { %5998 = vmatpush1.bf16.msra.mxu1 %v8065_v38  ;;  %v6115_v59 = vpack.c.bf16 %v1434_v56, %v1432_v55 }
 0x20e   :  { %6074 = vmatpush1.bf16.msra.mxu0 %v6073_v62  ;;  %6000 = vmatprep.subr.bf16.mxu1 %v8069_v39  ;;  %v6101_v39 = vpack.c.bf16 %v1417_v27, %v1415_v24  ;;  %v1448_v24 = vld [vmem:[#allocation5 + $0x348] sm:$0xff] }
 0x20f   :  { %6076 = vmatprep.subr.bf16.mxu0 %v6075_v2  ;;  %v958_v2 = vld [vmem:[#allocation2 + $0x230] sm:$0xff] }
 0x210   :  { %1073 = vmatmul.mubr.f32.gmra.mrb[34].mxu1 %v958_v2  ;;  %v1437_v2 = vld [vmem:[#allocation5 + $0x2f0] sm:$0xff] }
 0x211   :  { %6002 = vmatpush1.bf16.msra.mxu1 %v8086_v45 }
 0x212   :  { %6078 = vmatpush1.bf16.msra.mxu0 %v6077_v15  ;;  %6004 = vmatprep.subr.bf16.mxu1 %v8090_v46  ;;  %v6105_v46 = vpack.c.bf16 %v1421_v35, %v1419_v34  ;;  %v1453_v34 = vld [vmem:[#allocation5 + $0x370] sm:$0xff]  ;;  %v1456_v35 = vld [vmem:[#allocation5 + $0x388] sm:$0xff] }
 0x213   :  { %6080 = vmatprep.subr.bf16.mxu0 %v6079_v21 }
 0x215   :  { %6006 = vmatpush1.bf16.msra.mxu1 %v8106_v51 }
 0x216   :  { %6082 = vmatpush1.bf16.msra.mxu0 %v6081_v7  ;;  %6008 = vmatprep.subr.bf16.mxu1 %v8110_v52  ;;  %v6109_v52 = vpack.c.bf16 %v1425_v43, %v1423_v42  ;;  %v1460_v42 = vld [vmem:[#allocation5 + $0x3a8] sm:$0xff]  ;;  %v1462_v43 = vld [vmem:[#allocation5 + $0x3b8] sm:$0xff] }
 0x217   :  { %6084 = vmatprep.subr.bf16.mxu0 %v6083_v30 }
 0x218   :  { %v384_v44 = vpop.f32.mrb[0].mxu0  ;;  %v8382_v49 = vpop.f32.mrb[0].mxu1 }
 0x219   :  { %v386_v19 = vpop.f32.mrb[1].mxu0  ;;  %v8386_v20 = vpop.f32.mrb[1].mxu1  ;;  %6010 = vmatpush1.bf16.msra.mxu1 %v8126_v57 }
 0x21a   :  { %6086 = vmatpush1.bf16.msra.mxu0 %v6085_v13  ;;  %1931 = vmatprep.mubr.f32.mxu0 %v386_v19 }
 0x21b   :  { %6088 = vmatprep.subr.bf16.mxu0 %v6087_v40  ;;  %6012 = vmatprep.subr.bf16.mxu1 %v8130_v58  ;;  %v1431_v58 = vld [vmem:[#allocation5 + $0x2c0] sm:$0xff] }
 0x21c   :  { %v390_v61 = vpop.f32.mrb[2].mxu0  ;;  %v8389_v62 = vpop.f32.mrb[2].mxu1 }
 0x21d   :  { %v392_v25 = vpop.f32.mrb[3].mxu0  ;;  %v8393_v26 = vpop.f32.mrb[3].mxu1  ;;  %6014 = vmatpush1.bf16.msra.mxu1 %v8146_v63 }
 0x21e   :  { %6090 = vmatpush1.bf16.msra.mxu0 %v6089_v50  ;;  %6016 = vmatprep.subr.bf16.mxu1 %v8150_v0  ;;  %v1435_v0 = vld [vmem:[#allocation5 + $0x2e0] sm:$0xff] }
 0x21f   :  { %6092 = vmatprep.subr.bf16.mxu0 %v6091_v3  ;;  %v1427_v3 = vld [vmem:[#allocation5 + $0x2a0] sm:$0xff]  ;;  %v6121_v10 = vpack.c.bf16 %v1437_v2, %v1435_v0 }
 0x220   :  { %v396_v15 = vpop.f32.mrb[4].mxu0  ;;  %v8396_v18 = vpop.f32.mrb[4].mxu1  ;;  %v6113_v57 = vpack.c.bf16 %v1429_v54, %v1427_v3  ;;  %v1466_v3 = vld [vmem:[#allocation5 + $0x3d8] sm:$0xff]  ;;  %v1467_v2 = vld [vmem:[#allocation5 + $0x3e0] sm:$0xff] }
 0x221   :  { %1932 = vmatmul.mubr.f32.vlgmr.msra.gmra.mrb[48].mxu0 %v384_v44  ;;  %v398_v31 = vpop.f32.mrb[5].mxu0  ;;  %v8399_v21 = vpop.f32.mrb[5].mxu1  ;;  %v1428_v44 = vld [vmem:[#allocation5 + $0x2a8] sm:$0xff]  ;;  %6018 = vmatpush1.bf16.msra.mxu1 %v8166_v6 }
 0x222   :  { %6094 = vmatpush1.bf16.msra.mxu0 %v6093_v1  ;;  %1937 = vmatprep.mubr.f32.mxu0 %v392_v25  ;;  %v6111_v53 = vpack.c.bf16 %v1430_v47, %v1428_v44  ;;  %v1438_v25 = vld [vmem:[#allocation5 + $0x2f8] sm:$0xff]  ;;  %v6117_v1 = vpack.c.bf16 %v1433_v60, %v1431_v58  ;;  %v1465_v58 = vld [vmem:[#allocation5 + $0x3d0] sm:$0xff]  ;;  %v1468_v60 = vld [vmem:[#allocation5 + $0x3e8] sm:$0xff] }
 0x223   :  { %6096 = vmatprep.subr.bf16.mxu0 %v6095_v4  ;;  %6020 = vmatprep.subr.bf16.mxu1 %v8170_v9  ;;  %v1440_v4 = vld [vmem:[#allocation5 + $0x308] sm:$0xff]  ;;  %v1441_v9 = vld [vmem:[#allocation5 + $0x310] sm:$0xff] }
 0x224   :  { %v402_v7 = vpop.f32.mrb[6].mxu0  ;;  %v8402_v8 = vpop.f32.mrb[6].mxu1  ;;  %v6123_v6 = vpack.c.bf16 %v1442_v5, %v1440_v4  ;;  %v1469_v4 = vld [vmem:[#allocation5 + $0x3f0] sm:$0xff]  ;;  %v1472_v5 = vld [vmem:[#allocation5 + $0x408] sm:$0xff] }
 0x225   :  { %1938 = vmatmul.mubr.f32.gmra.mrb[50].mxu0 %v390_v61  ;;  %v404_v38 = vpop.f32.mrb[7].mxu0  ;;  %v8405_v30 = vpop.f32.mrb[7].mxu1  ;;  %v1436_v61 = vld [vmem:[#allocation5 + $0x2e8] sm:$0xff]  ;;  %6022 = vmatpush1.bf16.msra.mxu1 %v8186_v16  ;;  %v1450_v16 = vld [vmem:[#allocation5 + $0x358] sm:$0xff] }
 0x226   :  { %6098 = vmatpush1.bf16.msra.mxu0 %v6097_v32  ;;  %1943 = vmatprep.mubr.f32.mxu0 %v398_v31  ;;  %v6119_v63 = vpack.c.bf16 %v1438_v25, %v1436_v61  ;;  %v1443_v32 = vld [vmem:[#allocation5 + $0x320] sm:$0xff]  ;;  %v6131_v27 = vpack.c.bf16 %v1450_v16, %v1448_v24  ;;  %v1470_v61 = vld [vmem:[#allocation5 + $0x3f8] sm:$0xff] }
 0x227   :  { %6100 = vmatprep.subr.bf16.mxu0 %v6099_v23  ;;  %6024 = vmatprep.subr.bf16.mxu1 %v8190_v17  ;;  %v1445_v23 = vld [vmem:[#allocation5 + $0x330] sm:$0xff]  ;;  %v6151_v0 = vpack.c.bf16 %v1470_v61, %v1468_v60  ;;  %v1494_v60 = vld [vmem:[#allocation5 + $0x4b8] sm:$0xff] }
 0x228   :  { %v408_v13 = vpop.f32.mrb[8].mxu0  ;;  %v8408_v14 = vpop.f32.mrb[8].mxu1  ;;  %v6129_v17 = vpack.c.bf16 %v1445_v23, %v1443_v32  ;;  %v1478_v32 = vld [vmem:[#allocation5 + $0x438] sm:$0xff] }
 0x229   :  { %1944 = vmatmul.mubr.f32.gmra.mrb[52].mxu0 %v396_v15  ;;  %v410_v45 = vpop.f32.mrb[9].mxu0  ;;  %v8411_v40 = vpop.f32.mrb[9].mxu1  ;;  %v1446_v15 = vld [vmem:[#allocation5 + $0x338] sm:$0xff]  ;;  %6026 = vmatpush1.bf16.msra.mxu1 %v8200_v22 }
 0x22a   :  { %6102 = vmatpush1.bf16.msra.mxu0 %v6101_v39  ;;  %1949 = vmatprep.mubr.f32.mxu0 %v404_v38  ;;  %v6127_v31 = vpack.c.bf16 %v1446_v15, %v1444_v12  ;;  %v1454_v38 = vld [vmem:[#allocation5 + $0x378] sm:$0xff]  ;;  %v6133_v39 = vpack.c.bf16 %v1449_v29, %v1447_v28  ;;  %v1471_v15 = vld [vmem:[#allocation5 + $0x400] sm:$0xff]  ;;  %v1477_v29 = vld [vmem:[#allocation5 + $0x430] sm:$0xff] }
 0x22b   :  { %6104 = vmatprep.subr.bf16.mxu0 %v6103_v33  ;;  %v1451_v33 = vld [vmem:[#allocation5 + $0x360] sm:$0xff] }
 0x22c   :  { %v414_v48 = vpop.f32.mrb[10].mxu0  ;;  %v8414_v19 = vpop.f32.mrb[10].mxu1  ;;  %v6137_v37 = vpack.c.bf16 %v1453_v34, %v1451_v33  ;;  %v1475_v28 = vld [vmem:[#allocation5 + $0x420] sm:$0xff] }
 0x22d   :  { %1950 = vmatmul.mubr.f32.gmra.mrb[54].mxu0 %v402_v7  ;;  %v416_v51 = vpop.f32.mrb[11].mxu0  ;;  %v8417_v50 = vpop.f32.mrb[11].mxu1  ;;  %v1452_v7 = vld [vmem:[#allocation5 + $0x368] sm:$0xff]  ;;  %v6161_v34 = vpack.c.bf16 %v1477_v29, %v1475_v28  ;;  %v1506_v28 = vld [vmem:[#allocation5 + $0x518] sm:$0xff] }
 0x22e   :  { %6106 = vmatpush1.bf16.msra.mxu0 %v6105_v46  ;;  %1955 = vmatprep.mubr.f32.mxu0 %v410_v45  ;;  %v6135_v22 = vpack.c.bf16 %v1454_v38, %v1452_v7  ;;  %v1455_v45 = vld [vmem:[#allocation5 + $0x380] sm:$0xff]  ;;  %v1457_v46 = vld [vmem:[#allocation5 + $0x390] sm:$0xff]  ;;  %v1480_v38 = vld [vmem:[#allocation5 + $0x448] sm:$0xff] }
 0x22f   :  { %6108 = vmatprep.subr.bf16.mxu0 %v6107_v41  ;;  %v6141_v47 = vpack.c.bf16 %v1457_v46, %v1455_v45  ;;  %v1484_v46 = vld [vmem:[#allocation5 + $0x468] sm:$0xff] }
 0x231   :  { %1956 = vmatmul.mubr.f32.gmra.mrb[56].mxu0 %v408_v13  ;;  %v6139_v13 = vpack.c.bf16 %v1458_v36, %v1456_v35 }
 0x232   :  { %6110 = vmatpush1.bf16.msra.mxu0 %v6109_v52  ;;  %1961 = vmatprep.mubr.f32.mxu0 %v416_v51  ;;  %v1459_v51 = vld [vmem:[#allocation5 + $0x3a0] sm:$0xff]  ;;  %v1461_v52 = vld [vmem:[#allocation5 + $0x3b0] sm:$0xff] }
 0x233   :  { %6112 = vmatprep.subr.bf16.mxu0 %v6111_v53  ;;  %v1464_v53 = vld [vmem:[#allocation5 + $0x3c8] sm:$0xff]  ;;  %v6145_v56 = vpack.c.bf16 %v1461_v52, %v1459_v51 }
 0x234   :  { %v1488_v52 = vld [vmem:[#allocation5 + $0x488] sm:$0xff] }
 0x235   :  { %1962 = vmatmul.mubr.f32.gmra.mrb[58].mxu0 %v414_v48  ;;  %v6143_v48 = vpack.c.bf16 %v1462_v43, %v1460_v42  ;;  %v1486_v42 = vld [vmem:[#allocation5 + $0x478] sm:$0xff] }
 0x236   :  { %6114 = vmatpush1.bf16.msra.mxu0 %v6113_v57  ;;  %2032 = vmatprep.mubr.f32.mxu0 %v8386_v20  ;;  %v6125_v20 = vpack.c.bf16 %v1441_v9, %v1439_v11  ;;  %v6147_v57 = vpack.c.bf16 %v1466_v3, %v1464_v53  ;;  %v6153_v9 = vpack.c.bf16 %v1469_v4, %v1467_v2  ;;  %v1490_v53 = vld [vmem:[#allocation5 + $0x498] sm:$0xff]  ;;  %v1496_v4 = vld [vmem:[#allocation5 + $0x4c8] sm:$0xff] }
 0x237   :  { %6116 = vmatprep.subr.bf16.mxu0 %v6115_v59  ;;  %v1463_v59 = vld [vmem:[#allocation5 + $0x3c0] sm:$0xff] }
 0x23a   :  { %6118 = vmatpush1.bf16.msra.mxu0 %v6117_v1 }
 0x23b   :  { %6120 = vmatprep.subr.bf16.mxu0 %v6119_v63  ;;  %v6149_v63 = vpack.c.bf16 %v1465_v58, %v1463_v59  ;;  %v1492_v58 = vld [vmem:[#allocation5 + $0x4a8] sm:$0xff] }
 0x23e   :  { %6122 = vmatpush1.bf16.msra.mxu0 %v6121_v10  ;;  %v1474_v10 = vld [vmem:[#allocation5 + $0x418] sm:$0xff] }
 0x23f   :  { %6124 = vmatprep.subr.bf16.mxu0 %v6123_v6  ;;  %v6155_v12 = vpack.c.bf16 %v1474_v10, %v1472_v5  ;;  %v1498_v5 = vld [vmem:[#allocation5 + $0x4d8] sm:$0xff] }
 0x242   :  { %6126 = vmatpush1.bf16.msra.mxu0 %v6125_v20  ;;  %v1473_v20 = vld [vmem:[#allocation5 + $0x410] sm:$0xff] }
 0x243   :  { %6128 = vmatprep.subr.bf16.mxu0 %v6127_v31  ;;  %v1476_v31 = vld [vmem:[#allocation5 + $0x428] sm:$0xff]  ;;  %v6157_v16 = vpack.c.bf16 %v1473_v20, %v1471_v15 }
 0x244   :  { %v1500_v20 = vld [vmem:[#allocation5 + $0x4e8] sm:$0xff] }
 0x246   :  { %6130 = vmatpush1.bf16.msra.mxu0 %v6129_v17 }
 0x247   :  { %6132 = vmatprep.subr.bf16.mxu0 %v6131_v27  ;;  %v6159_v27 = vpack.c.bf16 %v1478_v32, %v1476_v31  ;;  %v1502_v31 = vld [vmem:[#allocation5 + $0x4f8] sm:$0xff] }
 0x248   :  { %v6183_v32 = vpack.c.bf16 %v1502_v31, %v1500_v20  ;;  %v1215_v20 = vld [vmem:[#allocation2 + $0x2b8] sm:$0xff] }
 0x24a   :  { %6134 = vmatpush1.bf16.msra.mxu0 %v6133_v39  ;;  %v1482_v39 = vld [vmem:[#allocation5 + $0x458] sm:$0xff] }
 0x24b   :  { %6136 = vmatprep.subr.bf16.mxu0 %v6135_v22  ;;  %v6163_v36 = vpack.c.bf16 %v1482_v39, %v1480_v38  ;;  %v1503_v39 = vld [vmem:[#allocation5 + $0x500] sm:$0xff] }
 0x24c   :  { %v8428_v41 = vpop.f32.mrb[12].mxu0 }
 0x24d   :  { %v8430_v44 = vpop.f32.mrb[13].mxu0 }
 0x24e   :  { %6138 = vmatpush1.bf16.msra.mxu0 %v6137_v37  ;;  %v1479_v37 = vld [vmem:[#allocation5 + $0x440] sm:$0xff] }
 0x24f   :  { %6140 = vmatprep.subr.bf16.mxu0 %v6139_v13  ;;  %v1481_v13 = vld [vmem:[#allocation5 + $0x450] sm:$0xff] }
 0x250   :  { %v8432_v54 = vpop.f32.mrb[14].mxu0 }
 0x251   :  { %v8434_v55 = vpop.f32.mrb[15].mxu0 }
 0x252   :  { %6142 = vmatpush1.bf16.msra.mxu0 %v6141_v47  ;;  %v1483_v47 = vld [vmem:[#allocation5 + $0x460] sm:$0xff] }
 0x253   :  { %6144 = vmatprep.subr.bf16.mxu0 %v6143_v48  ;;  %v1485_v48 = vld [vmem:[#allocation5 + $0x470] sm:$0xff] }
 0x254   :  { %v8436_v25 = vpop.f32.mrb[16].mxu0 }
 0x255   :  { %v8438_v1 = vpop.f32.mrb[17].mxu0 }
 0x256   :  { %6146 = vmatpush1.bf16.msra.mxu0 %v6145_v56  ;;  %v8448_v17 = vpop.f32.mrb[12].mxu1  ;;  %v1487_v56 = vld [vmem:[#allocation5 + $0x480] sm:$0xff] }
 0x257   :  { %6148 = vmatprep.subr.bf16.mxu0 %v6147_v57  ;;  %v8450_v7 = vpop.f32.mrb[13].mxu1  ;;  %v1489_v57 = vld [vmem:[#allocation5 + $0x490] sm:$0xff] }
 0x258   :  { %v8440_v6 = vpop.f32.mrb[18].mxu0 }
 0x259   :  { %v8442_v11 = vpop.f32.mrb[19].mxu0 }
 0x25a   :  { %6150 = vmatpush1.bf16.msra.mxu0 %v6149_v63  ;;  %v8458_v35 = vpop.f32.mrb[14].mxu1  ;;  %v1491_v63 = vld [vmem:[#allocation5 + $0x4a0] sm:$0xff] }
 0x25b   :  { %6152 = vmatprep.subr.bf16.mxu0 %v6151_v0  ;;  %v8460_v45 = vpop.f32.mrb[15].mxu1  ;;  %v1493_v0 = vld [vmem:[#allocation5 + $0x4b0] sm:$0xff] }
 0x25c   :  { %v8444_v23 = vpop.f32.mrb[20].mxu0 }
 0x25d   :  { %v8446_v24 = vpop.f32.mrb[21].mxu0 }
 0x25e   :  { %6154 = vmatpush1.bf16.msra.mxu0 %v6153_v9  ;;  %v8464_v43 = vpop.f32.mrb[16].mxu1  ;;  %v1495_v9 = vld [vmem:[#allocation5 + $0x4c0] sm:$0xff] }
 0x25f   :  { %6156 = vmatprep.subr.bf16.mxu0 %v6155_v12  ;;  %v8466_v51 = vpop.f32.mrb[17].mxu1  ;;  %v1497_v12 = vld [vmem:[#allocation5 + $0x4d0] sm:$0xff] }
 0x260   :  { %v8452_v22 = vpop.f32.mrb[22].mxu0 }
 0x261   :  { %2033 = vmatmul.mubr.f32.vlgmr.msra.gmra.mrb[48].mxu0 %v8382_v49  ;;  %v8455_v33 = vpop.f32.mrb[23].mxu0  ;;  %v6165_v49 = vpack.c.bf16 %v1481_v13, %v1479_v37  ;;  %v1510_v37 = vld [vmem:[#allocation5 + $0x538] sm:$0xff] }
 0x262   :  { %6158 = vmatpush1.bf16.msra.mxu0 %v6157_v16  ;;  %2038 = vmatprep.mubr.f32.mxu0 %v8393_v26  ;;  %v6167_v26 = vpack.c.bf16 %v1486_v42, %v1484_v46  ;;  %v8470_v3 = vpop.f32.mrb[18].mxu1  ;;  %v1501_v16 = vld [vmem:[#allocation5 + $0x4f0] sm:$0xff] }
 0x263   :  { %6160 = vmatprep.subr.bf16.mxu0 %v6159_v27  ;;  %v8472_v59 = vpop.f32.mrb[19].mxu1  ;;  %v1504_v27 = vld [vmem:[#allocation5 + $0x508] sm:$0xff]  ;;  %v1509_v46 = vld [vmem:[#allocation5 + $0x530] sm:$0xff] }
 0x264   :  { %v6187_v38 = vpack.c.bf16 %v1506_v28, %v1504_v27  ;;  %v1526_v27 = vld [vmem:[#allocation5 + $0x5b8] sm:$0xff] }
 0x265   :  { %2039 = vmatmul.mubr.f32.gmra.mrb[50].mxu0 %v8389_v62  ;;  %v6169_v62 = vpack.c.bf16 %v1485_v48, %v1483_v47 }
 0x266   :  { %6162 = vmatpush1.bf16.msra.mxu0 %v6161_v34  ;;  %2044 = vmatprep.mubr.f32.mxu0 %v8399_v21  ;;  %v6171_v21 = vpack.c.bf16 %v1490_v53, %v1488_v52  ;;  %v8476_v61 = vpop.f32.mrb[20].mxu1  ;;  %v1505_v34 = vld [vmem:[#allocation5 + $0x510] sm:$0xff]  ;;  %v1511_v53 = vld [vmem:[#allocation5 + $0x540] sm:$0xff] }
 0x267   :  { %6164 = vmatprep.subr.bf16.mxu0 %v6163_v36  ;;  %v8478_v2 = vpop.f32.mrb[21].mxu1  ;;  %v1508_v36 = vld [vmem:[#allocation5 + $0x528] sm:$0xff] }
 0x268   :  { %v6191_v13 = vpack.c.bf16 %v1510_v37, %v1508_v36  ;;  %v1523_v36 = vld [vmem:[#allocation5 + $0x5a0] sm:$0xff]  ;;  %v1525_v37 = vld [vmem:[#allocation5 + $0x5b0] sm:$0xff] }
 0x269   :  { %2045 = vmatmul.mubr.f32.gmra.mrb[52].mxu0 %v8396_v18  ;;  %v6173_v18 = vpack.c.bf16 %v1489_v57, %v1487_v56  ;;  %v1518_v56 = vld [vmem:[#allocation5 + $0x578] sm:$0xff] }
 0x26a   :  { %6166 = vmatpush1.bf16.msra.mxu0 %v6165_v49  ;;  %2050 = vmatprep.mubr.f32.mxu0 %v8405_v30  ;;  %v6175_v30 = vpack.c.bf16 %v1494_v60, %v1492_v58  ;;  %v8482_v10 = vpop.f32.mrb[22].mxu1  ;;  %v1512_v49 = vld [vmem:[#allocation5 + $0x548] sm:$0xff] }
 0x26b   :  { %6168 = vmatprep.subr.bf16.mxu0 %v6167_v26  ;;  %v8484_v15 = vpop.f32.mrb[23].mxu1  ;;  %v1514_v26 = vld [vmem:[#allocation5 + $0x558] sm:$0xff] }
 0x26c   :  { %v6195_v52 = vpack.c.bf16 %v1514_v26, %v1512_v49  ;;  %v6209_v26 = vpack.c.bf16 %v1525_v37, %v1523_v36 }
 0x26d   :  { %2051 = vmatmul.mubr.f32.gmra.mrb[54].mxu0 %v8402_v8  ;;  %v6177_v8 = vpack.c.bf16 %v1493_v0, %v1491_v63  ;;  %v1515_v63 = vld [vmem:[#allocation5 + $0x560] sm:$0xff]  ;;  %v1517_v0 = vld [vmem:[#allocation5 + $0x570] sm:$0xff] }
 0x26e   :  { %6170 = vmatpush1.bf16.msra.mxu0 %v6169_v62  ;;  %2056 = vmatprep.mubr.f32.mxu0 %v8411_v40  ;;  %v6179_v40 = vpack.c.bf16 %v1498_v5, %v1496_v4  ;;  %v1513_v62 = vld [vmem:[#allocation5 + $0x550] sm:$0xff]  ;;  %v1212_v4 = vld [vmem:[#allocation2 + $0x2a0] sm:$0xff]  ;;  %v1520_v5 = vld [vmem:[#allocation5 + $0x588] sm:$0xff] }
 0x26f   :  { %6172 = vmatprep.subr.bf16.mxu0 %v6171_v21  ;;  %v1516_v21 = vld [vmem:[#allocation5 + $0x568] sm:$0xff]  ;;  %v6197_v60 = vpack.c.bf16 %v1513_v62, %v1511_v53  ;;  %v1527_v53 = vld [vmem:[#allocation5 + $0x5c0] sm:$0xff]  ;;  %v1529_v62 = vld [vmem:[#allocation5 + $0x5d0] sm:$0xff] }
 0x271   :  { %2057 = vmatmul.mubr.f32.gmra.mrb[56].mxu0 %v8408_v14  ;;  %v6181_v14 = vpack.c.bf16 %v1497_v12, %v1495_v9  ;;  %v6201_v12 = vpack.c.bf16 %v1517_v0, %v1515_v63  ;;  %v6213_v63 = vpack.c.bf16 %v1529_v62, %v1527_v53  ;;  %v1221_v0 = vld [vmem:[#allocation2 + $0x2e8] sm:$0xff]  ;;  %v1543_v53 = vld [vmem:[#allocation5 + $0x640] sm:$0xff]  ;;  %v1545_v62 = vld [vmem:[#allocation5 + $0x650] sm:$0xff] }
 0x272   :  { %6174 = vmatpush1.bf16.msra.mxu0 %v6173_v18  ;;  %2062 = vmatprep.mubr.f32.mxu0 %v8417_v50  ;;  %v1499_v50 = vld [vmem:[#allocation5 + $0x4e0] sm:$0xff]  ;;  %v1213_v18 = vld [vmem:[#allocation2 + $0x2a8] sm:$0xff] }
 0x273   :  { %6176 = vmatprep.subr.bf16.mxu0 %v6175_v30  ;;  %v6185_v29 = vpack.c.bf16 %v1501_v16, %v1499_v50  ;;  %v6199_v30 = vpack.c.bf16 %v1518_v56, %v1516_v21  ;;  %5276 = vmatprep.mubr.msk.f32.mxu1 %vm299_vm0, %v1213_v18  ;;  %v1214_v50 = vld [vmem:[#allocation2 + $0x2b0] sm:$0xff]  ;;  %v1524_v16 = vld [vmem:[#allocation5 + $0x5a8] sm:$0xff] }
 0x274   :  { %1307 = vmatmul.mubr.f32.vlgmr.msra.gmra.mrb[36].mxu1 %v1212_v4  ;;  %v1218_v21 = vld [vmem:[#allocation2 + $0x2d0] sm:$0xff]  ;;  %v1532_v56 = vld [vmem:[#allocation5 + $0x5e8] sm:$0xff] }
 0x275   :  { %2063 = vmatmul.mubr.f32.gmra.mrb[58].mxu0 %v8414_v19  ;;  %v6189_v19 = vpack.c.bf16 %v1505_v34, %v1503_v39  ;;  %5277 = vmatprep.mubr.msk.f32.mxu1 %vm299_vm0, %v1215_v20  ;;  %v1217_v39 = vld [vmem:[#allocation2 + $0x2c8] sm:$0xff]  ;;  %v6207_v34 = vpack.c.bf16 %v1526_v27, %v1524_v16  ;;  %v1535_v16 = vld [vmem:[#allocation5 + $0x600] sm:$0xff]  ;;  %v1537_v27 = vld [vmem:[#allocation5 + $0x610] sm:$0xff] }
 0x276   :  { %6178 = vmatpush1.bf16.msra.mxu0 %v6177_v8  ;;  %2133 = vmatprep.mubr.f32.mxu0 %v8430_v44  ;;  %v1507_v44 = vld [vmem:[#allocation5 + $0x520] sm:$0xff]  ;;  %v1522_v8 = vld [vmem:[#allocation5 + $0x598] sm:$0xff]  ;;  %v1536_v20 = vld [vmem:[#allocation5 + $0x608] sm:$0xff]  ;;  %v6221_v36 = vpack.c.bf16 %v1537_v27, %v1535_v16 }
 0x277   :  { %6180 = vmatprep.subr.bf16.mxu0 %v6179_v40  ;;  %v6193_v48 = vpack.c.bf16 %v1509_v46, %v1507_v44  ;;  %v6203_v31 = vpack.c.bf16 %v1522_v8, %v1520_v5  ;;  %v1530_v44 = vld [vmem:[#allocation5 + $0x5d8] sm:$0xff]  ;;  %v1531_v5 = vld [vmem:[#allocation5 + $0x5e0] sm:$0xff]  ;;  %v1533_v8 = vld [vmem:[#allocation5 + $0x5f0] sm:$0xff] }
 0x278   :  { %1313 = vmatmul.mubr.f32.gmra.mrb[38].mxu1 %v1214_v50 }
 0x279   :  { %5278 = vmatprep.mubr.msk.f32.mxu1 %vm299_vm0, %v1217_v39  ;;  %v1540_v39 = vld [vmem:[#allocation5 + $0x628] sm:$0xff] }
 0x27a   :  { %6182 = vmatpush1.bf16.msra.mxu0 %v6181_v14  ;;  %v1519_v14 = vld [vmem:[#allocation5 + $0x580] sm:$0xff] }
 0x27b   :  { %6184 = vmatprep.subr.bf16.mxu0 %v6183_v32  ;;  %v1521_v32 = vld [vmem:[#allocation5 + $0x590] sm:$0xff] }
 0x27e   :  { %6186 = vmatpush1.bf16.msra.mxu0 %v6185_v29 }
 0x27f   :  { %6188 = vmatprep.subr.bf16.mxu0 %v6187_v38  ;;  %v6205_v38 = vpack.c.bf16 %v1521_v32, %v1519_v14  ;;  %v6217_v14 = vpack.c.bf16 %v1533_v8, %v1531_v5  ;;  %v1223_v32 = vld [vmem:[#allocation2 + $0x2f8] sm:$0xff] }
 0x280   :  { %v8488_v42 = vpop.f32.mrb[24].mxu0 }
 0x281   :  { %v8490_v47 = vpop.f32.mrb[25].mxu0 }
 0x282   :  { %6190 = vmatpush1.bf16.msra.mxu0 %v6189_v19  ;;  %v1216_v19 = vld [vmem:[#allocation2 + $0x2c0] sm:$0xff] }
 0x283   :  { %6192 = vmatprep.subr.bf16.mxu0 %v6191_v13  ;;  %v1528_v13 = vld [vmem:[#allocation5 + $0x5c8] sm:$0xff]  ;;  %1319 = vmatmul.mubr.f32.gmra.mrb[40].mxu1 %v1216_v19  ;;  %v1539_v19 = vld [vmem:[#allocation5 + $0x620] sm:$0xff] }
 0x284   :  { %v8492_v57 = vpop.f32.mrb[26].mxu0 }
 0x285   :  { %v8494_v58 = vpop.f32.mrb[27].mxu0 }
 0x286   :  { %6194 = vmatpush1.bf16.msra.mxu0 %v6193_v48  ;;  %v1219_v48 = vld [vmem:[#allocation2 + $0x2d8] sm:$0xff] }
 0x287   :  { %6196 = vmatprep.subr.bf16.mxu0 %v6195_v52  ;;  %v6211_v52 = vpack.c.bf16 %v1530_v44, %v1528_v13  ;;  %5279 = vmatprep.mubr.msk.f32.mxu1 %vm299_vm0, %v1219_v48  ;;  %v1541_v13 = vld [vmem:[#allocation5 + $0x630] sm:$0xff]  ;;  %v1544_v44 = vld [vmem:[#allocation5 + $0x648] sm:$0xff] }
 0x288   :  { %v8497_v40 = vpop.f32.mrb[28].mxu0  ;;  %1325 = vmatmul.mubr.f32.gmra.mrb[42].mxu1 %v1218_v21  ;;  %v6225_v48 = vpack.c.bf16 %v1541_v13, %v1539_v19  ;;  %v1548_v21 = vld [vmem:[#allocation5 + $0x668] sm:$0xff]  ;;  %v1565_v19 = vld [vmem:[#allocation5 + $0x6f0] sm:$0xff] }
 0x289   :  { %v8499_v9 = vpop.f32.mrb[29].mxu0  ;;  %5280 = vmatprep.mubr.msk.f32.mxu1 %vm299_vm0, %v1221_v0  ;;  %v1547_v0 = vld [vmem:[#allocation5 + $0x660] sm:$0xff]  ;;  %v1568_v13 = vld [vmem:[#allocation5 + $0x708] sm:$0xff] }
 0x28a   :  { %6198 = vmatpush1.bf16.msra.mxu0 %v6197_v60  ;;  %v1534_v60 = vld [vmem:[#allocation5 + $0x5f8] sm:$0xff] }
 0x28b   :  { %6200 = vmatprep.subr.bf16.mxu0 %v6199_v30  ;;  %v6215_v4 = vpack.c.bf16 %v1534_v60, %v1532_v56  ;;  %v1550_v56 = vld [vmem:[#allocation5 + $0x678] sm:$0xff]  ;;  %v6229_v60 = vpack.c.bf16 %v1545_v62, %v1543_v53  ;;  %v1567_v62 = vld [vmem:[#allocation5 + $0x700] sm:$0xff] }
 0x28c   :  { %v8502_v28 = vpop.f32.mrb[30].mxu0 }
 0x28d   :  { %v8504_v29 = vpop.f32.mrb[31].mxu0 }
 0x28e   :  { %6202 = vmatpush1.bf16.msra.mxu0 %v6201_v12  ;;  %v1220_v12 = vld [vmem:[#allocation2 + $0x2e0] sm:$0xff] }
 0x28f   :  { %6204 = vmatprep.subr.bf16.mxu0 %v6203_v31  ;;  %v1538_v31 = vld [vmem:[#allocation5 + $0x618] sm:$0xff]  ;;  %1331 = vmatmul.mubr.f32.gmra.mrb[44].mxu1 %v1220_v12  ;;  %v1551_v12 = vld [vmem:[#allocation5 + $0x680] sm:$0xff] }
 0x290   :  { %v8507_v46 = vpop.f32.mrb[32].mxu0  ;;  %v6219_v50 = vpack.c.bf16 %v1538_v31, %v1536_v20  ;;  %5281 = vmatprep.mubr.msk.f32.mxu1 %vm299_vm0, %v1223_v32  ;;  %v1556_v20 = vld [vmem:[#allocation5 + $0x6a8] sm:$0xff]  ;;  %v1555_v32 = vld [vmem:[#allocation5 + $0x6a0] sm:$0xff] }
 0x291   :  { %v8509_v49 = vpop.f32.mrb[33].mxu0 }
 0x292   :  { %6206 = vmatpush1.bf16.msra.mxu0 %v6205_v38  ;;  %v1222_v38 = vld [vmem:[#allocation2 + $0x2f0] sm:$0xff] }
 0x293   :  { %6208 = vmatprep.subr.bf16.mxu0 %v6207_v34  ;;  %v1542_v34 = vld [vmem:[#allocation5 + $0x638] sm:$0xff]  ;;  %1337 = vmatmul.mubr.f32.gmra.mrb[46].mxu1 %v1222_v38  ;;  %v1559_v38 = vld [vmem:[#allocation5 + $0x6c0] sm:$0xff] }
 0x294   :  { %v8512_v18 = vpop.f32.mrb[34].mxu0  ;;  %v6223_v37 = vpack.c.bf16 %v1542_v34, %v1540_v39  ;;  %v1566_v34 = vld [vmem:[#allocation5 + $0x6f8] sm:$0xff] }
 0x295   :  { %v8514_v30 = vpop.f32.mrb[35].mxu0 }
 0x296   :  { %6210 = vmatpush1.bf16.msra.mxu0 %v6209_v26  ;;  %v1546_v26 = vld [vmem:[#allocation5 + $0x658] sm:$0xff] }
 0x297   :  { %6212 = vmatprep.subr.bf16.mxu0 %v6211_v52  ;;  %v6227_v52 = vpack.c.bf16 %v1546_v26, %v1544_v44  ;;  %v1570_v44 = vld [vmem:[#allocation5 + $0x718] sm:$0xff] }
 0x298   :  { %v6251_v53 = vpack.c.bf16 %v1570_v44, %v1568_v13  ;;  %v1585_v13 = vld [vmem:[#allocation5 + $0x790] sm:$0xff]  ;;  %v1588_v44 = vld [vmem:[#allocation5 + $0x7a8] sm:$0xff] }
 0x29a   :  { %6214 = vmatpush1.bf16.msra.mxu0 %v6213_v63  ;;  %v6231_v63 = vpack.c.bf16 %v1550_v56, %v1548_v21  ;;  %v1572_v21 = vld [vmem:[#allocation5 + $0x728] sm:$0xff]  ;;  %v1574_v56 = vld [vmem:[#allocation5 + $0x738] sm:$0xff] }
 0x29b   :  { %6216 = vmatprep.subr.bf16.mxu0 %v6215_v4  ;;  %v1552_v4 = vld [vmem:[#allocation5 + $0x688] sm:$0xff] }
 0x29e   :  { %6218 = vmatpush1.bf16.msra.mxu0 %v6217_v14 }
 0x29f   :  { %6220 = vmatprep.subr.bf16.mxu0 %v6219_v50  ;;  %v1560_v50 = vld [vmem:[#allocation5 + $0x6c8] sm:$0xff] }
 0x2a1   :  { %2134 = vmatmul.mubr.f32.vlgmr.msra.gmra.mrb[48].mxu0 %v8428_v41  ;;  %v1549_v41 = vld [vmem:[#allocation5 + $0x670] sm:$0xff] }
 0x2a2   :  { %2139 = vmatprep.mubr.f32.mxu0 %v8434_v55  ;;  %6222 = vmatpush1.bf16.msra.mxu0 %v6221_v36  ;;  %v1554_v55 = vld [vmem:[#allocation5 + $0x698] sm:$0xff]  ;;  %v6233_v5 = vpack.c.bf16 %v1549_v41, %v1547_v0  ;;  %v6255_v0 = vpack.c.bf16 %v1574_v56, %v1572_v21  ;;  %v1571_v41 = vld [vmem:[#allocation5 + $0x720] sm:$0xff]  ;;  %v1589_v21 = vld [vmem:[#allocation5 + $0x7b0] sm:$0xff] }
 0x2a3   :  { %6224 = vmatprep.subr.bf16.mxu0 %v6223_v37  ;;  %v6235_v8 = vpack.c.bf16 %v1554_v55, %v1552_v4  ;;  %v1573_v4 = vld [vmem:[#allocation5 + $0x730] sm:$0xff]  ;;  %v1576_v55 = vld [vmem:[#allocation5 + $0x748] sm:$0xff] }
 0x2a4   :  { %v1592_v56 = vld [vmem:[#allocation5 + $0x7c8] sm:$0xff] }
 0x2a5   :  { %2140 = vmatmul.mubr.f32.gmra.mrb[50].mxu0 %v8432_v54  ;;  %v1553_v54 = vld [vmem:[#allocation5 + $0x690] sm:$0xff] }
 0x2a6   :  { %2145 = vmatprep.mubr.f32.mxu0 %v8438_v1  ;;  %6226 = vmatpush1.bf16.msra.mxu0 %v6225_v48  ;;  %v1558_v1 = vld [vmem:[#allocation5 + $0x6b8] sm:$0xff]  ;;  %v6237_v31 = vpack.c.bf16 %v1553_v54, %v1551_v12  ;;  %v6257_v54 = vpack.c.bf16 %v1573_v4, %v1571_v41  ;;  %v1591_v4 = vld [vmem:[#allocation5 + $0x7c0] sm:$0xff] }
 0x2a7   :  { %6228 = vmatprep.subr.bf16.mxu0 %v6227_v52  ;;  %v6239_v14 = vpack.c.bf16 %v1558_v1, %v1556_v20  ;;  %v1575_v1 = vld [vmem:[#allocation5 + $0x740] sm:$0xff] }
 0x2a9   :  { %2146 = vmatmul.mubr.f32.gmra.mrb[52].mxu0 %v8436_v25  ;;  %v1557_v25 = vld [vmem:[#allocation5 + $0x6b0] sm:$0xff] }
 0x2aa   :  { %2151 = vmatprep.mubr.f32.mxu0 %v8442_v11  ;;  %6230 = vmatpush1.bf16.msra.mxu0 %v6229_v60  ;;  %v1562_v11 = vld [vmem:[#allocation5 + $0x6d8] sm:$0xff]  ;;  %v6241_v16 = vpack.c.bf16 %v1557_v25, %v1555_v32 }
 0x2ab   :  { %6232 = vmatprep.subr.bf16.mxu0 %v6231_v63  ;;  %v6243_v27 = vpack.c.bf16 %v1562_v11, %v1560_v50  ;;  %v1582_v32 = vld [vmem:[#allocation5 + $0x778] sm:$0xff] }
 0x2ad   :  { %2152 = vmatmul.mubr.f32.gmra.mrb[54].mxu0 %v8440_v6  ;;  %v1561_v6 = vld [vmem:[#allocation5 + $0x6d0] sm:$0xff] }
 0x2ae   :  { %2157 = vmatprep.mubr.f32.mxu0 %v8446_v24  ;;  %6234 = vmatpush1.bf16.msra.mxu0 %v6233_v5  ;;  %v1564_v24 = vld [vmem:[#allocation5 + $0x6e8] sm:$0xff]  ;;  %v6245_v37 = vpack.c.bf16 %v1561_v6, %v1559_v38  ;;  %v1578_v5 = vld [vmem:[#allocation5 + $0x758] sm:$0xff]  ;;  %v1581_v38 = vld [vmem:[#allocation5 + $0x770] sm:$0xff] }
 0x2af   :  { %6236 = vmatprep.subr.bf16.mxu0 %v6235_v8  ;;  %v6259_v20 = vpack.c.bf16 %v1578_v5, %v1576_v55  ;;  %v1584_v6 = vld [vmem:[#allocation5 + $0x788] sm:$0xff]  ;;  %v1593_v55 = vld [vmem:[#allocation5 + $0x7d0] sm:$0xff] }
 0x2b0   :  { %v1596_v5 = vld [vmem:[#allocation5 + $0x7e8] sm:$0xff] }
 0x2b1   :  { %2158 = vmatmul.mubr.f32.gmra.mrb[56].mxu0 %v8444_v23  ;;  %v6247_v23 = vpack.c.bf16 %v1566_v34, %v1564_v24  ;;  %v1586_v24 = vld [vmem:[#allocation5 + $0x798] sm:$0xff] }
 0x2b2   :  { %2163 = vmatprep.mubr.f32.mxu0 %v8455_v33  ;;  %6238 = vmatpush1.bf16.msra.mxu0 %v6237_v31  ;;  %v1563_v33 = vld [vmem:[#allocation5 + $0x6e0] sm:$0xff]  ;;  %v1577_v31 = vld [vmem:[#allocation5 + $0x750] sm:$0xff] }
 0x2b3   :  { %6240 = vmatprep.subr.bf16.mxu0 %v6239_v14  ;;  %v6249_v52 = vpack.c.bf16 %v1565_v19, %v1563_v33  ;;  %v1580_v14 = vld [vmem:[#allocation5 + $0x768] sm:$0xff]  ;;  %v6261_v11 = vpack.c.bf16 %v1577_v31, %v1575_v1  ;;  %v6267_v33 = vpack.c.bf16 %v1586_v24, %v1584_v6  ;;  %v1583_v19 = vld [vmem:[#allocation5 + $0x780] sm:$0xff]  ;;  %v1601_v6 = vld [vmem:[#allocation5 + $0x810] sm:$0xff] }
 0x2b4   :  { %v8528_v39 = vpop.f32.mrb[36].mxu0  ;;  %v1595_v31 = vld [vmem:[#allocation5 + $0x7e0] sm:$0xff]  ;;  %v1604_v24 = vld [vmem:[#allocation5 + $0x828] sm:$0xff] }
 0x2b5   :  { %v8530_v36 = vpop.f32.mrb[37].mxu0  ;;  %2164 = vmatmul.mubr.f32.gmra.mrb[58].mxu0 %v8452_v22  ;;  %v1569_v22 = vld [vmem:[#allocation5 + $0x710] sm:$0xff] }
 0x2b6   :  { %6242 = vmatpush1.bf16.msra.mxu0 %v6241_v16  ;;  %2234 = vmatprep.mubr.f32.mxu0 %v8450_v7  ;;  %v6253_v63 = vpack.c.bf16 %v1569_v22, %v1567_v62  ;;  %v6263_v16 = vpack.c.bf16 %v1582_v32, %v1580_v14  ;;  %v1587_v22 = vld [vmem:[#allocation5 + $0x7a0] sm:$0xff]  ;;  %v1597_v14 = vld [vmem:[#allocation5 + $0x7f0] sm:$0xff]  ;;  %v1600_v32 = vld [vmem:[#allocation5 + $0x808] sm:$0xff] }
 0x2b7   :  { %6244 = vmatprep.subr.bf16.mxu0 %v6243_v27  ;;  %v1579_v27 = vld [vmem:[#allocation5 + $0x760] sm:$0xff] }
 0x2b8   :  { %v8534_v26 = vpop.f32.mrb[38].mxu0 }
 0x2b9   :  { %v8536_v48 = vpop.f32.mrb[39].mxu0 }
 0x2ba   :  { %6246 = vmatpush1.bf16.msra.mxu0 %v6245_v37 }
 0x2bb   :  { %6248 = vmatprep.subr.bf16.mxu0 %v6247_v23  ;;  %v6265_v23 = vpack.c.bf16 %v1581_v38, %v1579_v27  ;;  %v1599_v38 = vld [vmem:[#allocation5 + $0x800] sm:$0xff] }
 0x2bc   :  { %v8538_v60 = vpop.f32.mrb[40].mxu0 }
 0x2bd   :  { %v8540_v7 = vpop.f32.mrb[41].mxu0 }
 0x2be   :  { %6250 = vmatpush1.bf16.msra.mxu0 %v6249_v52  ;;  %v1590_v52 = vld [vmem:[#allocation5 + $0x7b8] sm:$0xff] }
 0x2bf   :  { %6252 = vmatprep.subr.bf16.mxu0 %v6251_v53  ;;  %v6269_v53 = vpack.c.bf16 %v1585_v13, %v1583_v19  ;;  %v6271_v62 = vpack.c.bf16 %v1590_v52, %v1588_v44  ;;  %v1603_v44 = vld [vmem:[#allocation5 + $0x820] sm:$0xff]  ;;  %v1605_v52 = vld [vmem:[#allocation5 + $0x830] sm:$0xff] }
 0x2c0   :  { %v8542_v8 = vpop.f32.mrb[42].mxu0 }
 0x2c1   :  { %v8544_v12 = vpop.f32.mrb[43].mxu0 }
 0x2c2   :  { %6254 = vmatpush1.bf16.msra.mxu0 %v6253_v63  ;;  %v1594_v63 = vld [vmem:[#allocation5 + $0x7d8] sm:$0xff] }
 0x2c3   :  { %6256 = vmatprep.subr.bf16.mxu0 %v6255_v0  ;;  %v6273_v0 = vpack.c.bf16 %v1589_v21, %v1587_v22  ;;  %v6275_v41 = vpack.c.bf16 %v1594_v63, %v1592_v56  ;;  %v1610_v22 = vld [vmem:[#allocation5 + $0x858] sm:$0xff]  ;;  %v6289_v21 = vpack.c.bf16 %v1605_v52, %v1603_v44  ;;  %v1624_v52 = vld [vmem:[#allocation5 + $0x8c8] sm:$0xff] }
 0x2c4   :  { %v8546_v25 = vpop.f32.mrb[44].mxu0 }
 0x2c5   :  { %v8548_v50 = vpop.f32.mrb[45].mxu0 }
 0x2c6   :  { %6258 = vmatpush1.bf16.msra.mxu0 %v6257_v54  ;;  %v1598_v54 = vld [vmem:[#allocation5 + $0x7f8] sm:$0xff] }
 0x2c7   :  { %6260 = vmatprep.subr.bf16.mxu0 %v6259_v20  ;;  %v6277_v20 = vpack.c.bf16 %v1593_v55, %v1591_v4  ;;  %v6279_v1 = vpack.c.bf16 %v1598_v54, %v1596_v5  ;;  %v1612_v55 = vld [vmem:[#allocation5 + $0x868] sm:$0xff]  ;;  %v1614_v5 = vld [vmem:[#allocation5 + $0x878] sm:$0xff] }
 0x2c8   :  { %v8550_v34 = vpop.f32.mrb[46].mxu0 }
 0x2c9   :  { %v8552_v37 = vpop.f32.mrb[47].mxu0 }
 0x2ca   :  { %6262 = vmatpush1.bf16.msra.mxu0 %v6261_v11  ;;  %v1602_v11 = vld [vmem:[#allocation5 + $0x818] sm:$0xff]  ;;  %v8554_v19 = vpop.f32.mrb[24].mxu1 }
 0x2cb   :  { %6264 = vmatprep.subr.bf16.mxu0 %v6263_v16  ;;  %v6281_v16 = vpack.c.bf16 %v1597_v14, %v1595_v31  ;;  %v6283_v27 = vpack.c.bf16 %v1602_v11, %v1600_v32  ;;  %v1616_v14 = vld [vmem:[#allocation5 + $0x888] sm:$0xff]  ;;  %v1618_v32 = vld [vmem:[#allocation5 + $0x898] sm:$0xff] }
 0x2ce   :  { %6266 = vmatpush1.bf16.msra.mxu0 %v6265_v23  ;;  %v1606_v23 = vld [vmem:[#allocation5 + $0x838] sm:$0xff] }
 0x2cf   :  { %6268 = vmatprep.subr.bf16.mxu0 %v6267_v33  ;;  %v6285_v33 = vpack.c.bf16 %v1601_v6, %v1599_v38  ;;  %v6287_v13 = vpack.c.bf16 %v1606_v23, %v1604_v24  ;;  %v1620_v6 = vld [vmem:[#allocation5 + $0x8a8] sm:$0xff]  ;;  %v1622_v24 = vld [vmem:[#allocation5 + $0x8b8] sm:$0xff] }
 0x2d2   :  { %6270 = vmatpush1.bf16.msra.mxu0 %v6269_v53  ;;  %v8556_v53 = vpop.f32.mrb[25].mxu1 }
 0x2d3   :  { %6272 = vmatprep.subr.bf16.mxu0 %v6271_v62  ;;  %v1608_v62 = vld [vmem:[#allocation5 + $0x848] sm:$0xff]  ;;  %v8560_v56 = vpop.f32.mrb[26].mxu1 }
 0x2d4   :  { %v6291_v63 = vpack.c.bf16 %v1610_v22, %v1608_v62  ;;  %v8562_v4 = vpop.f32.mrb[27].mxu1  ;;  %v1626_v62 = vld [vmem:[#allocation5 + $0x8d8] sm:$0xff] }
 0x2d5   :  { %v8566_v54 = vpop.f32.mrb[28].mxu1 }
 0x2d6   :  { %6274 = vmatpush1.bf16.msra.mxu0 %v6273_v0  ;;  %v1607_v0 = vld [vmem:[#allocation5 + $0x840] sm:$0xff]  ;;  %v8568_v31 = vpop.f32.mrb[29].mxu1 }
 0x2d7   :  { %6276 = vmatprep.subr.bf16.mxu0 %v6275_v41  ;;  %v1609_v41 = vld [vmem:[#allocation5 + $0x850] sm:$0xff]  ;;  %v8572_v11 = vpop.f32.mrb[30].mxu1 }
 0x2d8   :  { %v8574_v38 = vpop.f32.mrb[31].mxu1 }
 0x2da   :  { %6278 = vmatpush1.bf16.msra.mxu0 %v6277_v20  ;;  %v1611_v20 = vld [vmem:[#allocation5 + $0x860] sm:$0xff] }
 0x2db   :  { %6280 = vmatprep.subr.bf16.mxu0 %v6279_v1  ;;  %v1613_v1 = vld [vmem:[#allocation5 + $0x870] sm:$0xff]  ;;  %v8578_v23 = vpop.f32.mrb[32].mxu1 }
 0x2dc   :  { %v8580_v44 = vpop.f32.mrb[33].mxu1 }
 0x2de   :  { %6282 = vmatpush1.bf16.msra.mxu0 %v6281_v16  ;;  %v1615_v16 = vld [vmem:[#allocation5 + $0x880] sm:$0xff] }
 0x2df   :  { %6284 = vmatprep.subr.bf16.mxu0 %v6283_v27  ;;  %v1617_v27 = vld [vmem:[#allocation5 + $0x890] sm:$0xff] }
 0x2e1   :  { %2235 = vmatmul.mubr.f32.vlgmr.msra.gmra.mrb[48].mxu0 %v8448_v17  ;;  %v6293_v17 = vpack.c.bf16 %v1609_v41, %v1607_v0  ;;  %v1628_v41 = vld [vmem:[#allocation5 + $0x8e8] sm:$0xff] }
 0x2e2   :  { %6286 = vmatpush1.bf16.msra.mxu0 %v6285_v33  ;;  %2240 = vmatprep.mubr.f32.mxu0 %v8460_v45  ;;  %v6295_v45 = vpack.c.bf16 %v1614_v5, %v1612_v55  ;;  %v1619_v33 = vld [vmem:[#allocation5 + $0x8a0] sm:$0xff]  ;;  %v1630_v55 = vld [vmem:[#allocation5 + $0x8f8] sm:$0xff] }
 0x2e3   :  { %6288 = vmatprep.subr.bf16.mxu0 %v6287_v13  ;;  %v1621_v13 = vld [vmem:[#allocation5 + $0x8b0] sm:$0xff]  ;;  %v8584_v22 = vpop.f32.mrb[34].mxu1  ;;  %v6311_v5 = vpack.c.bf16 %v1630_v55, %v1628_v41  ;;  %v1648_v55 = vld [vmem:[#allocation5 + $0x988] sm:$0xff] }
 0x2e4   :  { %v8586_v0 = vpop.f32.mrb[35].mxu1  ;;  %v1645_v41 = vld [vmem:[#allocation5 + $0x970] sm:$0xff] }
 0x2e5   :  { %2241 = vmatmul.mubr.f32.gmra.mrb[50].mxu0 %v8458_v35  ;;  %v6297_v35 = vpack.c.bf16 %v1613_v1, %v1611_v20  ;;  %v1634_v20 = vld [vmem:[#allocation5 + $0x918] sm:$0xff] }
 0x2e6   :  { %6290 = vmatpush1.bf16.msra.mxu0 %v6289_v21  ;;  %2246 = vmatprep.mubr.f32.mxu0 %v8466_v51  ;;  %v6299_v51 = vpack.c.bf16 %v1618_v32, %v1616_v14  ;;  %v1623_v21 = vld [vmem:[#allocation5 + $0x8c0] sm:$0xff] }
 0x2e7   :  { %6292 = vmatprep.subr.bf16.mxu0 %v6291_v63  ;;  %v1625_v63 = vld [vmem:[#allocation5 + $0x8d0] sm:$0xff]  ;;  %v1631_v32 = vld [vmem:[#allocation5 + $0x900] sm:$0xff] }
 0x2e9   :  { %2247 = vmatmul.mubr.f32.gmra.mrb[52].mxu0 %v8464_v43  ;;  %v6301_v43 = vpack.c.bf16 %v1617_v27, %v1615_v16  ;;  %v1638_v16 = vld [vmem:[#allocation5 + $0x938] sm:$0xff] }
 0x2ea   :  { %6294 = vmatpush1.bf16.msra.mxu0 %v6293_v17  ;;  %2252 = vmatprep.mubr.f32.mxu0 %v8472_v59  ;;  %v6303_v59 = vpack.c.bf16 %v1622_v24, %v1620_v6  ;;  %v1629_v17 = vld [vmem:[#allocation5 + $0x8f0] sm:$0xff]  ;;  %v1640_v24 = vld [vmem:[#allocation5 + $0x948] sm:$0xff] }
 0x2eb   :  { %6296 = vmatprep.subr.bf16.mxu0 %v6295_v45  ;;  %v1632_v45 = vld [vmem:[#allocation5 + $0x908] sm:$0xff]  ;;  %v1637_v6 = vld [vmem:[#allocation5 + $0x930] sm:$0xff] }
 0x2ec   :  { %v6315_v14 = vpack.c.bf16 %v1634_v20, %v1632_v45  ;;  %v1649_v45 = vld [vmem:[#allocation5 + $0x990] sm:$0xff]  ;;  %v1652_v20 = vld [vmem:[#allocation5 + $0x9a8] sm:$0xff] }
 0x2ed   :  { %2253 = vmatmul.mubr.f32.gmra.mrb[54].mxu0 %v8470_v3  ;;  %v6305_v3 = vpack.c.bf16 %v1621_v13, %v1619_v33  ;;  %v1639_v13 = vld [vmem:[#allocation5 + $0x940] sm:$0xff] }
 0x2ee   :  { %6298 = vmatpush1.bf16.msra.mxu0 %v6297_v35  ;;  %2258 = vmatprep.mubr.f32.mxu0 %v8478_v2  ;;  %v6307_v2 = vpack.c.bf16 %v1626_v62, %v1624_v52  ;;  %v1633_v35 = vld [vmem:[#allocation5 + $0x910] sm:$0xff]  ;;  %v1644_v62 = vld [vmem:[#allocation5 + $0x968] sm:$0xff] }
 0x2ef   :  { %6300 = vmatprep.subr.bf16.mxu0 %v6299_v51  ;;  %v1636_v51 = vld [vmem:[#allocation5 + $0x928] sm:$0xff]  ;;  %v1641_v52 = vld [vmem:[#allocation5 + $0x950] sm:$0xff] }
 0x2f0   :  { %v6319_v27 = vpack.c.bf16 %v1638_v16, %v1636_v51  ;;  %v1653_v51 = vld [vmem:[#allocation5 + $0x9b0] sm:$0xff]  ;;  %v1656_v16 = vld [vmem:[#allocation5 + $0x9c8] sm:$0xff] }
 0x2f1   :  { %2259 = vmatmul.mubr.f32.gmra.mrb[56].mxu0 %v8476_v61  ;;  %v6309_v61 = vpack.c.bf16 %v1625_v63, %v1623_v21  ;;  %v1643_v63 = vld [vmem:[#allocation5 + $0x960] sm:$0xff] }
 0x2f2   :  { %6302 = vmatpush1.bf16.msra.mxu0 %v6301_v43  ;;  %2264 = vmatprep.mubr.f32.mxu0 %v8484_v15  ;;  %v1627_v15 = vld [vmem:[#allocation5 + $0x8e0] sm:$0xff]  ;;  %v1642_v43 = vld [vmem:[#allocation5 + $0x958] sm:$0xff] }
 0x2f3   :  { %6304 = vmatprep.subr.bf16.mxu0 %v6303_v59  ;;  %v6313_v1 = vpack.c.bf16 %v1629_v17, %v1627_v15  ;;  %v6323_v33 = vpack.c.bf16 %v1642_v43, %v1640_v24  ;;  %v1647_v17 = vld [vmem:[#allocation5 + $0x980] sm:$0xff]  ;;  %v1657_v24 = vld [vmem:[#allocation5 + $0x9d0] sm:$0xff]  ;;  %v1660_v43 = vld [vmem:[#allocation5 + $0x9e8] sm:$0xff] }
 0x2f5   :  { %2265 = vmatmul.mubr.f32.gmra.mrb[58].mxu0 %v8482_v10  ;;  %v6317_v10 = vpack.c.bf16 %v1633_v35, %v1631_v32  ;;  %v1651_v35 = vld [vmem:[#allocation5 + $0x9a0] sm:$0xff] }
 0x2f6   :  { %6306 = vmatpush1.bf16.msra.mxu0 %v6305_v3  ;;  %2335 = vmatprep.mubr.f32.mxu0 %v8490_v47  ;;  %v1635_v47 = vld [vmem:[#allocation5 + $0x920] sm:$0xff]  ;;  %v1646_v3 = vld [vmem:[#allocation5 + $0x978] sm:$0xff] }
 0x2f7   :  { %6308 = vmatprep.subr.bf16.mxu0 %v6307_v2  ;;  %v6321_v59 = vpack.c.bf16 %v1637_v6, %v1635_v47  ;;  %v6325_v2 = vpack.c.bf16 %v1641_v52, %v1639_v13  ;;  %v6327_v21 = vpack.c.bf16 %v1646_v3, %v1644_v62  ;;  %v1655_v6 = vld [vmem:[#allocation5 + $0x9c0] sm:$0xff]  ;;  %v1661_v62 = vld [vmem:[#allocation5 + $0x9f0] sm:$0xff]  ;;  %v1664_v3 = vld [vmem:[#allocation5 + $0xa08] sm:$0xff] }
 0x2f8   :  { %v1659_v52 = vld [vmem:[#allocation5 + $0x9e0] sm:$0xff] }
 0x2fa   :  { %6310 = vmatpush1.bf16.msra.mxu0 %v6309_v61  ;;  %v1650_v61 = vld [vmem:[#allocation5 + $0x998] sm:$0xff] }
 0x2fb   :  { %6312 = vmatprep.subr.bf16.mxu0 %v6311_v5  ;;  %v6329_v5 = vpack.c.bf16 %v1645_v41, %v1643_v63  ;;  %v6331_v15 = vpack.c.bf16 %v1650_v61, %v1648_v55  ;;  %v1663_v41 = vld [vmem:[#allocation5 + $0xa00] sm:$0xff]  ;;  %v1665_v55 = vld [vmem:[#allocation5 + $0xa10] sm:$0xff]  ;;  %v1668_v61 = vld [vmem:[#allocation5 + $0xa28] sm:$0xff] }
 0x2fe   :  { %6314 = vmatpush1.bf16.msra.mxu0 %v6313_v1  ;;  %v1654_v1 = vld [vmem:[#allocation5 + $0x9b8] sm:$0xff] }
 0x2ff   :  { %6316 = vmatprep.subr.bf16.mxu0 %v6315_v14  ;;  %v6333_v14 = vpack.c.bf16 %v1649_v45, %v1647_v17  ;;  %v6335_v32 = vpack.c.bf16 %v1654_v1, %v1652_v20  ;;  %v1667_v45 = vld [vmem:[#allocation5 + $0xa20] sm:$0xff]  ;;  %v1669_v20 = vld [vmem:[#allocation5 + $0xa30] sm:$0xff]  ;;  %v1672_v1 = vld [vmem:[#allocation5 + $0xa48] sm:$0xff] }
 0x302   :  { %6318 = vmatpush1.bf16.msra.mxu0 %v6317_v10  ;;  %v1658_v10 = vld [vmem:[#allocation5 + $0x9d8] sm:$0xff] }
 0x303   :  { %6320 = vmatprep.subr.bf16.mxu0 %v6319_v27  ;;  %v6337_v27 = vpack.c.bf16 %v1653_v51, %v1651_v35  ;;  %v6339_v47 = vpack.c.bf16 %v1658_v10, %v1656_v16  ;;  %v1671_v51 = vld [vmem:[#allocation5 + $0xa40] sm:$0xff]  ;;  %v1673_v16 = vld [vmem:[#allocation5 + $0xa50] sm:$0xff]  ;;  %v1676_v10 = vld [vmem:[#allocation5 + $0xa68] sm:$0xff] }
 0x306   :  { %6322 = vmatpush1.bf16.msra.mxu0 %v6321_v59  ;;  %v1662_v59 = vld [vmem:[#allocation5 + $0x9f8] sm:$0xff] }
 0x307   :  { %6324 = vmatprep.subr.bf16.mxu0 %v6323_v33  ;;  %v6341_v33 = vpack.c.bf16 %v1657_v24, %v1655_v6  ;;  %v6343_v13 = vpack.c.bf16 %v1662_v59, %v1660_v43  ;;  %v1675_v24 = vld [vmem:[#allocation5 + $0xa60] sm:$0xff]  ;;  %v1680_v43 = vld [vmem:[#allocation5 + $0xa88] sm:$0xff] }
 0x30a   :  { %6326 = vmatpush1.bf16.msra.mxu0 %v6325_v2  ;;  %v1666_v2 = vld [vmem:[#allocation5 + $0xa18] sm:$0xff] }
 0x30b   :  { %6328 = vmatprep.subr.bf16.mxu0 %v6327_v21  ;;  %v6345_v21 = vpack.c.bf16 %v1661_v62, %v1659_v52  ;;  %v6347_v63 = vpack.c.bf16 %v1666_v2, %v1664_v3  ;;  %v1684_v52 = vld [vmem:[#allocation5 + $0xaa8] sm:$0xff]  ;;  %v1683_v2 = vld [vmem:[#allocation5 + $0xaa0] sm:$0xff] }
 0x30e   :  { %6330 = vmatpush1.bf16.msra.mxu0 %v6329_v5  ;;  %v1670_v5 = vld [vmem:[#allocation5 + $0xa38] sm:$0xff] }
 0x30f   :  { %6332 = vmatprep.subr.bf16.mxu0 %v6331_v15  ;;  %v6349_v15 = vpack.c.bf16 %v1665_v55, %v1663_v41  ;;  %v6351_v17 = vpack.c.bf16 %v1670_v5, %v1668_v61  ;;  %v1687_v55 = vld [vmem:[#allocation5 + $0xac0] sm:$0xff]  ;;  %v1692_v61 = vld [vmem:[#allocation5 + $0xae8] sm:$0xff] }
 0x312   :  { %6334 = vmatpush1.bf16.msra.mxu0 %v6333_v14  ;;  %v1674_v14 = vld [vmem:[#allocation5 + $0xa58] sm:$0xff] }
 0x313   :  { %6336 = vmatprep.subr.bf16.mxu0 %v6335_v32  ;;  %v6353_v32 = vpack.c.bf16 %v1669_v20, %v1667_v45  ;;  %v6355_v35 = vpack.c.bf16 %v1674_v14, %v1672_v1  ;;  %v1696_v45 = vld [vmem:[#allocation5 + $0xb08] sm:$0xff]  ;;  %v1695_v14 = vld [vmem:[#allocation5 + $0xb00] sm:$0xff] }
 0x316   :  { %6338 = vmatpush1.bf16.msra.mxu0 %v6337_v27  ;;  %v1678_v27 = vld [vmem:[#allocation5 + $0xa78] sm:$0xff] }
 0x317   :  { %6340 = vmatprep.subr.bf16.mxu0 %v6339_v47  ;;  %v6357_v47 = vpack.c.bf16 %v1673_v16, %v1671_v51  ;;  %v6359_v6 = vpack.c.bf16 %v1678_v27, %v1676_v10  ;;  %v1702_v51 = vld [vmem:[#allocation5 + $0xb38] sm:$0xff]  ;;  %v1699_v10 = vld [vmem:[#allocation5 + $0xb20] sm:$0xff]  ;;  %v1704_v27 = vld [vmem:[#allocation5 + $0xb48] sm:$0xff] }
 0x31a   :  { %6342 = vmatpush1.bf16.msra.mxu0 %v6341_v33 }
 0x31b   :  { %6344 = vmatprep.subr.bf16.mxu0 %v6343_v13  ;;  %v1679_v13 = vld [vmem:[#allocation5 + $0xa80] sm:$0xff] }
 0x31e   :  { %6346 = vmatpush1.bf16.msra.mxu0 %v6345_v21  ;;  %v1688_v21 = vld [vmem:[#allocation5 + $0xac8] sm:$0xff] }
 0x31f   :  { %6348 = vmatprep.subr.bf16.mxu0 %v6347_v63 }
 0x321   :  { %2336 = vmatmul.mubr.f32.vlgmr.msra.gmra.mrb[48].mxu0 %v8488_v42  ;;  %v1677_v42 = vld [vmem:[#allocation5 + $0xa70] sm:$0xff] }
 0x322   :  { %2341 = vmatprep.mubr.f32.mxu0 %v8494_v58  ;;  %6350 = vmatpush1.bf16.msra.mxu0 %v6349_v15  ;;  %v1682_v58 = vld [vmem:[#allocation5 + $0xa98] sm:$0xff]  ;;  %v6361_v59 = vpack.c.bf16 %v1677_v42, %v1675_v24  ;;  %v1703_v42 = vld [vmem:[#allocation5 + $0xb40] sm:$0xff] }
 0x323   :  { %6352 = vmatprep.subr.bf16.mxu0 %v6351_v17  ;;  %v6363_v33 = vpack.c.bf16 %v1682_v58, %v1680_v43  ;;  %v1691_v17 = vld [vmem:[#allocation5 + $0xae0] sm:$0xff]  ;;  %v1705_v43 = vld [vmem:[#allocation5 + $0xb50] sm:$0xff]  ;;  %v1708_v58 = vld [vmem:[#allocation5 + $0xb68] sm:$0xff] }
 0x325   :  { %2342 = vmatmul.mubr.f32.gmra.mrb[50].mxu0 %v8492_v57  ;;  %v1681_v57 = vld [vmem:[#allocation5 + $0xa90] sm:$0xff] }
 0x326   :  { %2347 = vmatprep.mubr.f32.mxu0 %v8499_v9  ;;  %6354 = vmatpush1.bf16.msra.mxu0 %v6353_v32  ;;  %v1686_v9 = vld [vmem:[#allocation5 + $0xab8] sm:$0xff]  ;;  %v6365_v62 = vpack.c.bf16 %v1681_v57, %v1679_v13  ;;  %v1697_v32 = vld [vmem:[#allocation5 + $0xb10] sm:$0xff]  ;;  %v1707_v57 = vld [vmem:[#allocation5 + $0xb60] sm:$0xff] }
 0x327   :  { %6356 = vmatprep.subr.bf16.mxu0 %v6355_v35  ;;  %v6367_v3 = vpack.c.bf16 %v1686_v9, %v1684_v52  ;;  %v1700_v35 = vld [vmem:[#allocation5 + $0xb28] sm:$0xff]  ;;  %v1709_v52 = vld [vmem:[#allocation5 + $0xb70] sm:$0xff] }
 0x328   :  { %v6383_v16 = vpack.c.bf16 %v1702_v51, %v1700_v35  ;;  %v1712_v9 = vld [vmem:[#allocation5 + $0xb88] sm:$0xff]  ;;  %v1725_v35 = vld [vmem:[#allocation5 + $0xbf0] sm:$0xff] }
 0x329   :  { %2348 = vmatmul.mubr.f32.gmra.mrb[52].mxu0 %v8497_v40  ;;  %v1685_v40 = vld [vmem:[#allocation5 + $0xab0] sm:$0xff]  ;;  %v1728_v51 = vld [vmem:[#allocation5 + $0xc08] sm:$0xff] }
 0x32a   :  { %2353 = vmatprep.mubr.f32.mxu0 %v8504_v29  ;;  %6358 = vmatpush1.bf16.msra.mxu0 %v6357_v47  ;;  %v1690_v29 = vld [vmem:[#allocation5 + $0xad8] sm:$0xff]  ;;  %v6369_v63 = vpack.c.bf16 %v1685_v40, %v1683_v2  ;;  %v1711_v40 = vld [vmem:[#allocation5 + $0xb80] sm:$0xff] }
 0x32b   :  { %6360 = vmatprep.subr.bf16.mxu0 %v6359_v6  ;;  %v6371_v41 = vpack.c.bf16 %v1690_v29, %v1688_v21  ;;  %v1706_v47 = vld [vmem:[#allocation5 + $0xb58] sm:$0xff]  ;;  %v1713_v21 = vld [vmem:[#allocation5 + $0xb90] sm:$0xff]  ;;  %v1716_v29 = vld [vmem:[#allocation5 + $0xba8] sm:$0xff] }
 0x32c   :  { %v6387_v24 = vpack.c.bf16 %v1706_v47, %v1704_v27  ;;  %v1729_v27 = vld [vmem:[#allocation5 + $0xc10] sm:$0xff] }
 0x32d   :  { %2354 = vmatmul.mubr.f32.gmra.mrb[54].mxu0 %v8502_v28  ;;  %v1689_v28 = vld [vmem:[#allocation5 + $0xad0] sm:$0xff] }
 0x32e   :  { %2359 = vmatprep.mubr.f32.mxu0 %v8509_v49  ;;  %6362 = vmatpush1.bf16.msra.mxu0 %v6361_v59  ;;  %v1694_v49 = vld [vmem:[#allocation5 + $0xaf8] sm:$0xff]  ;;  %v6373_v5 = vpack.c.bf16 %v1689_v28, %v1687_v55  ;;  %v1715_v28 = vld [vmem:[#allocation5 + $0xba0] sm:$0xff] }
 0x32f   :  { %6364 = vmatprep.subr.bf16.mxu0 %v6363_v33  ;;  %v6375_v15 = vpack.c.bf16 %v1694_v49, %v1692_v61  ;;  %v1710_v59 = vld [vmem:[#allocation5 + $0xb78] sm:$0xff]  ;;  %v6389_v33 = vpack.c.bf16 %v1705_v43, %v1703_v42  ;;  %v1717_v61 = vld [vmem:[#allocation5 + $0xbb0] sm:$0xff]  ;;  %v1720_v49 = vld [vmem:[#allocation5 + $0xbc8] sm:$0xff] }
 0x330   :  { %v6391_v13 = vpack.c.bf16 %v1710_v59, %v1708_v58  ;;  %v1731_v59 = vld [vmem:[#allocation5 + $0xc20] sm:$0xff] }
 0x331   :  { %2360 = vmatmul.mubr.f32.gmra.mrb[56].mxu0 %v8507_v46  ;;  %v1693_v46 = vld [vmem:[#allocation5 + $0xaf0] sm:$0xff] }
 0x332   :  { %2365 = vmatprep.mubr.f32.mxu0 %v8514_v30  ;;  %6366 = vmatpush1.bf16.msra.mxu0 %v6365_v62  ;;  %v1698_v30 = vld [vmem:[#allocation5 + $0xb18] sm:$0xff]  ;;  %v6377_v20 = vpack.c.bf16 %v1693_v46, %v1691_v17  ;;  %v1719_v46 = vld [vmem:[#allocation5 + $0xbc0] sm:$0xff] }
 0x333   :  { %6368 = vmatprep.subr.bf16.mxu0 %v6367_v3  ;;  %v6379_v1 = vpack.c.bf16 %v1698_v30, %v1696_v45  ;;  %v1714_v62 = vld [vmem:[#allocation5 + $0xb98] sm:$0xff]  ;;  %v6393_v3 = vpack.c.bf16 %v1709_v52, %v1707_v57  ;;  %v1721_v45 = vld [vmem:[#allocation5 + $0xbd0] sm:$0xff]  ;;  %v1724_v30 = vld [vmem:[#allocation5 + $0xbe8] sm:$0xff] }
 0x334   :  { %v6395_v2 = vpack.c.bf16 %v1714_v62, %v1712_v9  ;;  %v1736_v57 = vld [vmem:[#allocation5 + $0xc48] sm:$0xff]  ;;  %v1738_v52 = vld [vmem:[#allocation5 + $0xc58] sm:$0xff] }
 0x335   :  { %2366 = vmatmul.mubr.f32.gmra.mrb[58].mxu0 %v8512_v18  ;;  %v6381_v18 = vpack.c.bf16 %v1697_v32, %v1695_v14  ;;  %v1723_v32 = vld [vmem:[#allocation5 + $0xbe0] sm:$0xff] }
 0x336   :  { %6370 = vmatpush1.bf16.msra.mxu0 %v6369_v63  ;;  %2436 = vmatprep.mubr.f32.mxu0 %v8556_v53  ;;  %v1701_v53 = vld [vmem:[#allocation5 + $0xb30] sm:$0xff]  ;;  %v1718_v63 = vld [vmem:[#allocation5 + $0xbb8] sm:$0xff] }
 0x337   :  { %6372 = vmatprep.subr.bf16.mxu0 %v6371_v41  ;;  %v6385_v6 = vpack.c.bf16 %v1701_v53, %v1699_v10  ;;  %v6397_v41 = vpack.c.bf16 %v1713_v21, %v1711_v40  ;;  %v6399_v55 = vpack.c.bf16 %v1718_v63, %v1716_v29  ;;  %v1727_v53 = vld [vmem:[#allocation5 + $0xc00] sm:$0xff]  ;;  %v1737_v40 = vld [vmem:[#allocation5 + $0xc50] sm:$0xff]  ;;  %v1740_v29 = vld [vmem:[#allocation5 + $0xc68] sm:$0xff] }
 0x338   :  { %v6413_v43 = vpack.c.bf16 %v1729_v27, %v1727_v53  ;;  %v1742_v63 = vld [vmem:[#allocation5 + $0xc78] sm:$0xff]  ;;  %v1753_v53 = vld [vmem:[#allocation5 + $0xcd0] sm:$0xff]  ;;  %v1756_v27 = vld [vmem:[#allocation5 + $0xce8] sm:$0xff] }
 0x33a   :  { %6374 = vmatpush1.bf16.msra.mxu0 %v6373_v5  ;;  %v1722_v5 = vld [vmem:[#allocation5 + $0xbd8] sm:$0xff] }
 0x33b   :  { %6376 = vmatprep.subr.bf16.mxu0 %v6375_v15  ;;  %v6401_v15 = vpack.c.bf16 %v1717_v61, %v1715_v28  ;;  %v6403_v17 = vpack.c.bf16 %v1722_v5, %v1720_v49  ;;  %v1741_v28 = vld [vmem:[#allocation5 + $0xc70] sm:$0xff]  ;;  %v1744_v49 = vld [vmem:[#allocation5 + $0xc88] sm:$0xff]  ;;  %v1746_v5 = vld [vmem:[#allocation5 + $0xc98] sm:$0xff] }
 0x33e   :  { %6378 = vmatpush1.bf16.msra.mxu0 %v6377_v20  ;;  %v1726_v20 = vld [vmem:[#allocation5 + $0xbf8] sm:$0xff] }
 0x33f   :  { %6380 = vmatprep.subr.bf16.mxu0 %v6379_v1  ;;  %v6405_v1 = vpack.c.bf16 %v1721_v45, %v1719_v46  ;;  %v6407_v14 = vpack.c.bf16 %v1726_v20, %v1724_v30  ;;  %v1745_v46 = vld [vmem:[#allocation5 + $0xc90] sm:$0xff]  ;;  %v1748_v30 = vld [vmem:[#allocation5 + $0xca8] sm:$0xff]  ;;  %v1750_v20 = vld [vmem:[#allocation5 + $0xcb8] sm:$0xff] }
 0x342   :  { %6382 = vmatpush1.bf16.msra.mxu0 %v6381_v18  ;;  %v1730_v18 = vld [vmem:[#allocation5 + $0xc18] sm:$0xff] }
 0x343   :  { %6384 = vmatprep.subr.bf16.mxu0 %v6383_v16  ;;  %v6409_v16 = vpack.c.bf16 %v1725_v35, %v1723_v32  ;;  %v6411_v10 = vpack.c.bf16 %v1730_v18, %v1728_v51  ;;  %v1749_v32 = vld [vmem:[#allocation5 + $0xcb0] sm:$0xff]  ;;  %v1752_v51 = vld [vmem:[#allocation5 + $0xcc8] sm:$0xff]  ;;  %v1754_v18 = vld [vmem:[#allocation5 + $0xcd8] sm:$0xff] }
 0x346   :  { %6386 = vmatpush1.bf16.msra.mxu0 %v6385_v6  ;;  %v1732_v6 = vld [vmem:[#allocation5 + $0xc28] sm:$0xff] }
 0x347   :  { %6388 = vmatprep.subr.bf16.mxu0 %v6387_v24  ;;  %v8602_v47 = vpop.f32.mrb[36].mxu1  ;;  %v1734_v24 = vld [vmem:[#allocation5 + $0xc38] sm:$0xff] }
 0x348   :  { %v8604_v42 = vpop.f32.mrb[37].mxu1  ;;  %v6415_v58 = vpack.c.bf16 %v1734_v24, %v1732_v6  ;;  %v1758_v6 = vld [vmem:[#allocation5 + $0xcf8] sm:$0xff] }
 0x34a   :  { %6390 = vmatpush1.bf16.msra.mxu0 %v6389_v33  ;;  %v1733_v33 = vld [vmem:[#allocation5 + $0xc30] sm:$0xff] }
 0x34b   :  { %6392 = vmatprep.subr.bf16.mxu0 %v6391_v13  ;;  %v8606_v13 = vpop.f32.mrb[38].mxu1  ;;  %v6417_v62 = vpack.c.bf16 %v1733_v33, %v1731_v59  ;;  %v1760_v59 = vld [vmem:[#allocation5 + $0xd08] sm:$0xff]  ;;  %v1762_v33 = vld [vmem:[#allocation5 + $0xd18] sm:$0xff] }
 0x34c   :  { %v8609_v9 = vpop.f32.mrb[39].mxu1 }
 0x34e   :  { %6394 = vmatpush1.bf16.msra.mxu0 %v6393_v3  ;;  %v6419_v3 = vpack.c.bf16 %v1738_v52, %v1736_v57  ;;  %v6443_v57 = vpack.c.bf16 %v1762_v33, %v1760_v59  ;;  %v1759_v52 = vld [vmem:[#allocation5 + $0xd00] sm:$0xff]  ;;  %v1785_v59 = vld [vmem:[#allocation5 + $0xdd0] sm:$0xff]  ;;  %v1788_v33 = vld [vmem:[#allocation5 + $0xde8] sm:$0xff] }
 0x34f   :  { %6396 = vmatprep.subr.bf16.mxu0 %v6395_v2  ;;  %v1735_v2 = vld [vmem:[#allocation5 + $0xc40] sm:$0xff] }
 0x352   :  { %6398 = vmatpush1.bf16.msra.mxu0 %v6397_v41 }
 0x353   :  { %6400 = vmatprep.subr.bf16.mxu0 %v6399_v55  ;;  %v6423_v55 = vpack.c.bf16 %v1742_v63, %v1740_v29  ;;  %v1765_v29 = vld [vmem:[#allocation5 + $0xd30] sm:$0xff]  ;;  %v1768_v63 = vld [vmem:[#allocation5 + $0xd48] sm:$0xff] }
 0x356   :  { %6402 = vmatpush1.bf16.msra.mxu0 %v6401_v15  ;;  %v8612_v21 = vpop.f32.mrb[40].mxu1 }
 0x357   :  { %6404 = vmatprep.subr.bf16.mxu0 %v6403_v17  ;;  %v8615_v41 = vpop.f32.mrb[41].mxu1  ;;  %v6427_v17 = vpack.c.bf16 %v1746_v5, %v1744_v49  ;;  %v1769_v49 = vld [vmem:[#allocation5 + $0xd50] sm:$0xff]  ;;  %v1772_v5 = vld [vmem:[#allocation5 + $0xd68] sm:$0xff] }
 0x35a   :  { %6406 = vmatpush1.bf16.msra.mxu0 %v6405_v1 }
 0x35b   :  { %6408 = vmatprep.subr.bf16.mxu0 %v6407_v14  ;;  %v8618_v61 = vpop.f32.mrb[42].mxu1  ;;  %v6431_v14 = vpack.c.bf16 %v1750_v20, %v1748_v30  ;;  %v1773_v30 = vld [vmem:[#allocation5 + $0xd70] sm:$0xff]  ;;  %v1776_v20 = vld [vmem:[#allocation5 + $0xd88] sm:$0xff] }
 0x35c   :  { %v8621_v15 = vpop.f32.mrb[43].mxu1 }
 0x35e   :  { %6410 = vmatpush1.bf16.msra.mxu0 %v6409_v16 }
 0x35f   :  { %6412 = vmatprep.subr.bf16.mxu0 %v6411_v10  ;;  %v6435_v10 = vpack.c.bf16 %v1754_v18, %v1752_v51  ;;  %v1777_v51 = vld [vmem:[#allocation5 + $0xd90] sm:$0xff]  ;;  %v1780_v18 = vld [vmem:[#allocation5 + $0xda8] sm:$0xff] }
 0x361   :  { %2437 = vmatmul.mubr.f32.vlgmr.msra.gmra.mrb[48].mxu0 %v8554_v19  ;;  %v6421_v19 = vpack.c.bf16 %v1737_v40, %v1735_v2  ;;  %v1766_v2 = vld [vmem:[#allocation5 + $0xd38] sm:$0xff] }
 0x362   :  { %6414 = vmatpush1.bf16.msra.mxu0 %v6413_v43  ;;  %2442 = vmatprep.mubr.f32.mxu0 %v8562_v4  ;;  %v1739_v4 = vld [vmem:[#allocation5 + $0xc60] sm:$0xff]  ;;  %v8624_v45 = vpop.f32.mrb[44].mxu1 }
 0x363   :  { %6416 = vmatprep.subr.bf16.mxu0 %v6415_v58  ;;  %v8627_v1 = vpop.f32.mrb[45].mxu1  ;;  %v1755_v43 = vld [vmem:[#allocation5 + $0xce0] sm:$0xff]  ;;  %v1757_v58 = vld [vmem:[#allocation5 + $0xcf0] sm:$0xff] }
 0x365   :  { %2443 = vmatmul.mubr.f32.gmra.mrb[50].mxu0 %v8560_v56  ;;  %v6425_v56 = vpack.c.bf16 %v1741_v28, %v1739_v4  ;;  %v1767_v28 = vld [vmem:[#allocation5 + $0xd40] sm:$0xff] }
 0x366   :  { %6418 = vmatpush1.bf16.msra.mxu0 %v6417_v62  ;;  %2448 = vmatprep.mubr.f32.mxu0 %v8568_v31  ;;  %v1743_v31 = vld [vmem:[#allocation5 + $0xc80] sm:$0xff]  ;;  %v8630_v35 = vpop.f32.mrb[46].mxu1  ;;  %v1761_v62 = vld [vmem:[#allocation5 + $0xd10] sm:$0xff] }
 0x367   :  { %6420 = vmatprep.subr.bf16.mxu0 %v6419_v3  ;;  %v8633_v16 = vpop.f32.mrb[47].mxu1  ;;  %v1764_v3 = vld [vmem:[#allocation5 + $0xd28] sm:$0xff] }
 0x368   :  { %v6447_v40 = vpack.c.bf16 %v1766_v2, %v1764_v3  ;;  %v1789_v3 = vld [vmem:[#allocation5 + $0xdf0] sm:$0xff]  ;;  %v1792_v2 = vld [vmem:[#allocation5 + $0xe08] sm:$0xff] }
 0x369   :  { %2449 = vmatmul.mubr.f32.gmra.mrb[52].mxu0 %v8566_v54  ;;  %v6429_v54 = vpack.c.bf16 %v1745_v46, %v1743_v31  ;;  %v1771_v46 = vld [vmem:[#allocation5 + $0xd60] sm:$0xff] }
 0x36a   :  { %6422 = vmatpush1.bf16.msra.mxu0 %v6421_v19  ;;  %2454 = vmatprep.mubr.f32.mxu0 %v8574_v38  ;;  %v1747_v38 = vld [vmem:[#allocation5 + $0xca0] sm:$0xff]  ;;  %v1770_v19 = vld [vmem:[#allocation5 + $0xd58] sm:$0xff] }
 0x36b   :  { %6424 = vmatprep.subr.bf16.mxu0 %v6423_v55  ;;  %v6451_v4 = vpack.c.bf16 %v1770_v19, %v1768_v63  ;;  %v1793_v63 = vld [vmem:[#allocation5 + $0xe10] sm:$0xff]  ;;  %v1796_v19 = vld [vmem:[#allocation5 + $0xe28] sm:$0xff] }
 0x36d   :  { %2455 = vmatmul.mubr.f32.gmra.mrb[54].mxu0 %v8572_v11  ;;  %v6433_v11 = vpack.c.bf16 %v1749_v32, %v1747_v38  ;;  %v1775_v32 = vld [vmem:[#allocation5 + $0xd80] sm:$0xff] }
 0x36e   :  { %6426 = vmatpush1.bf16.msra.mxu0 %v6425_v56  ;;  %2460 = vmatprep.mubr.f32.mxu0 %v8580_v44  ;;  %v1751_v44 = vld [vmem:[#allocation5 + $0xcc0] sm:$0xff]  ;;  %v1774_v56 = vld [vmem:[#allocation5 + $0xd78] sm:$0xff] }
 0x36f   :  { %6428 = vmatprep.subr.bf16.mxu0 %v6427_v17  ;;  %v6437_v24 = vpack.c.bf16 %v1753_v53, %v1751_v44  ;;  %v6453_v17 = vpack.c.bf16 %v1769_v49, %v1767_v28  ;;  %v6455_v31 = vpack.c.bf16 %v1774_v56, %v1772_v5  ;;  %v1779_v53 = vld [vmem:[#allocation5 + $0xda0] sm:$0xff]  ;;  %v1797_v5 = vld [vmem:[#allocation5 + $0xe30] sm:$0xff]  ;;  %v1800_v56 = vld [vmem:[#allocation5 + $0xe48] sm:$0xff] }
 0x370   :  { %v1795_v49 = vld [vmem:[#allocation5 + $0xe20] sm:$0xff] }
 0x371   :  { %2461 = vmatmul.mubr.f32.gmra.mrb[56].mxu0 %v8578_v23  ;;  %v6439_v23 = vpack.c.bf16 %v1758_v6, %v1756_v27  ;;  %v1781_v27 = vld [vmem:[#allocation5 + $0xdb0] sm:$0xff]  ;;  %v1784_v6 = vld [vmem:[#allocation5 + $0xdc8] sm:$0xff] }
 0x372   :  { %6430 = vmatpush1.bf16.msra.mxu0 %v6429_v54  ;;  %2466 = vmatprep.mubr.f32.mxu0 %v8586_v0  ;;  %v6441_v0 = vpack.c.bf16 %v1757_v58, %v1755_v43  ;;  %v1778_v54 = vld [vmem:[#allocation5 + $0xd98] sm:$0xff]  ;;  %v1783_v58 = vld [vmem:[#allocation5 + $0xdc0] sm:$0xff] }
 0x373   :  { %6432 = vmatprep.subr.bf16.mxu0 %v6431_v14  ;;  %v6457_v14 = vpack.c.bf16 %v1773_v30, %v1771_v46  ;;  %v6459_v38 = vpack.c.bf16 %v1778_v54, %v1776_v20  ;;  %v1799_v30 = vld [vmem:[#allocation5 + $0xe40] sm:$0xff]  ;;  %v1801_v20 = vld [vmem:[#allocation5 + $0xe50] sm:$0xff]  ;;  %v1804_v54 = vld [vmem:[#allocation5 + $0xe68] sm:$0xff] }
 0x375   :  { %2467 = vmatmul.mubr.f32.gmra.mrb[58].mxu0 %v8584_v22  ;;  %v6445_v22 = vpack.c.bf16 %v1761_v62, %v1759_v52  ;;  %v1787_v62 = vld [vmem:[#allocation5 + $0xde0] sm:$0xff] }
 0x376   :  { %6434 = vmatpush1.bf16.msra.mxu0 %v6433_v11  ;;  %2537 = vmatprep.mubr.f32.mxu0 %v8530_v36  ;;  %v1763_v36 = vld [vmem:[#allocation5 + $0xd20] sm:$0xff]  ;;  %v1782_v11 = vld [vmem:[#allocation5 + $0xdb8] sm:$0xff] }
 0x377   :  { %6436 = vmatprep.subr.bf16.mxu0 %v6435_v10  ;;  %v6449_v55 = vpack.c.bf16 %v1765_v29, %v1763_v36  ;;  %v6461_v10 = vpack.c.bf16 %v1777_v51, %v1775_v32  ;;  %v6463_v44 = vpack.c.bf16 %v1782_v11, %v1780_v18  ;;  %v1791_v29 = vld [vmem:[#allocation5 + $0xe00] sm:$0xff]  ;;  %v1808_v18 = vld [vmem:[#allocation5 + $0xe88] sm:$0xff] }
 0x378   :  { %v1803_v51 = vld [vmem:[#allocation5 + $0xe60] sm:$0xff] }
 0x37a   :  { %6438 = vmatpush1.bf16.msra.mxu0 %v6437_v24  ;;  %v1786_v24 = vld [vmem:[#allocation5 + $0xdd8] sm:$0xff] }
 0x37b   :  { %6440 = vmatprep.subr.bf16.mxu0 %v6439_v23  ;;  %v6465_v23 = vpack.c.bf16 %v1781_v27, %v1779_v53  ;;  %v6467_v43 = vpack.c.bf16 %v1786_v24, %v1784_v6  ;;  %v1812_v53 = vld [vmem:[#allocation5 + $0xea8] sm:$0xff]  ;;  %v1811_v24 = vld [vmem:[#allocation5 + $0xea0] sm:$0xff] }
 0x37e   :  { %6442 = vmatpush1.bf16.msra.mxu0 %v6441_v0  ;;  %v1790_v0 = vld [vmem:[#allocation5 + $0xdf8] sm:$0xff] }
 0x37f   :  { %6444 = vmatprep.subr.bf16.mxu0 %v6443_v57  ;;  %v6469_v57 = vpack.c.bf16 %v1785_v59, %v1783_v58  ;;  %v6471_v52 = vpack.c.bf16 %v1790_v0, %v1788_v33  ;;  %v1815_v59 = vld [vmem:[#allocation5 + $0xec0] sm:$0xff]  ;;  %v1820_v33 = vld [vmem:[#allocation5 + $0xee8] sm:$0xff] }
 0x382   :  { %6446 = vmatpush1.bf16.msra.mxu0 %v6445_v22  ;;  %v1794_v22 = vld [vmem:[#allocation5 + $0xe18] sm:$0xff] }
 0x383   :  { %6448 = vmatprep.subr.bf16.mxu0 %v6447_v40  ;;  %v6473_v40 = vpack.c.bf16 %v1789_v3, %v1787_v62  ;;  %v6475_v36 = vpack.c.bf16 %v1794_v22, %v1792_v2  ;;  %v1824_v62 = vld [vmem:[#allocation5 + $0xf08] sm:$0xff]  ;;  %v1823_v22 = vld [vmem:[#allocation5 + $0xf00] sm:$0xff] }
 0x386   :  { %6450 = vmatpush1.bf16.msra.mxu0 %v6449_v55  ;;  %v1798_v55 = vld [vmem:[#allocation5 + $0xe38] sm:$0xff] }
 0x387   :  { %6452 = vmatprep.subr.bf16.mxu0 %v6451_v4  ;;  %v6477_v4 = vpack.c.bf16 %v1793_v63, %v1791_v29  ;;  %v6479_v28 = vpack.c.bf16 %v1798_v55, %v1796_v19  ;;  %v1830_v29 = vld [vmem:[#allocation5 + $0xf38] sm:$0xff]  ;;  %v1827_v19 = vld [vmem:[#allocation5 + $0xf20] sm:$0xff]  ;;  %v1832_v55 = vld [vmem:[#allocation5 + $0xf48] sm:$0xff] }
 0x38a   :  { %6454 = vmatpush1.bf16.msra.mxu0 %v6453_v17  ;;  %v1802_v17 = vld [vmem:[#allocation5 + $0xe58] sm:$0xff] }
 0x38b   :  { %6456 = vmatprep.subr.bf16.mxu0 %v6455_v31  ;;  %v6481_v31 = vpack.c.bf16 %v1797_v5, %v1795_v49  ;;  %v6483_v46 = vpack.c.bf16 %v1802_v17, %v1800_v56  ;;  %v1831_v5 = vld [vmem:[#allocation5 + $0xf40] sm:$0xff]  ;;  %v1833_v56 = vld [vmem:[#allocation5 + $0xf50] sm:$0xff]  ;;  %v1836_v17 = vld [vmem:[#allocation5 + $0xf68] sm:$0xff] }
 0x38e   :  { %6458 = vmatpush1.bf16.msra.mxu0 %v6457_v14  ;;  %v1806_v14 = vld [vmem:[#allocation5 + $0xe78] sm:$0xff] }
 0x38f   :  { %6460 = vmatprep.subr.bf16.mxu0 %v6459_v38  ;;  %v6485_v38 = vpack.c.bf16 %v1801_v20, %v1799_v30  ;;  %v6487_v32 = vpack.c.bf16 %v1806_v14, %v1804_v54  ;;  %v1835_v20 = vld [vmem:[#allocation5 + $0xf60] sm:$0xff]  ;;  %v1837_v54 = vld [vmem:[#allocation5 + $0xf70] sm:$0xff]  ;;  %v1840_v14 = vld [vmem:[#allocation5 + $0xf88] sm:$0xff] }
 0x392   :  { %6462 = vmatpush1.bf16.msra.mxu0 %v6461_v10 }
 0x393   :  { %6464 = vmatprep.subr.bf16.mxu0 %v6463_v44  ;;  %v1807_v44 = vld [vmem:[#allocation5 + $0xe80] sm:$0xff] }
 0x396   :  { %6466 = vmatpush1.bf16.msra.mxu0 %v6465_v23  ;;  %v1816_v23 = vld [vmem:[#allocation5 + $0xec8] sm:$0xff] }
 0x397   :  { %6468 = vmatprep.subr.bf16.mxu0 %v6467_v43 }
 0x39a   :  { %6470 = vmatpush1.bf16.msra.mxu0 %v6469_v57 }
 0x39b   :  { %6472 = vmatprep.subr.bf16.mxu0 %v6471_v52  ;;  %v1819_v52 = vld [vmem:[#allocation5 + $0xee0] sm:$0xff] }
 0x39e   :  { %6474 = vmatpush1.bf16.msra.mxu0 %v6473_v40  ;;  %v1825_v40 = vld [vmem:[#allocation5 + $0xf10] sm:$0xff] }
 0x39f   :  { %6476 = vmatprep.subr.bf16.mxu0 %v6475_v36  ;;  %v1828_v36 = vld [vmem:[#allocation5 + $0xf28] sm:$0xff] }
 0x3a0   :  { %v6511_v63 = vpack.c.bf16 %v1830_v29, %v1828_v36 }
 0x3a1   :  { %2538 = vmatmul.mubr.f32.vlgmr.msra.gmra.mrb[48].mxu0 %v8528_v39  ;;  %v1805_v39 = vld [vmem:[#allocation5 + $0xe70] sm:$0xff] }
 0x3a2   :  { %2543 = vmatprep.mubr.f32.mxu0 %v8536_v48  ;;  %6478 = vmatpush1.bf16.msra.mxu0 %v6477_v4  ;;  %v1810_v48 = vld [vmem:[#allocation5 + $0xe98] sm:$0xff]  ;;  %v6489_v11 = vpack.c.bf16 %v1805_v39, %v1803_v51  ;;  %v1839_v39 = vld [vmem:[#allocation5 + $0xf80] sm:$0xff] }
 0x3a3   :  { %6480 = vmatprep.subr.bf16.mxu0 %v6479_v28  ;;  %v6491_v10 = vpack.c.bf16 %v1810_v48, %v1808_v18  ;;  %v1834_v4 = vld [vmem:[#allocation5 + $0xf58] sm:$0xff]  ;;  %v1841_v18 = vld [vmem:[#allocation5 + $0xf90] sm:$0xff]  ;;  %v1844_v48 = vld [vmem:[#allocation5 + $0xfa8] sm:$0xff] }
 0x3a4   :  { %v6515_v49 = vpack.c.bf16 %v1834_v4, %v1832_v55 }
 0x3a5   :  { %2544 = vmatmul.mubr.f32.gmra.mrb[50].mxu0 %v8534_v26  ;;  %v1809_v26 = vld [vmem:[#allocation5 + $0xe90] sm:$0xff] }
 0x3a6   :  { %2549 = vmatprep.mubr.f32.mxu0 %v8540_v7  ;;  %6482 = vmatpush1.bf16.msra.mxu0 %v6481_v31  ;;  %v1814_v7 = vld [vmem:[#allocation5 + $0xeb8] sm:$0xff]  ;;  %v6493_v27 = vpack.c.bf16 %v1809_v26, %v1807_v44  ;;  %v1843_v26 = vld [vmem:[#allocation5 + $0xfa0] sm:$0xff] }
 0x3a7   :  { %6484 = vmatprep.subr.bf16.mxu0 %v6483_v46  ;;  %v6495_v6 = vpack.c.bf16 %v1814_v7, %v1812_v53  ;;  %v1838_v31 = vld [vmem:[#allocation5 + $0xf78] sm:$0xff]  ;;  %v6517_v46 = vpack.c.bf16 %v1833_v56, %v1831_v5  ;;  %v1845_v53 = vld [vmem:[#allocation5 + $0xfb0] sm:$0xff]  ;;  %v1848_v7 = vld [vmem:[#allocation5 + $0xfc8] sm:$0xff] }
 0x3a8   :  { %v6519_v30 = vpack.c.bf16 %v1838_v31, %v1836_v17 }
 0x3a9   :  { %2550 = vmatmul.mubr.f32.gmra.mrb[52].mxu0 %v8538_v60  ;;  %v1813_v60 = vld [vmem:[#allocation5 + $0xeb0] sm:$0xff] }
 0x3aa   :  { %2555 = vmatprep.mubr.f32.mxu0 %v8544_v12  ;;  %6486 = vmatpush1.bf16.msra.mxu0 %v6485_v38  ;;  %v1818_v12 = vld [vmem:[#allocation5 + $0xed8] sm:$0xff]  ;;  %v6497_v43 = vpack.c.bf16 %v1813_v60, %v1811_v24  ;;  %v1847_v60 = vld [vmem:[#allocation5 + $0xfc0] sm:$0xff] }
 0x3ab   :  { %6488 = vmatprep.subr.bf16.mxu0 %v6487_v32  ;;  %v6499_v58 = vpack.c.bf16 %v1818_v12, %v1816_v23  ;;  %v1842_v38 = vld [vmem:[#allocation5 + $0xf98] sm:$0xff]  ;;  %v6521_v32 = vpack.c.bf16 %v1837_v54, %v1835_v20  ;;  %v1849_v23 = vld [vmem:[#allocation5 + $0xfd0] sm:$0xff]  ;;  %v1852_v12 = vld [vmem:[#allocation5 + $0xfe8] sm:$0xff] }
 0x3ac   :  { %v6523_v51 = vpack.c.bf16 %v1842_v38, %v1840_v14 }
 0x3ad   :  { %2556 = vmatmul.mubr.f32.gmra.mrb[54].mxu0 %v8542_v8  ;;  %v1817_v8 = vld [vmem:[#allocation5 + $0xed0] sm:$0xff] }
 0x3ae   :  { %2561 = vmatprep.mubr.f32.mxu0 %v8548_v50  ;;  %6490 = vmatpush1.bf16.msra.mxu0 %v6489_v11  ;;  %v1822_v50 = vld [vmem:[#allocation5 + $0xef8] sm:$0xff]  ;;  %v6501_v0 = vpack.c.bf16 %v1817_v8, %v1815_v59  ;;  %v1851_v8 = vld [vmem:[#allocation5 + $0xfe0] sm:$0xff] }
 0x3af   :  { %6492 = vmatprep.subr.bf16.mxu0 %v6491_v10  ;;  %v6503_v57 = vpack.c.bf16 %v1822_v50, %v1820_v33  ;;  %v1846_v11 = vld [vmem:[#allocation5 + $0xfb8] sm:$0xff]  ;;  %v6525_v10 = vpack.c.bf16 %v1841_v18, %v1839_v39  ;;  %v1853_v33 = vld [vmem:[#allocation5 + $0xff0] sm:$0xff] }
 0x3b0   :  { %v6527_v44 = vpack.c.bf16 %v1846_v11, %v1844_v48  ;;  %v6537_v50 = vpack.c.bf16 %v1853_v33, %v1851_v8  ;;  %v3114_v8 = vld [vmem:[#allocation10 + $0x18] sm:$0xff]  ;;  %v2902_v33 = vld [vmem:[#allocation8 + $0x50] sm:$0xff] }
 0x3b1   :  { %2562 = vmatmul.mubr.f32.gmra.mrb[56].mxu0 %v8546_v25  ;;  %v1821_v25 = vld [vmem:[#allocation5 + $0xef0] sm:$0xff] }
 0x3b2   :  { %2567 = vmatprep.mubr.f32.mxu0 %v8552_v37  ;;  %6494 = vmatpush1.bf16.msra.mxu0 %v6493_v27  ;;  %v1826_v37 = vld [vmem:[#allocation5 + $0xf18] sm:$0xff]  ;;  %v6505_v3 = vpack.c.bf16 %v1821_v25, %v1819_v52 }
 0x3b3   :  { %6496 = vmatprep.subr.bf16.mxu0 %v6495_v6  ;;  %v6507_v2 = vpack.c.bf16 %v1826_v37, %v1824_v62  ;;  %v1850_v27 = vld [vmem:[#allocation5 + $0xfd8] sm:$0xff]  ;;  %v6529_v6 = vpack.c.bf16 %v1845_v53, %v1843_v26  ;;  %v2687_v53 = vld [vmem:[#allocation8] sm:$0xff] }
 0x3b4   :  { %v6531_v24 = vpack.c.bf16 %v1850_v27, %v1848_v7  ;;  %v2688_v7 = vld [vmem:[#allocation8 + $0x8] sm:$0xff]  ;;  %v2689_v27 = vld [vmem:[#allocation8 + $0x10] sm:$0xff] }
 0x3b5   :  { %2568 = vmatmul.mubr.f32.gmra.mrb[58].mxu0 %v8550_v34  ;;  %v6509_v34 = vpack.c.bf16 %v1825_v40, %v1823_v22 }
 0x3b6   :  { %6498 = vmatpush1.bf16.msra.mxu0 %v6497_v43  ;;  %2638 = vmatprep.mubr.f32.mxu0 %v8604_v42  ;;  %v1829_v42 = vld [vmem:[#allocation5 + $0xf30] sm:$0xff]  ;;  %v1854_v43 = vld [vmem:[#allocation5 + $0xff8] sm:$0xff] }
 0x3b7   :  { %6500 = vmatprep.subr.bf16.mxu0 %v6499_v58  ;;  %v6513_v28 = vpack.c.bf16 %v1829_v42, %v1827_v19  ;;  %v6533_v58 = vpack.c.bf16 %v1849_v23, %v1847_v60  ;;  %v6535_v59 = vpack.c.bf16 %v1854_v43, %v1852_v12  ;;  %v2795_v60 = vld [vmem:[#allocation8 + $0x28] sm:$0xff]  ;;  %v2796_v23 = vld [vmem:[#allocation8 + $0x30] sm:$0xff]  ;;  %v2797_v12 = vld [vmem:[#allocation8 + $0x38] sm:$0xff] }
 0x3b8   :  { %v2900_v43 = vld [vmem:[#allocation8 + $0x40] sm:$0xff] }
 0x3ba   :  { %6502 = vmatpush1.bf16.msra.mxu0 %v6501_v0 }
 0x3bb   :  { %6504 = vmatprep.subr.bf16.mxu0 %v6503_v57 }
 0x3be   :  { %6506 = vmatpush1.bf16.msra.mxu0 %v6505_v3 }
 0x3bf   :  { %6508 = vmatprep.subr.bf16.mxu0 %v6507_v2 }
 0x3c2   :  { %6510 = vmatpush1.bf16.msra.mxu0 %v6509_v34 }
 0x3c3   :  { %6512 = vmatprep.subr.bf16.mxu0 %v6511_v63 }
 0x3c6   :  { %6514 = vmatpush1.bf16.msra.mxu0 %v6513_v28 }
 0x3c7   :  { %6516 = vmatprep.subr.bf16.mxu0 %v6515_v49 }
 0x3ca   :  { %6518 = vmatpush1.bf16.msra.mxu0 %v6517_v46 }
 0x3cb   :  { %6520 = vmatprep.subr.bf16.mxu0 %v6519_v30 }
 0x3ce   :  { %6522 = vmatpush1.bf16.msra.mxu0 %v6521_v32 }
 0x3cf   :  { %6524 = vmatprep.subr.bf16.mxu0 %v6523_v51 }
 0x3d2   :  { %6526 = vmatpush1.bf16.msra.mxu0 %v6525_v10 }
 0x3d3   :  { %6528 = vmatprep.subr.bf16.mxu0 %v6527_v44 }
 0x3d6   :  { %6530 = vmatpush1.bf16.msra.mxu0 %v6529_v6  ;;  %v2690_v6 = vld [vmem:[#allocation8 + $0x18] sm:$0xff] }
 0x3d7   :  { %6532 = vmatprep.subr.bf16.mxu0 %v6531_v24  ;;  %v2794_v24 = vld [vmem:[#allocation8 + $0x20] sm:$0xff] }
 0x3da   :  { %6534 = vmatpush1.bf16.msra.mxu0 %v6533_v58  ;;  %v2901_v58 = vld [vmem:[#allocation8 + $0x48] sm:$0xff] }
 0x3db   :  { %6536 = vmatprep.subr.bf16.mxu0 %v6535_v59  ;;  %v3112_v59 = vld [vmem:[#allocation10 + $0x8] sm:$0xff] }
 0x3de   :  { %6538 = vmatpush1.bf16.msra.mxu0 %v6537_v50  ;;  %v6587_v50 = vpack.c.bf16 %v3114_v8, %v3112_v59  ;;  %v3150_v59 = vld [vmem:[#allocation10 + $0x138] sm:$0xff] }
 0x3e1   :  { %2639 = vmatmul.mubr.f32.vlgmr.msra.gmra.mrb[48].mxu0 %v8602_v47  ;;  %v7634_v47 = vmov 0.0  }
 0x3e2   :  { %2644 = vmatprep.mubr.f32.mxu0 %v8609_v9  ;;  %2768 = vmatprep.mubr.f32.mxu1 %v7634_v47 }
 0x3e5   :  { %2645 = vmatmul.mubr.f32.gmra.mrb[50].mxu0 %v8606_v13  ;;  %v1857_v13 = vlaneseq }
 0x3e6   :  { %2650 = vmatprep.mubr.f32.mxu0 %v8615_v41  ;;  %v1855_v41 = vld [vmem:[#allocation7] sm:$0x3] }
 0x3e7   :  { %v8662_v9 = vshrl.u32 %v1857_v13, 7  ;;  %v2903_v13 = vld [vmem:[#allocation8 + $0x58] sm:$0xff] }
 0x3e9   :  { %2651 = vmatmul.mubr.f32.gmra.mrb[52].mxu0 %v8612_v21  ;;  %v1859_v21 = vsub.s32 0, %v8662_v9 }
 0x3ea   :  { %2656 = vmatprep.mubr.f32.mxu0 %v8621_v15  ;;  %v1863_v15 = vsub.s32 1, %v8662_v9 }
 0x3ed   :  { %2657 = vmatmul.mubr.f32.gmra.mrb[54].mxu0 %v8618_v61  ;;  %v1860_v61 = vrot.slane %v1855_v41, %v1859_v21 }
 0x3ee   :  { %2662 = vmatprep.mubr.f32.mxu0 %v8627_v1 }
 0x3f1   :  { %2663 = vmatmul.mubr.f32.gmra.mrb[56].mxu0 %v8624_v45  ;;  %v1864_v45 = vrot.slane %v1855_v41, %v1863_v15  ;;  %v3111_v41 = vld [vmem:[#allocation10] sm:$0xff] }
 0x3f2   :  { %2668 = vmatprep.mubr.f32.mxu0 %v8633_v16 }
 0x3f5   :  { %2669 = vmatmul.mubr.f32.gmra.mrb[58].mxu0 %v8630_v35 }
 0x4b4   :  { %v2640_v1 = vpop.f32.mrb[48].mxu0 }
 0x4b5   :  { %v2642_v16 = vpop.f32.mrb[49].mxu0  ;;  %v7110_v35 = vadd.f32 %v2640_v1, %v1860_v61  ;;  %v3116_v1 = vld [vmem:[#allocation10 + $0x28] sm:$0xff] }
 0x4b6   :  { %v7111_v0 = vadd.f32 %v2642_v16, %v1864_v45  ;;  %v3006_v16 = vld [vmem:[#allocation8 + $0x60] sm:$0xff] }
 0x4b7   :  { %v2675_v37 = vmax.f32 %v7110_v35, 0.0 }
 0x4b8   :  { %v2646_v57 = vpop.f32.mrb[50].mxu0  ;;  %v2676_v2 = vmax.f32 %v7111_v0, 0.0 }
 0x4b9   :  { %v7112_v52 = vadd.f32 %v2646_v57, %v1860_v61  ;;  %v2648_v25 = vpop.f32.mrb[51].mxu0  ;;  %v3115_v57 = vld [vmem:[#allocation10 + $0x20] sm:$0xff] }
 0x4ba   :  { %v7113_v62 = vadd.f32 %v2648_v25, %v1864_v45  ;;  %v3120_v25 = vld [vmem:[#allocation10 + $0x48] sm:$0xff] }
 0x4bb   :  { %v2677_v3 = vmax.f32 %v7112_v52, 0.0  ;;  %v3117_v52 = vld [vmem:[#allocation10 + $0x30] sm:$0xff] }
 0x4bc   :  { %v2678_v22 = vmax.f32 %v7113_v62, 0.0  ;;  %v2652_v40 = vpop.f32.mrb[52].mxu0  ;;  %v3122_v62 = vld [vmem:[#allocation10 + $0x58] sm:$0xff] }
 0x4bd   :  { %v8670_v36 = vpack.c.bf16 %v2677_v3, %v2675_v37  ;;  %v2654_v29 = vpop.f32.mrb[53].mxu0  ;;  %v7114_v63 = vadd.f32 %v2652_v40, %v1860_v61  ;;  %v6593_v37 = vpack.c.bf16 %v3117_v52, %v3115_v57  ;;  %v3007_v3 = vld [vmem:[#allocation8 + $0x68] sm:$0xff]  ;;  %v3121_v40 = vld [vmem:[#allocation10 + $0x50] sm:$0xff]  ;;  %v3158_v57 = vld [vmem:[#allocation10 + $0x178] sm:$0xff] }
 0x4be   :  { %v8672_v34 = vpack.c.bf16 %v2678_v22, %v2676_v2  ;;  %v7115_v19 = vadd.f32 %v2654_v29, %v1864_v45  ;;  %v6595_v2 = vpack.c.bf16 %v3122_v62, %v3120_v25  ;;  %v3119_v22 = vld [vmem:[#allocation10 + $0x40] sm:$0xff]  ;;  %v3126_v29 = vld [vmem:[#allocation10 + $0x78] sm:$0xff] }
 0x4bf   :  { %v2679_v49 = vmax.f32 %v7114_v63, 0.0  ;;  %v3008_v63 = vld [vmem:[#allocation8 + $0x70] sm:$0xff]  ;;  %v3155_v62 = vld [vmem:[#allocation10 + $0x160] sm:$0xff] }
 0x4c0   :  { %v2658_v42 = vpop.f32.mrb[54].mxu0  ;;  %6540 = vmatprep.subr.bf16.mxu1 %v8672_v34  ;;  %v2680_v56 = vmax.f32 %v7115_v19, 0.0 }
 0x4c1   :  { %v7116_v55 = vadd.f32 %v2658_v42, %v1860_v61  ;;  %v2660_v4 = vpop.f32.mrb[55].mxu0  ;;  %6542 = vmatpush1.bf16.msra.mxu1 %v8670_v36  ;;  %v3123_v42 = vld [vmem:[#allocation10 + $0x60] sm:$0xff] }
 0x4c2   :  { %v7117_v28 = vadd.f32 %v2660_v4, %v1864_v45  ;;  %v3128_v4 = vld [vmem:[#allocation10 + $0x88] sm:$0xff] }
 0x4c3   :  { %v2681_v5 = vmax.f32 %v7116_v55, 0.0  ;;  %v3125_v55 = vld [vmem:[#allocation10 + $0x70] sm:$0xff] }
 0x4c4   :  { %v2682_v17 = vmax.f32 %v7117_v28, 0.0  ;;  %v2664_v31 = vpop.f32.mrb[56].mxu0  ;;  %v3130_v28 = vld [vmem:[#allocation10 + $0x98] sm:$0xff] }
 0x4c5   :  { %v8676_v46 = vpack.c.bf16 %v2681_v5, %v2679_v49  ;;  %v2666_v30 = vpop.f32.mrb[57].mxu0  ;;  %v7118_v54 = vadd.f32 %v2664_v31, %v1860_v61  ;;  %v6601_v49 = vpack.c.bf16 %v3125_v55, %v3123_v42  ;;  %v3009_v5 = vld [vmem:[#allocation8 + $0x78] sm:$0xff]  ;;  %v3129_v31 = vld [vmem:[#allocation10 + $0x90] sm:$0xff]  ;;  %v3163_v55 = vld [vmem:[#allocation10 + $0x1a0] sm:$0xff] }
 0x4c6   :  { %v6543_v20 = vpack.c.bf16 %v2682_v17, %v2680_v56  ;;  %v7119_v14 = vadd.f32 %v2666_v30, %v1864_v45  ;;  %v6603_v56 = vpack.c.bf16 %v3130_v28, %v3128_v4  ;;  %v3127_v17 = vld [vmem:[#allocation10 + $0x80] sm:$0xff]  ;;  %v3134_v30 = vld [vmem:[#allocation10 + $0xb8] sm:$0xff]  ;;  %v3165_v4 = vld [vmem:[#allocation10 + $0x1b0] sm:$0xff] }
 0x4c7   :  { %v2683_v18 = vmax.f32 %v7118_v54, 0.0  ;;  %v3168_v28 = vld [vmem:[#allocation10 + $0x1c8] sm:$0xff] }
 0x4c8   :  { %v2670_v38 = vpop.f32.mrb[58].mxu0  ;;  %6544 = vmatprep.subr.bf16.mxu1 %v6543_v20  ;;  %v2684_v11 = vmax.f32 %v7119_v14, 0.0  ;;  %v3131_v14 = vld [vmem:[#allocation10 + $0xa0] sm:$0xff] }
 0x4c9   :  { %v7120_v32 = vadd.f32 %v2670_v38, %v1860_v61  ;;  %v2672_v51 = vpop.f32.mrb[59].mxu0  ;;  %6546 = vmatpush1.bf16.msra.mxu1 %v8676_v46  ;;  %v3113_v61 = vld [vmem:[#allocation10 + $0x10] sm:$0xff] }
 0x4ca   :  { %v7121_v39 = vadd.f32 %v2672_v51, %v1864_v45  ;;  %v3118_v45 = vld [vmem:[#allocation10 + $0x38] sm:$0xff]  ;;  %v6589_v35 = vpack.c.bf16 %v3113_v61, %v3111_v41  ;;  %v3133_v38 = vld [vmem:[#allocation10 + $0xb0] sm:$0xff]  ;;  %v3152_v41 = vld [vmem:[#allocation10 + $0x148] sm:$0xff] }
 0x4cb   :  { %v2685_v48 = vmax.f32 %v7120_v32, 0.0  ;;  %v6591_v0 = vpack.c.bf16 %v3118_v45, %v3116_v1  ;;  %v3136_v32 = vld [vmem:[#allocation10 + $0xc8] sm:$0xff]  ;;  %v3138_v51 = vld [vmem:[#allocation10 + $0xd8] sm:$0xff] }
 0x4cc   :  { %v2686_v10 = vmax.f32 %v7121_v39, 0.0  ;;  %v6609_v39 = vpack.c.bf16 %v3133_v38, %v3131_v14  ;;  %v3154_v61 = vld [vmem:[#allocation10 + $0x158] sm:$0xff]  ;;  %v3171_v14 = vld [vmem:[#allocation10 + $0x1e0] sm:$0xff]  ;;  %v3173_v38 = vld [vmem:[#allocation10 + $0x1f0] sm:$0xff] }
 0x4cd   :  { %v6549_v44 = vpack.c.bf16 %v2685_v48, %v2683_v18  ;;  %v6611_v18 = vpack.c.bf16 %v3138_v51, %v3136_v32  ;;  %v3135_v48 = vld [vmem:[#allocation10 + $0xc0] sm:$0xff]  ;;  %v6627_v45 = vpack.c.bf16 %v3154_v61, %v3152_v41  ;;  %v3176_v32 = vld [vmem:[#allocation10 + $0x208] sm:$0xff]  ;;  %v3178_v51 = vld [vmem:[#allocation10 + $0x218] sm:$0xff] }
 0x4ce   :  { %v6547_v26 = vpack.c.bf16 %v2686_v10, %v2684_v11  ;;  %v3137_v11 = vld [vmem:[#allocation10 + $0xd0] sm:$0xff]  ;;  %v3140_v10 = vld [vmem:[#allocation10 + $0xe8] sm:$0xff] }
 0x4d0   :  { %6548 = vmatprep.subr.bf16.mxu1 %v6547_v26 }
 0x4d1   :  { %6550 = vmatpush1.bf16.msra.mxu1 %v6549_v44 }
 0x4d2   :  { %6552 = vmatprep.subr.bf16.mxu1 %v8672_v34 }
 0x4d4   :  { %5282 = vmatmul.mubr.msk.f32.vlgmr.msra.gmra.mrb[48].mxu1 %vm2691_vm1, %v2687_v53 }
 0x4d5   :  { %6554 = vmatpush1.bf16.msra.mxu1 %v8670_v36  ;;  %2774 = vmatprep.mubr.f32.mxu1 %v7634_v47 }
 0x4d6   :  { %6556 = vmatprep.subr.bf16.mxu1 %v6543_v20 }
 0x4d8   :  { %5283 = vmatmul.mubr.msk.f32.gmra.mrb[50].mxu1 %vm2691_vm1, %v2688_v7  ;;  %v3139_v7 = vld [vmem:[#allocation10 + $0xe0] sm:$0xff] }
 0x4d9   :  { %6558 = vmatpush1.bf16.msra.mxu1 %v8676_v46  ;;  %2780 = vmatprep.mubr.f32.mxu1 %v7634_v47 }
 0x4da   :  { %6560 = vmatprep.subr.bf16.mxu1 %v6547_v26 }
 0x4dc   :  { %5284 = vmatmul.mubr.msk.f32.gmra.mrb[52].mxu1 %vm2691_vm1, %v2689_v27  ;;  %v3141_v27 = vld [vmem:[#allocation10 + $0xf0] sm:$0xff] }
 0x4dd   :  { %6562 = vmatpush1.bf16.msra.mxu1 %v6549_v44  ;;  %2786 = vmatprep.mubr.f32.mxu1 %v7634_v47 }
 0x4de   :  { %6564 = vmatprep.subr.bf16.mxu1 %v8672_v34 }
 0x4e0   :  { %5285 = vmatmul.mubr.msk.f32.gmra.mrb[54].mxu1 %vm2691_vm1, %v2690_v6  ;;  %v3144_v6 = vld [vmem:[#allocation10 + $0x108] sm:$0xff] }
 0x4e1   :  { %2874 = vmatprep.mubr.f32.mxu1 %v7634_v47 }
 0x4e4   :  { %5286 = vmatmul.mubr.msk.f32.vlgmr.msra.gmra.mrb[56].mxu1 %vm2691_vm1, %v2794_v24  ;;  %v3146_v24 = vld [vmem:[#allocation10 + $0x118] sm:$0xff] }
 0x4e5   :  { %6566 = vmatpush1.bf16.msra.mxu1 %v8670_v36  ;;  %2880 = vmatprep.mubr.f32.mxu1 %v7634_v47 }
 0x4e6   :  { %6568 = vmatprep.subr.bf16.mxu1 %v6543_v20 }
 0x4e8   :  { %5287 = vmatmul.mubr.msk.f32.gmra.mrb[58].mxu1 %vm2691_vm1, %v2795_v60  ;;  %v6617_v60 = vpack.c.bf16 %v3141_v27, %v3139_v7 }
 0x4e9   :  { %6570 = vmatpush1.bf16.msra.mxu1 %v8676_v46  ;;  %2886 = vmatprep.mubr.f32.mxu1 %v7634_v47 }
 0x4ea   :  { %6572 = vmatprep.subr.bf16.mxu1 %v6547_v26 }
 0x4ec   :  { %5288 = vmatmul.mubr.msk.f32.gmra.mrb[60].mxu1 %vm2691_vm1, %v2796_v23  ;;  %v6619_v23 = vpack.c.bf16 %v3146_v24, %v3144_v6  ;;  %v3179_v6 = vld [vmem:[#allocation10 + $0x220] sm:$0xff]  ;;  %v3181_v24 = vld [vmem:[#allocation10 + $0x230] sm:$0xff] }
 0x4ed   :  { %6574 = vmatpush1.bf16.msra.mxu1 %v6549_v44  ;;  %2892 = vmatprep.mubr.f32.mxu1 %v7634_v47 }
 0x4ee   :  { %6576 = vmatprep.subr.bf16.mxu1 %v8672_v34  ;;  %v6597_v34 = vpack.c.bf16 %v3121_v40, %v3119_v22 }
 0x4f0   :  { %5289 = vmatmul.mubr.msk.f32.gmra.mrb[62].mxu1 %vm2691_vm1, %v2797_v12  ;;  %v3143_v12 = vld [vmem:[#allocation10 + $0x100] sm:$0xff] }
 0x4f1   :  { %2980 = vmatprep.mubr.f32.mxu1 %v7634_v47 }
 0x4f4   :  { %5290 = vmatmul.mubr.msk.f32.vlgmr.msra.gmra.mrb[64].mxu1 %vm2691_vm1, %v2900_v43  ;;  %v3145_v43 = vld [vmem:[#allocation10 + $0x110] sm:$0xff] }
 0x4f5   :  { %6578 = vmatpush1.bf16.msra.mxu1 %v8670_v36  ;;  %2986 = vmatprep.mubr.f32.mxu1 %v7634_v47  ;;  %v3124_v36 = vld [vmem:[#allocation10 + $0x68] sm:$0xff]  ;;  %v6621_v8 = vpack.c.bf16 %v3145_v43, %v3143_v12  ;;  %v6657_v12 = vpack.c.bf16 %v3181_v24, %v3179_v6 }
 0x4f6   :  { %6580 = vmatprep.subr.bf16.mxu1 %v6543_v20  ;;  %v6599_v19 = vpack.c.bf16 %v3126_v29, %v3124_v36  ;;  %v6605_v20 = vpack.c.bf16 %v3129_v31, %v3127_v17  ;;  %v3159_v36 = vld [vmem:[#allocation10 + $0x180] sm:$0xff]  ;;  %v3161_v29 = vld [vmem:[#allocation10 + $0x190] sm:$0xff] }
 0x4f7   :  { %v3167_v17 = vld [vmem:[#allocation10 + $0x1c0] sm:$0xff]  ;;  %v3169_v31 = vld [vmem:[#allocation10 + $0x1d0] sm:$0xff] }
 0x4f8   :  { %5291 = vmatmul.mubr.msk.f32.gmra.mrb[66].mxu1 %vm2691_vm1, %v2901_v58  ;;  %v3148_v58 = vld [vmem:[#allocation10 + $0x128] sm:$0xff] }
 0x4f9   :  { %6582 = vmatpush1.bf16.msra.mxu1 %v8676_v46  ;;  %2992 = vmatprep.mubr.f32.mxu1 %v7634_v47  ;;  %v3132_v46 = vld [vmem:[#allocation10 + $0xa8] sm:$0xff] }
 0x4fa   :  { %6584 = vmatprep.subr.bf16.mxu1 %v6547_v26  ;;  %v6607_v54 = vpack.c.bf16 %v3134_v30, %v3132_v46  ;;  %v6613_v26 = vpack.c.bf16 %v3137_v11, %v3135_v48  ;;  %v3172_v46 = vld [vmem:[#allocation10 + $0x1e8] sm:$0xff]  ;;  %v3174_v30 = vld [vmem:[#allocation10 + $0x1f8] sm:$0xff]  ;;  %v3175_v48 = vld [vmem:[#allocation10 + $0x200] sm:$0xff] }
 0x4fb   :  { %v3177_v11 = vld [vmem:[#allocation10 + $0x210] sm:$0xff] }
 0x4fc   :  { %5292 = vmatmul.mubr.msk.f32.gmra.mrb[68].mxu1 %vm2691_vm1, %v2902_v33  ;;  %v6623_v33 = vpack.c.bf16 %v3150_v59, %v3148_v58  ;;  %v3183_v59 = vld [vmem:[#allocation10 + $0x240] sm:$0xff] }
 0x4fd   :  { %6586 = vmatpush1.bf16.msra.mxu1 %v6549_v44  ;;  %2998 = vmatprep.mubr.f32.mxu1 %v7634_v47  ;;  %v3142_v44 = vld [vmem:[#allocation10 + $0xf8] sm:$0xff] }
 0x4fe   :  { %6588 = vmatprep.subr.bf16.mxu1 %v6587_v50  ;;  %v6615_v53 = vpack.c.bf16 %v3142_v44, %v3140_v10  ;;  %v3147_v50 = vld [vmem:[#allocation10 + $0x120] sm:$0xff]  ;;  %v3180_v10 = vld [vmem:[#allocation10 + $0x228] sm:$0xff]  ;;  %v3182_v44 = vld [vmem:[#allocation10 + $0x238] sm:$0xff] }
 0x4ff   :  { %v6655_v27 = vpack.c.bf16 %v3182_v44, %v3180_v10  ;;  %v3207_v44 = vld [vmem:[#allocation10 + $0x300] sm:$0xff] }
 0x500   :  { %5293 = vmatmul.mubr.msk.f32.gmra.mrb[70].mxu1 %vm2691_vm1, %v2903_v13  ;;  %v3149_v13 = vld [vmem:[#allocation10 + $0x130] sm:$0xff] }
 0x501   :  { %3086 = vmatprep.mubr.f32.mxu1 %v7634_v47  ;;  %v6625_v1 = vpack.c.bf16 %v3149_v13, %v3147_v50  ;;  %v3188_v50 = vld [vmem:[#allocation10 + $0x268] sm:$0xff]  ;;  %v3190_v13 = vld [vmem:[#allocation10 + $0x278] sm:$0xff] }
 0x504   :  { %5294 = vmatmul.mubr.msk.f32.vlgmr.msra.gmra.mrb[72].mxu1 %vm2691_vm1, %v3006_v16  ;;  %v3151_v16 = vld [vmem:[#allocation10 + $0x140] sm:$0xff] }
 0x505   :  { %6590 = vmatpush1.bf16.msra.mxu1 %v6589_v35  ;;  %3092 = vmatprep.mubr.f32.mxu1 %v7634_v47  ;;  %v3153_v35 = vld [vmem:[#allocation10 + $0x150] sm:$0xff] }
 0x506   :  { %6592 = vmatprep.subr.bf16.mxu1 %v6591_v0  ;;  %v3156_v0 = vld [vmem:[#allocation10 + $0x168] sm:$0xff]  ;;  %v6629_v52 = vpack.c.bf16 %v3153_v35, %v3151_v16  ;;  %v3189_v16 = vld [vmem:[#allocation10 + $0x270] sm:$0xff] }
 0x507   :  { %v6631_v25 = vpack.c.bf16 %v3158_v57, %v3156_v0  ;;  %v3192_v0 = vld [vmem:[#allocation10 + $0x288] sm:$0xff]  ;;  %v3194_v57 = vld [vmem:[#allocation10 + $0x298] sm:$0xff] }
 0x508   :  { %5295 = vmatmul.mubr.msk.f32.gmra.mrb[74].mxu1 %vm2691_vm1, %v3007_v3  ;;  %v3160_v3 = vld [vmem:[#allocation10 + $0x188] sm:$0xff] }
 0x509   :  { %6594 = vmatpush1.bf16.msra.mxu1 %v6593_v37  ;;  %3098 = vmatprep.mubr.f32.mxu1 %v7634_v47  ;;  %v3157_v37 = vld [vmem:[#allocation10 + $0x170] sm:$0xff] }
 0x50a   :  { %6596 = vmatprep.subr.bf16.mxu1 %v6595_v2  ;;  %v3162_v2 = vld [vmem:[#allocation10 + $0x198] sm:$0xff]  ;;  %v6633_v22 = vpack.c.bf16 %v3157_v37, %v3155_v62  ;;  %v6667_v62 = vpack.c.bf16 %v3194_v57, %v3192_v0  ;;  %v3191_v37 = vld [vmem:[#allocation10 + $0x280] sm:$0xff] }
 0x50b   :  { %v6635_v40 = vpack.c.bf16 %v3162_v2, %v3160_v3  ;;  %v3193_v3 = vld [vmem:[#allocation10 + $0x290] sm:$0xff]  ;;  %v3219_v57 = vld [vmem:[#allocation10 + $0x360] sm:$0xff] }
 0x50c   :  { %5296 = vmatmul.mubr.msk.f32.gmra.mrb[76].mxu1 %vm2691_vm1, %v3008_v63  ;;  %v3166_v63 = vld [vmem:[#allocation10 + $0x1b8] sm:$0xff] }
 0x50d   :  { %6598 = vmatpush1.bf16.msra.mxu1 %v6597_v34  ;;  %3104 = vmatprep.mubr.f32.mxu1 %v7634_v47  ;;  %v3164_v34 = vld [vmem:[#allocation10 + $0x1a8] sm:$0xff] }
 0x50e   :  { %6600 = vmatprep.subr.bf16.mxu1 %v6599_v19  ;;  %v6637_v19 = vpack.c.bf16 %v3161_v29, %v3159_v36  ;;  %v6639_v42 = vpack.c.bf16 %v3166_v63, %v3164_v34  ;;  %v6669_v36 = vpack.c.bf16 %v3193_v3, %v3191_v37  ;;  %v3195_v63 = vld [vmem:[#allocation10 + $0x2a0] sm:$0xff]  ;;  %v3226_v37 = vld [vmem:[#allocation10 + $0x398] sm:$0xff] }
 0x510   :  { %5297 = vmatmul.mubr.msk.f32.gmra.mrb[78].mxu1 %vm2691_vm1, %v3009_v5  ;;  %v6641_v5 = vpack.c.bf16 %v3165_v4, %v3163_v55  ;;  %v3200_v55 = vld [vmem:[#allocation10 + $0x2c8] sm:$0xff]  ;;  %v3202_v4 = vld [vmem:[#allocation10 + $0x2d8] sm:$0xff] }
 0x511   :  { %6602 = vmatpush1.bf16.msra.mxu1 %v6601_v49  ;;  %v3170_v49 = vld [vmem:[#allocation10 + $0x1d8] sm:$0xff] }
 0x512   :  { %6604 = vmatprep.subr.bf16.mxu1 %v6603_v56  ;;  %v6643_v56 = vpack.c.bf16 %v3170_v49, %v3168_v28 }
 0x515   :  { %6606 = vmatpush1.bf16.msra.mxu1 %v6605_v20  ;;  %v6645_v20 = vpack.c.bf16 %v3169_v31, %v3167_v17  ;;  %v3201_v17 = vld [vmem:[#allocation10 + $0x2d0] sm:$0xff] }
 0x516   :  { %6608 = vmatprep.subr.bf16.mxu1 %v6607_v54  ;;  %v6647_v54 = vpack.c.bf16 %v3174_v30, %v3172_v46  ;;  %v3204_v46 = vld [vmem:[#allocation10 + $0x2e8] sm:$0xff]  ;;  %v3206_v30 = vld [vmem:[#allocation10 + $0x2f8] sm:$0xff] }
 0x519   :  { %6610 = vmatpush1.bf16.msra.mxu1 %v6609_v39  ;;  %v6649_v39 = vpack.c.bf16 %v3173_v38, %v3171_v14  ;;  %v6679_v14 = vpack.c.bf16 %v3206_v30, %v3204_v46  ;;  %v3203_v38 = vld [vmem:[#allocation10 + $0x2e0] sm:$0xff]  ;;  %v3234_v46 = vld [vmem:[#allocation10 + $0x3d8] sm:$0xff] }
 0x51a   :  { %6612 = vmatprep.subr.bf16.mxu1 %v6611_v18  ;;  %v6651_v18 = vpack.c.bf16 %v3178_v51, %v3176_v32  ;;  %v3205_v32 = vld [vmem:[#allocation10 + $0x2f0] sm:$0xff] }
 0x51d   :  { %6614 = vmatpush1.bf16.msra.mxu1 %v6613_v26 }
 0x51e   :  { %6616 = vmatprep.subr.bf16.mxu1 %v6615_v53  ;;  %v6653_v53 = vpack.c.bf16 %v3177_v11, %v3175_v48  ;;  %v6681_v48 = vpack.c.bf16 %v3205_v32, %v3203_v38  ;;  %v3233_v38 = vld [vmem:[#allocation10 + $0x3d0] sm:$0xff]  ;;  %v3236_v32 = vld [vmem:[#allocation10 + $0x3e8] sm:$0xff] }
 0x521   :  { %6618 = vmatpush1.bf16.msra.mxu1 %v6617_v60  ;;  %v3184_v60 = vld [vmem:[#allocation10 + $0x248] sm:$0xff] }
 0x522   :  { %6620 = vmatprep.subr.bf16.mxu1 %v6619_v23  ;;  %v3186_v23 = vld [vmem:[#allocation10 + $0x258] sm:$0xff] }
 0x523   :  { %v6659_v58 = vpack.c.bf16 %v3186_v23, %v3184_v60  ;;  %v3211_v23 = vld [vmem:[#allocation10 + $0x320] sm:$0xff] }
 0x525   :  { %6622 = vmatpush1.bf16.msra.mxu1 %v6621_v8  ;;  %v3185_v8 = vld [vmem:[#allocation10 + $0x250] sm:$0xff] }
 0x526   :  { %6624 = vmatprep.subr.bf16.mxu1 %v6623_v33  ;;  %v6661_v41 = vpack.c.bf16 %v3185_v8, %v3183_v59  ;;  %v3218_v59 = vld [vmem:[#allocation10 + $0x358] sm:$0xff] }
 0x529   :  { %6626 = vmatpush1.bf16.msra.mxu1 %v6625_v1  ;;  %v6663_v1 = vpack.c.bf16 %v3190_v13, %v3188_v50  ;;  %v3215_v13 = vld [vmem:[#allocation10 + $0x340] sm:$0xff] }
 0x52a   :  { %6628 = vmatprep.subr.bf16.mxu1 %v6627_v45  ;;  %v3187_v45 = vld [vmem:[#allocation10 + $0x260] sm:$0xff] }
 0x52d   :  { %6630 = vmatpush1.bf16.msra.mxu1 %v6629_v52  ;;  %v6665_v52 = vpack.c.bf16 %v3189_v16, %v3187_v45  ;;  %v3222_v45 = vld [vmem:[#allocation10 + $0x378] sm:$0xff] }
 0x52e   :  { %6632 = vmatprep.subr.bf16.mxu1 %v6631_v25 }
 0x531   :  { %6634 = vmatpush1.bf16.msra.mxu1 %v6633_v22  ;;  %v3196_v22 = vld [vmem:[#allocation10 + $0x2a8] sm:$0xff] }
 0x532   :  { %6636 = vmatprep.subr.bf16.mxu1 %v6635_v40  ;;  %v3198_v40 = vld [vmem:[#allocation10 + $0x2b8] sm:$0xff] }
 0x533   :  { %v6671_v34 = vpack.c.bf16 %v3198_v40, %v3196_v22  ;;  %v3223_v40 = vld [vmem:[#allocation10 + $0x380] sm:$0xff] }
 0x535   :  { %6638 = vmatpush1.bf16.msra.mxu1 %v6637_v19  ;;  %v3197_v19 = vld [vmem:[#allocation10 + $0x2b0] sm:$0xff] }
 0x536   :  { %6640 = vmatprep.subr.bf16.mxu1 %v6639_v42  ;;  %v6673_v28 = vpack.c.bf16 %v3197_v19, %v3195_v63  ;;  %v3228_v63 = vld [vmem:[#allocation10 + $0x3a8] sm:$0xff]  ;;  %v3230_v19 = vld [vmem:[#allocation10 + $0x3b8] sm:$0xff] }
 0x539   :  { %6642 = vmatpush1.bf16.msra.mxu1 %v6641_v5  ;;  %v6675_v5 = vpack.c.bf16 %v3202_v4, %v3200_v55  ;;  %v6703_v4 = vpack.c.bf16 %v3230_v19, %v3228_v63  ;;  %v3251_v63 = vld [vmem:[#allocation10 + $0x460] sm:$0xff]  ;;  %v3253_v19 = vld [vmem:[#allocation10 + $0x470] sm:$0xff] }
 0x53a   :  { %6644 = vmatprep.subr.bf16.mxu1 %v6643_v56  ;;  %v3199_v56 = vld [vmem:[#allocation10 + $0x2c0] sm:$0xff] }
 0x53d   :  { %6646 = vmatpush1.bf16.msra.mxu1 %v6645_v20  ;;  %v6677_v20 = vpack.c.bf16 %v3201_v17, %v3199_v56  ;;  %v3232_v17 = vld [vmem:[#allocation10 + $0x3c8] sm:$0xff] }
 0x53e   :  { %6648 = vmatprep.subr.bf16.mxu1 %v6647_v54 }
 0x541   :  { %6650 = vmatpush1.bf16.msra.mxu1 %v6649_v39  ;;  %v3208_v39 = vld [vmem:[#allocation10 + $0x308] sm:$0xff] }
 0x542   :  { %6652 = vmatprep.subr.bf16.mxu1 %v6651_v18  ;;  %v3210_v18 = vld [vmem:[#allocation10 + $0x318] sm:$0xff] }
 0x543   :  { %v6683_v10 = vpack.c.bf16 %v3210_v18, %v3208_v39  ;;  %v3238_v39 = vld [vmem:[#allocation10 + $0x3f8] sm:$0xff] }
 0x5a7   :  { %v2770_v26 = vpop.f32.mrb[48].mxu1 }
 0x5a8   :  { %v2772_v7 = vpop.f32.mrb[49].mxu1 }
 0x5a9   :  { %3443 = vmatprep.mubr.f32.mxu1 %v2772_v7  ;;  %v3212_v7 = vld [vmem:[#allocation10 + $0x328] sm:$0xff] }
 0x5aa   :  { %3444 = vmatmul.mubr.f32.vlgmr.msra.gmra.mrb[80].mxu1 %v2770_v26  ;;  %v3209_v26 = vld [vmem:[#allocation10 + $0x310] sm:$0xff] }
 0x5ab   :  { %6654 = vmatpush1.bf16.msra.mxu1 %v6653_v53  ;;  %v2776_v43 = vpop.f32.mrb[50].mxu1  ;;  %v6685_v6 = vpack.c.bf16 %v3209_v26, %v3207_v44  ;;  %v3237_v44 = vld [vmem:[#allocation10 + $0x3f0] sm:$0xff]  ;;  %v3240_v26 = vld [vmem:[#allocation10 + $0x408] sm:$0xff] }
 0x5ac   :  { %6656 = vmatprep.subr.bf16.mxu1 %v6655_v27  ;;  %v2778_v33 = vpop.f32.mrb[51].mxu1  ;;  %v3214_v27 = vld [vmem:[#allocation10 + $0x338] sm:$0xff] }
 0x5ad   :  { %3449 = vmatprep.mubr.f32.mxu1 %v2778_v33  ;;  %v6687_v60 = vpack.c.bf16 %v3214_v27, %v3212_v7  ;;  %v3242_v7 = vld [vmem:[#allocation10 + $0x418] sm:$0xff] }
 0x5ae   :  { %3450 = vmatmul.mubr.f32.gmra.mrb[82].mxu1 %v2776_v43 }
 0x5af   :  { %6658 = vmatpush1.bf16.msra.mxu1 %v6657_v12  ;;  %v2782_v61 = vpop.f32.mrb[52].mxu1  ;;  %v3213_v12 = vld [vmem:[#allocation10 + $0x330] sm:$0xff] }
 0x5b0   :  { %6660 = vmatprep.subr.bf16.mxu1 %v6659_v58  ;;  %v2784_v35 = vpop.f32.mrb[53].mxu1  ;;  %v3216_v58 = vld [vmem:[#allocation10 + $0x348] sm:$0xff]  ;;  %v6689_v8 = vpack.c.bf16 %v3213_v12, %v3211_v23  ;;  %v3241_v23 = vld [vmem:[#allocation10 + $0x410] sm:$0xff] }
 0x5b1   :  { %3455 = vmatprep.mubr.f32.mxu1 %v2784_v35  ;;  %v6691_v50 = vpack.c.bf16 %v3218_v59, %v3216_v58  ;;  %v3244_v12 = vld [vmem:[#allocation10 + $0x428] sm:$0xff]  ;;  %v3246_v58 = vld [vmem:[#allocation10 + $0x438] sm:$0xff] }
 0x5b2   :  { %3456 = vmatmul.mubr.f32.gmra.mrb[84].mxu1 %v2782_v61 }
 0x5b3   :  { %6662 = vmatpush1.bf16.msra.mxu1 %v6661_v41  ;;  %v2788_v25 = vpop.f32.mrb[54].mxu1  ;;  %v3217_v41 = vld [vmem:[#allocation10 + $0x350] sm:$0xff] }
 0x5b4   :  { %6664 = vmatprep.subr.bf16.mxu1 %v6663_v1  ;;  %v2790_v2 = vpop.f32.mrb[55].mxu1  ;;  %v3220_v1 = vld [vmem:[#allocation10 + $0x368] sm:$0xff]  ;;  %v6693_v16 = vpack.c.bf16 %v3217_v41, %v3215_v13  ;;  %v3243_v13 = vld [vmem:[#allocation10 + $0x420] sm:$0xff]  ;;  %v3245_v41 = vld [vmem:[#allocation10 + $0x430] sm:$0xff] }
 0x5b5   :  { %3461 = vmatprep.mubr.f32.mxu1 %v2790_v2  ;;  %v6695_v0 = vpack.c.bf16 %v3222_v45, %v3220_v1  ;;  %v3248_v1 = vld [vmem:[#allocation10 + $0x448] sm:$0xff]  ;;  %v3250_v45 = vld [vmem:[#allocation10 + $0x458] sm:$0xff] }
 0x5b6   :  { %3462 = vmatmul.mubr.f32.gmra.mrb[86].mxu1 %v2788_v25 }
 0x5b7   :  { %6666 = vmatpush1.bf16.msra.mxu1 %v6665_v52  ;;  %v8719_v29 = vpop.f32.mrb[56].mxu1  ;;  %v3221_v52 = vld [vmem:[#allocation10 + $0x370] sm:$0xff] }
 0x5b8   :  { %6668 = vmatprep.subr.bf16.mxu1 %v6667_v62  ;;  %v2878_v42 = vpop.f32.mrb[57].mxu1  ;;  %v3224_v62 = vld [vmem:[#allocation10 + $0x388] sm:$0xff]  ;;  %v6697_v3 = vpack.c.bf16 %v3221_v52, %v3219_v57  ;;  %v6723_v52 = vpack.c.bf16 %v3250_v45, %v3248_v1  ;;  %v3275_v45 = vld [vmem:[#allocation10 + $0x520] sm:$0xff] }
 0x5b9   :  { %3532 = vmatprep.mubr.f32.mxu1 %v2878_v42  ;;  %v6699_v22 = vpack.c.bf16 %v3226_v37, %v3224_v62  ;;  %v3247_v62 = vld [vmem:[#allocation10 + $0x440] sm:$0xff]  ;;  %v3249_v37 = vld [vmem:[#allocation10 + $0x450] sm:$0xff] }
 0x5bb   :  { %6670 = vmatpush1.bf16.msra.mxu1 %v6669_v36  ;;  %v8721_v49 = vpop.f32.mrb[58].mxu1  ;;  %v3225_v36 = vld [vmem:[#allocation10 + $0x390] sm:$0xff] }
 0x5bc   :  { %6672 = vmatprep.subr.bf16.mxu1 %v6671_v34  ;;  %v8723_v31 = vpop.f32.mrb[59].mxu1  ;;  %v6701_v42 = vpack.c.bf16 %v3225_v36, %v3223_v40 }
 0x5bf   :  { %6674 = vmatpush1.bf16.msra.mxu1 %v6673_v28  ;;  %v8725_v54 = vpop.f32.mrb[60].mxu1  ;;  %v3227_v28 = vld [vmem:[#allocation10 + $0x3a0] sm:$0xff] }
 0x5c0   :  { %6676 = vmatprep.subr.bf16.mxu1 %v6675_v5  ;;  %v8727_v51 = vpop.f32.mrb[61].mxu1  ;;  %v3229_v5 = vld [vmem:[#allocation10 + $0x3b0] sm:$0xff] }
 0x5c1   :  { %v6705_v30 = vpack.c.bf16 %v3229_v5, %v3227_v28 }
 0x5c3   :  { %6678 = vmatpush1.bf16.msra.mxu1 %v6677_v20  ;;  %v8729_v11 = vpop.f32.mrb[62].mxu1  ;;  %v6707_v20 = vpack.c.bf16 %v3234_v46, %v3232_v17  ;;  %v3255_v17 = vld [vmem:[#allocation10 + $0x480] sm:$0xff]  ;;  %v3260_v46 = vld [vmem:[#allocation10 + $0x4a8] sm:$0xff] }
 0x5c4   :  { %6680 = vmatprep.subr.bf16.mxu1 %v6679_v14  ;;  %v8731_v53 = vpop.f32.mrb[63].mxu1  ;;  %v3231_v14 = vld [vmem:[#allocation10 + $0x3c0] sm:$0xff] }
 0x5c5   :  { %v6709_v18 = vpack.c.bf16 %v3233_v38, %v3231_v14  ;;  %v3259_v14 = vld [vmem:[#allocation10 + $0x4a0] sm:$0xff]  ;;  %v3261_v38 = vld [vmem:[#allocation10 + $0x4b0] sm:$0xff] }
 0x5c7   :  { %6682 = vmatpush1.bf16.msra.mxu1 %v6681_v48  ;;  %v8733_v24 = vpop.f32.mrb[64].mxu1  ;;  %v6711_v48 = vpack.c.bf16 %v3238_v39, %v3236_v32  ;;  %v3264_v32 = vld [vmem:[#allocation10 + $0x4c8] sm:$0xff]  ;;  %v3266_v39 = vld [vmem:[#allocation10 + $0x4d8] sm:$0xff] }
 0x5c8   :  { %6684 = vmatprep.subr.bf16.mxu1 %v6683_v10  ;;  %v8735_v43 = vpop.f32.mrb[65].mxu1  ;;  %v3235_v10 = vld [vmem:[#allocation10 + $0x3e0] sm:$0xff] }
 0x5c9   :  { %v6713_v27 = vpack.c.bf16 %v3237_v44, %v3235_v10  ;;  %v3265_v10 = vld [vmem:[#allocation10 + $0x4d0] sm:$0xff]  ;;  %v3268_v44 = vld [vmem:[#allocation10 + $0x4e8] sm:$0xff] }
 0x5cb   :  { %6686 = vmatpush1.bf16.msra.mxu1 %v6685_v6  ;;  %v8737_v33 = vpop.f32.mrb[66].mxu1  ;;  %v6715_v6 = vpack.c.bf16 %v3242_v7, %v3240_v26  ;;  %v3270_v26 = vld [vmem:[#allocation10 + $0x4f8] sm:$0xff] }
 0x5cc   :  { %6688 = vmatprep.subr.bf16.mxu1 %v6687_v60  ;;  %v8739_v61 = vpop.f32.mrb[67].mxu1  ;;  %v3239_v60 = vld [vmem:[#allocation10 + $0x400] sm:$0xff]  ;;  %v6743_v7 = vpack.c.bf16 %v3270_v26, %v3268_v44 }
 0x5cd   :  { %v6717_v59 = vpack.c.bf16 %v3241_v23, %v3239_v60  ;;  %v3274_v60 = vld [vmem:[#allocation10 + $0x518] sm:$0xff]  ;;  %v3295_v26 = vld [vmem:[#allocation10 + $0x5c0] sm:$0xff] }
 0x5cf   :  { %6690 = vmatpush1.bf16.msra.mxu1 %v6689_v8  ;;  %v8741_v35 = vpop.f32.mrb[68].mxu1 }
 0x5d0   :  { %6692 = vmatprep.subr.bf16.mxu1 %v6691_v50  ;;  %v8743_v25 = vpop.f32.mrb[69].mxu1  ;;  %v6719_v50 = vpack.c.bf16 %v3246_v58, %v3244_v12  ;;  %v3271_v58 = vld [vmem:[#allocation10 + $0x500] sm:$0xff] }
 0x5d3   :  { %6694 = vmatpush1.bf16.msra.mxu1 %v6693_v16  ;;  %v8745_v2 = vpop.f32.mrb[70].mxu1 }
 0x5d4   :  { %6696 = vmatprep.subr.bf16.mxu1 %v6695_v0  ;;  %v8747_v34 = vpop.f32.mrb[71].mxu1  ;;  %v6721_v0 = vpack.c.bf16 %v3245_v41, %v3243_v13  ;;  %v3278_v13 = vld [vmem:[#allocation10 + $0x538] sm:$0xff] }
 0x5d7   :  { %6698 = vmatpush1.bf16.msra.mxu1 %v6697_v3  ;;  %v8749_v55 = vpop.f32.mrb[72].mxu1  ;;  %v3252_v3 = vld [vmem:[#allocation10 + $0x468] sm:$0xff] }
 0x5d8   :  { %6700 = vmatprep.subr.bf16.mxu1 %v6699_v22  ;;  %v8751_v56 = vpop.f32.mrb[73].mxu1  ;;  %v3254_v22 = vld [vmem:[#allocation10 + $0x478] sm:$0xff] }
 0x5db   :  { %6702 = vmatpush1.bf16.msra.mxu1 %v6701_v42  ;;  %v8753_v8 = vpop.f32.mrb[74].mxu1  ;;  %v3256_v42 = vld [vmem:[#allocation10 + $0x488] sm:$0xff] }
 0x5dc   :  { %6704 = vmatprep.subr.bf16.mxu1 %v6703_v4  ;;  %v8756_v16 = vpop.f32.mrb[75].mxu1  ;;  %v3258_v4 = vld [vmem:[#allocation10 + $0x498] sm:$0xff] }
 0x5dd   :  { %v6731_v5 = vpack.c.bf16 %v3258_v4, %v3256_v42  ;;  %v3283_v4 = vld [vmem:[#allocation10 + $0x560] sm:$0xff] }
 0x5df   :  { %6706 = vmatpush1.bf16.msra.mxu1 %v6705_v30  ;;  %v8759_v57 = vpop.f32.mrb[76].mxu1  ;;  %v3262_v30 = vld [vmem:[#allocation10 + $0x4b8] sm:$0xff] }
 0x5e0   :  { %6708 = vmatprep.subr.bf16.mxu1 %v6707_v20  ;;  %v8762_v40 = vpop.f32.mrb[77].mxu1 }
 0x5e3   :  { %6710 = vmatpush1.bf16.msra.mxu1 %v6709_v18  ;;  %v8765_v36 = vpop.f32.mrb[78].mxu1  ;;  %v6739_v18 = vpack.c.bf16 %v3266_v39, %v3264_v32  ;;  %v3291_v39 = vld [vmem:[#allocation10 + $0x5a0] sm:$0xff] }
 0x5e4   :  { %6712 = vmatprep.subr.bf16.mxu1 %v6711_v48  ;;  %v8768_v28 = vpop.f32.mrb[79].mxu1  ;;  %v3263_v48 = vld [vmem:[#allocation10 + $0x4c0] sm:$0xff] }
 0x5e7   :  { %6714 = vmatpush1.bf16.msra.mxu1 %v6713_v27  ;;  %v3267_v27 = vld [vmem:[#allocation10 + $0x4e0] sm:$0xff] }
 0x5e8   :  { %6716 = vmatprep.subr.bf16.mxu1 %v6715_v6  ;;  %v3272_v6 = vld [vmem:[#allocation10 + $0x508] sm:$0xff] }
 0x5e9   :  { %v6747_v12 = vpack.c.bf16 %v3274_v60, %v3272_v6  ;;  %v3299_v60 = vld [vmem:[#allocation10 + $0x5e0] sm:$0xff] }
 0x5ea   :  { %3533 = vmatmul.mubr.f32.vlgmr.msra.gmra.mrb[80].mxu1 %v8719_v29  ;;  %v6725_v29 = vpack.c.bf16 %v3249_v37, %v3247_v62  ;;  %v3282_v62 = vld [vmem:[#allocation10 + $0x558] sm:$0xff] }
 0x5eb   :  { %6718 = vmatpush1.bf16.msra.mxu1 %v6717_v59  ;;  %3538 = vmatprep.mubr.f32.mxu1 %v8723_v31  ;;  %v6727_v31 = vpack.c.bf16 %v3254_v22, %v3252_v3  ;;  %v3273_v59 = vld [vmem:[#allocation10 + $0x510] sm:$0xff]  ;;  %v3279_v22 = vld [vmem:[#allocation10 + $0x540] sm:$0xff] }
 0x5ec   :  { %6720 = vmatprep.subr.bf16.mxu1 %v6719_v50  ;;  %v3276_v50 = vld [vmem:[#allocation10 + $0x528] sm:$0xff]  ;;  %v6749_v41 = vpack.c.bf16 %v3273_v59, %v3271_v58  ;;  %v3306_v58 = vld [vmem:[#allocation10 + $0x618] sm:$0xff] }
 0x5ed   :  { %v6751_v1 = vpack.c.bf16 %v3278_v13, %v3276_v50  ;;  %v3303_v13 = vld [vmem:[#allocation10 + $0x600] sm:$0xff] }
 0x5ee   :  { %3539 = vmatmul.mubr.f32.gmra.mrb[82].mxu1 %v8721_v49  ;;  %v6729_v49 = vpack.c.bf16 %v3253_v19, %v3251_v63  ;;  %v3286_v63 = vld [vmem:[#allocation10 + $0x578] sm:$0xff] }
 0x5ef   :  { %6722 = vmatpush1.bf16.msra.mxu1 %v6721_v0  ;;  %3544 = vmatprep.mubr.f32.mxu1 %v8727_v51  ;;  %v3257_v51 = vld [vmem:[#allocation10 + $0x490] sm:$0xff] }
 0x5f0   :  { %6724 = vmatprep.subr.bf16.mxu1 %v6723_v52  ;;  %v6733_v20 = vpack.c.bf16 %v3257_v51, %v3255_v17  ;;  %v3277_v0 = vld [vmem:[#allocation10 + $0x530] sm:$0xff]  ;;  %v3280_v52 = vld [vmem:[#allocation10 + $0x548] sm:$0xff]  ;;  %v3290_v17 = vld [vmem:[#allocation10 + $0x598] sm:$0xff] }
 0x5f1   :  { %v6753_v37 = vpack.c.bf16 %v3277_v0, %v3275_v45  ;;  %v6755_v3 = vpack.c.bf16 %v3282_v62, %v3280_v52  ;;  %v3310_v45 = vld [vmem:[#allocation10 + $0x638] sm:$0xff]  ;;  %v3307_v62 = vld [vmem:[#allocation10 + $0x620] sm:$0xff] }
 0x5f2   :  { %3545 = vmatmul.mubr.f32.gmra.mrb[84].mxu1 %v8725_v54  ;;  %v6735_v54 = vpack.c.bf16 %v3262_v30, %v3260_v46  ;;  %v3287_v30 = vld [vmem:[#allocation10 + $0x580] sm:$0xff] }
 0x5f3   :  { %6726 = vmatpush1.bf16.msra.mxu1 %v6725_v29  ;;  %3550 = vmatprep.mubr.f32.mxu1 %v8731_v53  ;;  %v6737_v53 = vpack.c.bf16 %v3261_v38, %v3259_v14  ;;  %v3281_v29 = vld [vmem:[#allocation10 + $0x550] sm:$0xff]  ;;  %v3294_v14 = vld [vmem:[#allocation10 + $0x5b8] sm:$0xff] }
 0x5f4   :  { %6728 = vmatprep.subr.bf16.mxu1 %v6727_v31  ;;  %v3284_v31 = vld [vmem:[#allocation10 + $0x568] sm:$0xff]  ;;  %v6757_v19 = vpack.c.bf16 %v3281_v29, %v3279_v22  ;;  %v3314_v22 = vld [vmem:[#allocation10 + $0x658] sm:$0xff] }
 0x5f5   :  { %v6759_v42 = vpack.c.bf16 %v3286_v63, %v3284_v31  ;;  %v3311_v63 = vld [vmem:[#allocation10 + $0x640] sm:$0xff] }
 0x5f6   :  { %3551 = vmatmul.mubr.f32.gmra.mrb[86].mxu1 %v8729_v11  ;;  %v6741_v11 = vpack.c.bf16 %v3265_v10, %v3263_v48  ;;  %v3298_v48 = vld [vmem:[#allocation10 + $0x5d8] sm:$0xff] }
 0x5f7   :  { %6730 = vmatpush1.bf16.msra.mxu1 %v6729_v49  ;;  %3621 = vmatprep.mubr.f32.mxu1 %v8735_v43  ;;  %v3269_v43 = vld [vmem:[#allocation10 + $0x4f0] sm:$0xff] }
 0x5f8   :  { %6732 = vmatprep.subr.bf16.mxu1 %v6731_v5  ;;  %v6745_v23 = vpack.c.bf16 %v3269_v43, %v3267_v27  ;;  %v3285_v49 = vld [vmem:[#allocation10 + $0x570] sm:$0xff]  ;;  %v3288_v5 = vld [vmem:[#allocation10 + $0x588] sm:$0xff]  ;;  %v3302_v27 = vld [vmem:[#allocation10 + $0x5f8] sm:$0xff] }
 0x5f9   :  { %v6761_v51 = vpack.c.bf16 %v3285_v49, %v3283_v4  ;;  %v6763_v46 = vpack.c.bf16 %v3290_v17, %v3288_v5  ;;  %v3318_v4 = vld [vmem:[#allocation10 + $0x678] sm:$0xff]  ;;  %v3315_v17 = vld [vmem:[#allocation10 + $0x660] sm:$0xff] }
 0x5fb   :  { %6734 = vmatpush1.bf16.msra.mxu1 %v6733_v20  ;;  %v3289_v20 = vld [vmem:[#allocation10 + $0x590] sm:$0xff] }
 0x5fc   :  { %6736 = vmatprep.subr.bf16.mxu1 %v6735_v54  ;;  %v3292_v54 = vld [vmem:[#allocation10 + $0x5a8] sm:$0xff]  ;;  %v6765_v38 = vpack.c.bf16 %v3289_v20, %v3287_v30  ;;  %v3319_v20 = vld [vmem:[#allocation10 + $0x680] sm:$0xff] }
 0x5fd   :  { %v6767_v32 = vpack.c.bf16 %v3294_v14, %v3292_v54  ;;  %v3324_v54 = vld [vmem:[#allocation10 + $0x6a8] sm:$0xff]  ;;  %v3326_v14 = vld [vmem:[#allocation10 + $0x6b8] sm:$0xff] }
 0x5ff   :  { %6738 = vmatpush1.bf16.msra.mxu1 %v6737_v53  ;;  %v3293_v53 = vld [vmem:[#allocation10 + $0x5b0] sm:$0xff] }
 0x600   :  { %6740 = vmatprep.subr.bf16.mxu1 %v6739_v18  ;;  %v3296_v18 = vld [vmem:[#allocation10 + $0x5c8] sm:$0xff]  ;;  %v6769_v10 = vpack.c.bf16 %v3293_v53, %v3291_v39  ;;  %v3330_v53 = vld [vmem:[#allocation10 + $0x6d8] sm:$0xff] }
 0x601   :  { %v6771_v44 = vpack.c.bf16 %v3298_v48, %v3296_v18  ;;  %v3328_v39 = vld [vmem:[#allocation10 + $0x6c8] sm:$0xff]  ;;  %v3327_v48 = vld [vmem:[#allocation10 + $0x6c0] sm:$0xff] }
 0x602   :  { %v6803_v18 = vpack.c.bf16 %v3330_v53, %v3328_v39  ;;  %v3361_v39 = vld [vmem:[#allocation10 + $0x7d0] sm:$0xff]  ;;  %v3364_v53 = vld [vmem:[#allocation10 + $0x7e8] sm:$0xff] }
 0x603   :  { %6742 = vmatpush1.bf16.msra.mxu1 %v6741_v11  ;;  %v3297_v11 = vld [vmem:[#allocation10 + $0x5d0] sm:$0xff] }
 0x604   :  { %6744 = vmatprep.subr.bf16.mxu1 %v6743_v7  ;;  %v3300_v7 = vld [vmem:[#allocation10 + $0x5e8] sm:$0xff]  ;;  %v6773_v43 = vpack.c.bf16 %v3297_v11, %v3295_v26  ;;  %v3334_v26 = vld [vmem:[#allocation10 + $0x6f8] sm:$0xff] }
 0x605   :  { %v6775_v6 = vpack.c.bf16 %v3302_v27, %v3300_v7  ;;  %v3331_v7 = vld [vmem:[#allocation10 + $0x6e0] sm:$0xff]  ;;  %v3336_v27 = vld [vmem:[#allocation10 + $0x708] sm:$0xff] }
 0x607   :  { %6746 = vmatpush1.bf16.msra.mxu1 %v6745_v23  ;;  %v3301_v23 = vld [vmem:[#allocation10 + $0x5f0] sm:$0xff] }
 0x608   :  { %6748 = vmatprep.subr.bf16.mxu1 %v6747_v12  ;;  %v3304_v12 = vld [vmem:[#allocation10 + $0x608] sm:$0xff]  ;;  %v6777_v59 = vpack.c.bf16 %v3301_v23, %v3299_v60  ;;  %v3335_v23 = vld [vmem:[#allocation10 + $0x700] sm:$0xff] }
 0x609   :  { %v6779_v50 = vpack.c.bf16 %v3306_v58, %v3304_v12  ;;  %v3337_v12 = vld [vmem:[#allocation10 + $0x710] sm:$0xff]  ;;  %v3340_v58 = vld [vmem:[#allocation10 + $0x728] sm:$0xff] }
 0x60b   :  { %6750 = vmatpush1.bf16.msra.mxu1 %v6749_v41  ;;  %v3305_v41 = vld [vmem:[#allocation10 + $0x610] sm:$0xff] }
 0x60c   :  { %6752 = vmatprep.subr.bf16.mxu1 %v6751_v1  ;;  %v3308_v1 = vld [vmem:[#allocation10 + $0x628] sm:$0xff]  ;;  %v6781_v0 = vpack.c.bf16 %v3305_v41, %v3303_v13  ;;  %v3339_v41 = vld [vmem:[#allocation10 + $0x720] sm:$0xff] }
 0x60d   :  { %v6783_v52 = vpack.c.bf16 %v3310_v45, %v3308_v1  ;;  %v3341_v1 = vld [vmem:[#allocation10 + $0x730] sm:$0xff]  ;;  %v3344_v45 = vld [vmem:[#allocation10 + $0x748] sm:$0xff] }
 0x60f   :  { %6754 = vmatpush1.bf16.msra.mxu1 %v6753_v37  ;;  %v3309_v37 = vld [vmem:[#allocation10 + $0x630] sm:$0xff] }
 0x610   :  { %6756 = vmatprep.subr.bf16.mxu1 %v6755_v3  ;;  %v3312_v3 = vld [vmem:[#allocation10 + $0x648] sm:$0xff]  ;;  %v6785_v29 = vpack.c.bf16 %v3309_v37, %v3307_v62  ;;  %v3343_v37 = vld [vmem:[#allocation10 + $0x740] sm:$0xff] }
 0x611   :  { %v6787_v31 = vpack.c.bf16 %v3314_v22, %v3312_v3  ;;  %v3345_v3 = vld [vmem:[#allocation10 + $0x750] sm:$0xff]  ;;  %v3348_v22 = vld [vmem:[#allocation10 + $0x768] sm:$0xff] }
 0x613   :  { %6758 = vmatpush1.bf16.msra.mxu1 %v6757_v19  ;;  %v3313_v19 = vld [vmem:[#allocation10 + $0x650] sm:$0xff] }
 0x614   :  { %6760 = vmatprep.subr.bf16.mxu1 %v6759_v42  ;;  %v3316_v42 = vld [vmem:[#allocation10 + $0x668] sm:$0xff]  ;;  %v6789_v49 = vpack.c.bf16 %v3313_v19, %v3311_v63  ;;  %v3347_v19 = vld [vmem:[#allocation10 + $0x760] sm:$0xff] }
 0x615   :  { %v6791_v5 = vpack.c.bf16 %v3318_v4, %v3316_v42  ;;  %v3349_v42 = vld [vmem:[#allocation10 + $0x770] sm:$0xff]  ;;  %v3352_v4 = vld [vmem:[#allocation10 + $0x788] sm:$0xff] }
 0x617   :  { %6762 = vmatpush1.bf16.msra.mxu1 %v6761_v51  ;;  %v3320_v51 = vld [vmem:[#allocation10 + $0x688] sm:$0xff] }
 0x618   :  { %6764 = vmatprep.subr.bf16.mxu1 %v6763_v46  ;;  %v3322_v46 = vld [vmem:[#allocation10 + $0x698] sm:$0xff] }
 0x619   :  { %v6795_v30 = vpack.c.bf16 %v3322_v46, %v3320_v51  ;;  %v3353_v51 = vld [vmem:[#allocation10 + $0x790] sm:$0xff]  ;;  %v3356_v46 = vld [vmem:[#allocation10 + $0x7a8] sm:$0xff] }
 0x61b   :  { %6766 = vmatpush1.bf16.msra.mxu1 %v6765_v38  ;;  %v6799_v38 = vpack.c.bf16 %v3326_v14, %v3324_v54  ;;  %v3357_v54 = vld [vmem:[#allocation10 + $0x7b0] sm:$0xff]  ;;  %v3360_v14 = vld [vmem:[#allocation10 + $0x7c8] sm:$0xff] }
 0x61c   :  { %6768 = vmatprep.subr.bf16.mxu1 %v6767_v32  ;;  %v3323_v32 = vld [vmem:[#allocation10 + $0x6a0] sm:$0xff] }
 0x61f   :  { %6770 = vmatpush1.bf16.msra.mxu1 %v6769_v10  ;;  %v3329_v10 = vld [vmem:[#allocation10 + $0x6d0] sm:$0xff] }
 0x620   :  { %6772 = vmatprep.subr.bf16.mxu1 %v6771_v44  ;;  %v3332_v44 = vld [vmem:[#allocation10 + $0x6e8] sm:$0xff] }
 0x621   :  { %v6807_v11 = vpack.c.bf16 %v3334_v26, %v3332_v44  ;;  %v3365_v44 = vld [vmem:[#allocation10 + $0x7f0] sm:$0xff] }
 0x623   :  { %6774 = vmatpush1.bf16.msra.mxu1 %v6773_v43  ;;  %v3338_v43 = vld [vmem:[#allocation10 + $0x718] sm:$0xff] }
 0x624   :  { %6776 = vmatprep.subr.bf16.mxu1 %v6775_v6  ;;  %v6811_v60 = vpack.c.bf16 %v3338_v43, %v3336_v27 }
 0x627   :  { %6778 = vmatpush1.bf16.msra.mxu1 %v6777_v59  ;;  %v3342_v59 = vld [vmem:[#allocation10 + $0x738] sm:$0xff] }
 0x628   :  { %6780 = vmatprep.subr.bf16.mxu1 %v6779_v50  ;;  %v6813_v50 = vpack.c.bf16 %v3337_v12, %v3335_v23  ;;  %v6815_v13 = vpack.c.bf16 %v3342_v59, %v3340_v58 }
 0x62a   :  { %3622 = vmatmul.mubr.f32.vlgmr.msra.gmra.mrb[80].mxu1 %v8733_v24  ;;  %v3317_v24 = vld [vmem:[#allocation10 + $0x670] sm:$0xff] }
 0x62b   :  { %6782 = vmatpush1.bf16.msra.mxu1 %v6781_v0  ;;  %3627 = vmatprep.mubr.f32.mxu1 %v8739_v61  ;;  %v6793_v61 = vpack.c.bf16 %v3317_v24, %v3315_v17  ;;  %v3346_v0 = vld [vmem:[#allocation10 + $0x758] sm:$0xff]  ;;  %v3351_v24 = vld [vmem:[#allocation10 + $0x780] sm:$0xff] }
 0x62c   :  { %6784 = vmatprep.subr.bf16.mxu1 %v6783_v52  ;;  %v6817_v52 = vpack.c.bf16 %v3341_v1, %v3339_v41  ;;  %v6819_v62 = vpack.c.bf16 %v3346_v0, %v3344_v45 }
 0x62e   :  { %3628 = vmatmul.mubr.f32.gmra.mrb[82].mxu1 %v8737_v33  ;;  %v3321_v33 = vld [vmem:[#allocation10 + $0x690] sm:$0xff] }
 0x62f   :  { %6786 = vmatpush1.bf16.msra.mxu1 %v6785_v29  ;;  %3633 = vmatprep.mubr.f32.mxu1 %v8743_v25  ;;  %v6797_v25 = vpack.c.bf16 %v3321_v33, %v3319_v20  ;;  %v3350_v29 = vld [vmem:[#allocation10 + $0x778] sm:$0xff]  ;;  %v3355_v33 = vld [vmem:[#allocation10 + $0x7a0] sm:$0xff] }
 0x630   :  { %6788 = vmatprep.subr.bf16.mxu1 %v6787_v31  ;;  %v6821_v31 = vpack.c.bf16 %v3345_v3, %v3343_v37  ;;  %v6823_v63 = vpack.c.bf16 %v3350_v29, %v3348_v22  ;;  %v3743_v3 = vld [vmem:[#allocation13] sm:$0xff]  ;;  %v3744_v22 = vld [vmem:[#allocation13 + $0x8] sm:$0xff]  ;;  %v3830_v29 = vld [vmem:[#allocation13 + $0x10] sm:$0xff] }
 0x632   :  { %3634 = vmatmul.mubr.f32.gmra.mrb[84].mxu1 %v8741_v35  ;;  %v3325_v35 = vld [vmem:[#allocation10 + $0x6b0] sm:$0xff] }
 0x633   :  { %6790 = vmatpush1.bf16.msra.mxu1 %v6789_v49  ;;  %3639 = vmatprep.mubr.f32.mxu1 %v8747_v34  ;;  %v6801_v34 = vpack.c.bf16 %v3325_v35, %v3323_v32  ;;  %v3354_v49 = vld [vmem:[#allocation10 + $0x798] sm:$0xff]  ;;  %v3359_v35 = vld [vmem:[#allocation10 + $0x7c0] sm:$0xff] }
 0x634   :  { %6792 = vmatprep.subr.bf16.mxu1 %v6791_v5  ;;  %v6825_v5 = vpack.c.bf16 %v3349_v42, %v3347_v19  ;;  %v6827_v17 = vpack.c.bf16 %v3354_v49, %v3352_v4  ;;  %v3831_v19 = vld [vmem:[#allocation13 + $0x18] sm:$0xff]  ;;  %v4001_v4 = vld [vmem:[#allocation14] sm:$0xff] }
 0x635   :  { %v4002_v49 = vld [vmem:[#allocation14 + $0x8] sm:$0xff] }
 0x636   :  { %3640 = vmatmul.mubr.f32.gmra.mrb[86].mxu1 %v8745_v2  ;;  %v6805_v2 = vpack.c.bf16 %v3329_v10, %v3327_v48  ;;  %v3363_v10 = vld [vmem:[#allocation10 + $0x7e0] sm:$0xff] }
 0x637   :  { %6794 = vmatpush1.bf16.msra.mxu1 %v6793_v61  ;;  %3710 = vmatprep.mubr.f32.mxu1 %v8751_v56  ;;  %v3333_v56 = vld [vmem:[#allocation10 + $0x6f0] sm:$0xff]  ;;  %v3358_v61 = vld [vmem:[#allocation10 + $0x7b8] sm:$0xff]  ;;  %v6841_v26 = vpack.c.bf16 %v3365_v44, %v3363_v10 }
 0x638   :  { %6796 = vmatprep.subr.bf16.mxu1 %v6795_v30  ;;  %v6809_v6 = vpack.c.bf16 %v3333_v56, %v3331_v7  ;;  %v6829_v30 = vpack.c.bf16 %v3353_v51, %v3351_v24  ;;  %v6831_v20 = vpack.c.bf16 %v3358_v61, %v3356_v46  ;;  %v3916_v24 = vld [vmem:[#allocation13 + $0x20] sm:$0xff]  ;;  %v6869_v51 = vpack.c.bf16 %v4002_v49, %v4001_v4  ;;  %v4025_v10 = vld [vmem:[#allocation14 + $0xc0] sm:$0xff]  ;;  %v4026_v44 = vld [vmem:[#allocation14 + $0xc8] sm:$0xff] }
 0x639   :  { %v4003_v61 = vld [vmem:[#allocation14 + $0x10] sm:$0xff] }
 0x63b   :  { %6798 = vmatpush1.bf16.msra.mxu1 %v6797_v25  ;;  %v3362_v25 = vld [vmem:[#allocation10 + $0x7d8] sm:$0xff] }
 0x63c   :  { %6800 = vmatprep.subr.bf16.mxu1 %v6799_v38  ;;  %v6833_v38 = vpack.c.bf16 %v3357_v54, %v3355_v33  ;;  %v6835_v32 = vpack.c.bf16 %v3362_v25, %v3360_v14  ;;  %v4022_v33 = vld [vmem:[#allocation14 + $0xa8] sm:$0xff]  ;;  %v3917_v54 = vld [vmem:[#allocation13 + $0x28] sm:$0xff] }
 0x63f   :  { %6802 = vmatpush1.bf16.msra.mxu1 %v6801_v34  ;;  %v3366_v34 = vld [vmem:[#allocation10 + $0x7f8] sm:$0xff] }
 0x640   :  { %6804 = vmatprep.subr.bf16.mxu1 %v6803_v18  ;;  %v6837_v18 = vpack.c.bf16 %v3361_v39, %v3359_v35  ;;  %v6839_v48 = vpack.c.bf16 %v3366_v34, %v3364_v53  ;;  %v4023_v35 = vld [vmem:[#allocation14 + $0xb0] sm:$0xff]  ;;  %v4024_v39 = vld [vmem:[#allocation14 + $0xb8] sm:$0xff] }
 0x641   :  { %v6879_v34 = vpack.c.bf16 %v4024_v39, %v4023_v35 }
 0x643   :  { %6806 = vmatpush1.bf16.msra.mxu1 %v6805_v2  ;;  %v3367_v2 = vld [vmem:[#allocation11] sm:$0x3] }
 0x644   :  { %6808 = vmatprep.subr.bf16.mxu1 %v6807_v11  ;;  %v3372_v11 = vrot.slane %v3367_v2, %v1859_v21 }
 0x647   :  { %6810 = vmatpush1.bf16.msra.mxu1 %v6809_v6 }
 0x648   :  { %6812 = vmatprep.subr.bf16.mxu1 %v6811_v60 }
 0x64b   :  { %6814 = vmatpush1.bf16.msra.mxu1 %v6813_v50 }
 0x64c   :  { %6816 = vmatprep.subr.bf16.mxu1 %v6815_v13 }
 0x64f   :  { %6818 = vmatpush1.bf16.msra.mxu1 %v6817_v52 }
 0x650   :  { %6820 = vmatprep.subr.bf16.mxu1 %v6819_v62 }
 0x653   :  { %6822 = vmatpush1.bf16.msra.mxu1 %v6821_v31  ;;  %v4017_v31 = vld [vmem:[#allocation14 + $0x80] sm:$0xff] }
 0x654   :  { %6824 = vmatprep.subr.bf16.mxu1 %v6823_v63  ;;  %v4018_v63 = vld [vmem:[#allocation14 + $0x88] sm:$0xff] }
 0x655   :  { %v6867_v42 = vpack.c.bf16 %v4018_v63, %v4017_v31  ;;  %v4036_v31 = vld [vmem:[#allocation14 + $0x118] sm:$0xff]  ;;  %v4053_v63 = vld [vmem:[#allocation14 + $0x1a0] sm:$0xff] }
 0x657   :  { %6826 = vmatpush1.bf16.msra.mxu1 %v6825_v5  ;;  %v4019_v5 = vld [vmem:[#allocation14 + $0x90] sm:$0xff] }
 0x658   :  { %6828 = vmatprep.subr.bf16.mxu1 %v6827_v17  ;;  %v4020_v17 = vld [vmem:[#allocation14 + $0x98] sm:$0xff] }
 0x659   :  { %v6871_v46 = vpack.c.bf16 %v4020_v17, %v4019_v5  ;;  %v4037_v5 = vld [vmem:[#allocation14 + $0x120] sm:$0xff]  ;;  %v4038_v17 = vld [vmem:[#allocation14 + $0x128] sm:$0xff] }
 0x65b   :  { %6830 = vmatpush1.bf16.msra.mxu1 %v6829_v30  ;;  %v4004_v30 = vld [vmem:[#allocation14 + $0x18] sm:$0xff] }
 0x65c   :  { %6832 = vmatprep.subr.bf16.mxu1 %v6831_v20  ;;  %v4021_v20 = vld [vmem:[#allocation14 + $0xa0] sm:$0xff]  ;;  %v6873_v14 = vpack.c.bf16 %v4004_v30, %v4003_v61  ;;  %v6909_v61 = vpack.c.bf16 %v4038_v17, %v4037_v5  ;;  %v4071_v5 = vld [vmem:[#allocation14 + $0x230] sm:$0xff]  ;;  %v4072_v17 = vld [vmem:[#allocation14 + $0x238] sm:$0xff] }
 0x65d   :  { %v6875_v25 = vpack.c.bf16 %v4022_v33, %v4021_v20  ;;  %v4039_v33 = vld [vmem:[#allocation14 + $0x130] sm:$0xff] }
 0x65f   :  { %6834 = vmatpush1.bf16.msra.mxu1 %v6833_v38  ;;  %v4005_v38 = vld [vmem:[#allocation14 + $0x20] sm:$0xff] }
 0x660   :  { %6836 = vmatprep.subr.bf16.mxu1 %v6835_v32  ;;  %v4006_v32 = vld [vmem:[#allocation14 + $0x28] sm:$0xff] }
 0x661   :  { %v6877_v53 = vpack.c.bf16 %v4006_v32, %v4005_v38  ;;  %v4058_v38 = vld [vmem:[#allocation14 + $0x1c8] sm:$0xff] }
 0x663   :  { %6838 = vmatpush1.bf16.msra.mxu1 %v6837_v18  ;;  %v4007_v18 = vld [vmem:[#allocation14 + $0x30] sm:$0xff] }
 0x664   :  { %6840 = vmatprep.subr.bf16.mxu1 %v6839_v48  ;;  %v4008_v48 = vld [vmem:[#allocation14 + $0x38] sm:$0xff] }
 0x667   :  { %6842 = vmatpush1.bf16.msra.mxu1 %v6841_v26  ;;  %v6881_v26 = vpack.c.bf16 %v4008_v48, %v4007_v18  ;;  %v4059_v48 = vld [vmem:[#allocation14 + $0x1d0] sm:$0xff] }
 0x66a   :  { %3711 = vmatmul.mubr.f32.vlgmr.msra.gmra.mrb[80].mxu1 %v8749_v55  ;;  %v3376_v55 = vrot.slane %v3367_v2, %v1863_v15  ;;  %v6883_v2 = vpack.c.bf16 %v4026_v44, %v4025_v10  ;;  %v4060_v10 = vld [vmem:[#allocation14 + $0x1d8] sm:$0xff] }
 0x66b   :  { %3716 = vmatprep.mubr.f32.mxu1 %v8756_v16 }
 0x66e   :  { %3717 = vmatmul.mubr.f32.gmra.mrb[82].mxu1 %v8753_v8 }
 0x66f   :  { %3722 = vmatprep.mubr.f32.mxu1 %v8762_v40 }
 0x672   :  { %3723 = vmatmul.mubr.f32.gmra.mrb[84].mxu1 %v8759_v57 }
 0x673   :  { %3728 = vmatprep.mubr.f32.mxu1 %v8768_v28 }
 0x676   :  { %3729 = vmatmul.mubr.f32.gmra.mrb[86].mxu1 %v8765_v36 }
 0x677   :  { %3816 = vmatprep.mubr.f32.mxu1 %v7634_v47 }
 0x73d   :  { %v3712_v7 = vpop.f32.mrb[80].mxu1 }
 0x73e   :  { %v3714_v16 = vpop.f32.mrb[81].mxu1  ;;  %v7122_v8 = vadd.f32 %v3712_v7, %v3372_v11  ;;  %v4010_v7 = vld [vmem:[#allocation14 + $0x48] sm:$0xff] }
 0x73f   :  { %v7123_v56 = vadd.f32 %v3714_v16, %v3376_v55  ;;  %v4028_v16 = vld [vmem:[#allocation14 + $0xd8] sm:$0xff] }
 0x740   :  { %v3735_v28 = vmax.f32 %v7122_v8, 0.0 }
 0x741   :  { %v3718_v40 = vpop.f32.mrb[82].mxu1  ;;  %v3736_v36 = vmax.f32 %v7123_v56, 0.0 }
 0x742   :  { %v7124_v27 = vadd.f32 %v3718_v40, %v3372_v11  ;;  %v3720_v57 = vpop.f32.mrb[83].mxu1  ;;  %v4011_v40 = vld [vmem:[#allocation14 + $0x50] sm:$0xff] }
 0x743   :  { %v7125_v43 = vadd.f32 %v3720_v57, %v3376_v55  ;;  %v4029_v57 = vld [vmem:[#allocation14 + $0xe0] sm:$0xff] }
 0x744   :  { %v3737_v6 = vmax.f32 %v7124_v27, 0.0  ;;  %v4012_v27 = vld [vmem:[#allocation14 + $0x58] sm:$0xff] }
 0x745   :  { %v3738_v60 = vmax.f32 %v7125_v43, 0.0  ;;  %v3724_v23 = vpop.f32.mrb[84].mxu1  ;;  %v4030_v43 = vld [vmem:[#allocation14 + $0xe8] sm:$0xff] }
 0x746   :  { %v6845_v12 = vpack.c.bf16 %v3737_v6, %v3735_v28  ;;  %v3726_v58 = vpop.f32.mrb[85].mxu1  ;;  %v7126_v21 = vadd.f32 %v3724_v23, %v3372_v11  ;;  %v6889_v28 = vpack.c.bf16 %v4012_v27, %v4011_v40  ;;  %v6891_v6 = vpack.c.bf16 %v4030_v43, %v4029_v57  ;;  %v4031_v23 = vld [vmem:[#allocation14 + $0xf0] sm:$0xff]  ;;  %v4045_v57 = vld [vmem:[#allocation14 + $0x160] sm:$0xff]  ;;  %v4046_v43 = vld [vmem:[#allocation14 + $0x168] sm:$0xff] }
 0x747   :  { %v6843_v59 = vpack.c.bf16 %v3738_v60, %v3736_v36  ;;  %v7127_v50 = vadd.f32 %v3726_v58, %v3376_v55  ;;  %v4013_v36 = vld [vmem:[#allocation14 + $0x60] sm:$0xff]  ;;  %v4014_v60 = vld [vmem:[#allocation14 + $0x68] sm:$0xff] }
 0x748   :  { %v3739_v1 = vmax.f32 %v7126_v21, 0.0  ;;  %v6893_v58 = vpack.c.bf16 %v4014_v60, %v4013_v36  ;;  %v4015_v21 = vld [vmem:[#allocation14 + $0x70] sm:$0xff]  ;;  %v4064_v36 = vld [vmem:[#allocation14 + $0x1f8] sm:$0xff]  ;;  %v6925_v60 = vpack.c.bf16 %v4046_v43, %v4045_v57 }
 0x749   :  { %v3730_v13 = vpop.f32.mrb[86].mxu1  ;;  %6844 = vmatprep.subr.bf16.mxu1 %v6843_v59  ;;  %v3740_v0 = vmax.f32 %v7127_v50, 0.0  ;;  %v4016_v50 = vld [vmem:[#allocation14 + $0x78] sm:$0xff]  ;;  %v4331_v57 = vld [vmem:[#allocation19] sm:$0xff] }
 0x74a   :  { %v7128_v9 = vadd.f32 %v3730_v13, %v3372_v11  ;;  %v3732_v15 = vpop.f32.mrb[87].mxu1  ;;  %6846 = vmatpush1.bf16.msra.mxu1 %v6845_v12  ;;  %v4009_v11 = vld [vmem:[#allocation14 + $0x40] sm:$0xff]  ;;  %v6897_v13 = vpack.c.bf16 %v4016_v50, %v4015_v21  ;;  %v4082_v21 = vld [vmem:[#allocation14 + $0x288] sm:$0xff]  ;;  %v4336_v43 = vld [vmem:[#allocation19 + $0x28] sm:$0xff] }
 0x74b   :  { %v7129_v41 = vadd.f32 %v3732_v15, %v3376_v55  ;;  %v4027_v55 = vld [vmem:[#allocation14 + $0xd0] sm:$0xff]  ;;  %v6885_v8 = vpack.c.bf16 %v4010_v7, %v4009_v11  ;;  %v4050_v15 = vld [vmem:[#allocation14 + $0x188] sm:$0xff]  ;;  %v4044_v7 = vld [vmem:[#allocation14 + $0x158] sm:$0xff] }
 0x74c   :  { %v3741_v45 = vmax.f32 %v7128_v9, 0.0  ;;  %v6887_v56 = vpack.c.bf16 %v4028_v16, %v4027_v55  ;;  %v4049_v9 = vld [vmem:[#allocation14 + $0x180] sm:$0xff]  ;;  %v4043_v11 = vld [vmem:[#allocation14 + $0x150] sm:$0xff] }
 0x74d   :  { %v3742_v52 = vmax.f32 %v7129_v41, 0.0  ;;  %v6899_v41 = vpack.c.bf16 %v4050_v15, %v4049_v9  ;;  %v4061_v16 = vld [vmem:[#allocation14 + $0x1e0] sm:$0xff]  ;;  %v4066_v15 = vld [vmem:[#allocation14 + $0x208] sm:$0xff] }
 0x74e   :  { %v6849_v62 = vpack.c.bf16 %v3741_v45, %v3739_v1  ;;  %v4033_v1 = vld [vmem:[#allocation14 + $0x100] sm:$0xff]  ;;  %v4034_v45 = vld [vmem:[#allocation14 + $0x108] sm:$0xff] }
 0x74f   :  { %v6847_v37 = vpack.c.bf16 %v3742_v52, %v3740_v0  ;;  %v4051_v0 = vld [vmem:[#allocation14 + $0x190] sm:$0xff]  ;;  %v4052_v52 = vld [vmem:[#allocation14 + $0x198] sm:$0xff]  ;;  %v4065_v9 = vld [vmem:[#allocation14 + $0x200] sm:$0xff] }
 0x751   :  { %6848 = vmatprep.subr.bf16.mxu1 %v6847_v37 }
 0x752   :  { %6850 = vmatpush1.bf16.msra.mxu1 %v6849_v62 }
 0x753   :  { %6852 = vmatprep.subr.bf16.mxu1 %v6843_v59 }
 0x755   :  { %5298 = vmatmul.mubr.msk.f32.vlgmr.msra.gmra.mrb[88].mxu1 %vm3745_vm2, %v3743_v3 }
 0x756   :  { %6854 = vmatpush1.bf16.msra.mxu1 %v6845_v12  ;;  %3822 = vmatprep.mubr.f32.mxu1 %v7634_v47 }
 0x757   :  { %6856 = vmatprep.subr.bf16.mxu1 %v6847_v37 }
 0x759   :  { %5299 = vmatmul.mubr.msk.f32.gmra.mrb[90].mxu1 %vm3745_vm2, %v3744_v22  ;;  %v6903_v22 = vpack.c.bf16 %v4052_v52, %v4051_v0  ;;  %v4067_v52 = vld [vmem:[#allocation14 + $0x210] sm:$0xff] }
 0x75a   :  { %6858 = vmatpush1.bf16.msra.mxu1 %v6849_v62  ;;  %3902 = vmatprep.mubr.f32.mxu1 %v7634_v47 }
 0x75b   :  { %6860 = vmatprep.subr.bf16.mxu1 %v6843_v59 }
 0x75d   :  { %5300 = vmatmul.mubr.msk.f32.vlgmr.msra.gmra.mrb[92].mxu1 %vm3745_vm2, %v3830_v29  ;;  %v4035_v29 = vld [vmem:[#allocation14 + $0x110] sm:$0xff] }
 0x75e   :  { %6862 = vmatpush1.bf16.msra.mxu1 %v6845_v12  ;;  %3908 = vmatprep.mubr.f32.mxu1 %v7634_v47  ;;  %v4032_v12 = vld [vmem:[#allocation14 + $0xf8] sm:$0xff] }
 0x75f   :  { %6864 = vmatprep.subr.bf16.mxu1 %v6847_v37  ;;  %v6895_v59 = vpack.c.bf16 %v4032_v12, %v4031_v23  ;;  %v6901_v37 = vpack.c.bf16 %v4034_v45, %v4033_v1  ;;  %v4047_v12 = vld [vmem:[#allocation14 + $0x170] sm:$0xff]  ;;  %v4084_v1 = vld [vmem:[#allocation14 + $0x298] sm:$0xff]  ;;  %v6933_v45 = vpack.c.bf16 %v4066_v15, %v4065_v9 }
 0x760   :  { %v4356_v15 = vld [vmem:[#allocation19 + $0xc8] sm:$0xff] }
 0x761   :  { %5301 = vmatmul.mubr.msk.f32.gmra.mrb[94].mxu1 %vm3745_vm2, %v3831_v19  ;;  %v4054_v19 = vld [vmem:[#allocation14 + $0x1a8] sm:$0xff] }
 0x762   :  { %6866 = vmatpush1.bf16.msra.mxu1 %v6849_v62  ;;  %3988 = vmatprep.mubr.f32.mxu1 %v7634_v47  ;;  %v6907_v49 = vpack.c.bf16 %v4054_v19, %v4053_v63  ;;  %v4070_v63 = vld [vmem:[#allocation14 + $0x228] sm:$0xff]  ;;  %v4087_v19 = vld [vmem:[#allocation14 + $0x2b0] sm:$0xff] }
 0x763   :  { %6868 = vmatprep.subr.bf16.mxu1 %v6867_v42  ;;  %v6905_v42 = vpack.c.bf16 %v4036_v31, %v4035_v29  ;;  %v4069_v31 = vld [vmem:[#allocation14 + $0x220] sm:$0xff] }
 0x765   :  { %5302 = vmatmul.mubr.msk.f32.vlgmr.msra.gmra.mrb[96].mxu1 %vm3745_vm2, %v3916_v24 }
 0x766   :  { %3994 = vmatprep.mubr.f32.mxu1 %v7634_v47  ;;  %6870 = vmatpush3.bf16.msra.mxu1 %v6869_v51  ;;  %v4055_v51 = vld [vmem:[#allocation14 + $0x1b0] sm:$0xff] }
 0x767   :  { %6872 = vmatprep.subr.bf16.mxu1 %v6871_v46  ;;  %v4056_v46 = vld [vmem:[#allocation14 + $0x1b8] sm:$0xff] }
 0x768   :  { %v6911_v20 = vpack.c.bf16 %v4056_v46, %v4055_v51  ;;  %v4090_v51 = vld [vmem:[#allocation14 + $0x2c8] sm:$0xff]  ;;  %v6945_v46 = vpack.c.bf16 %v4072_v17, %v4071_v5 }
 0x769   :  { %5303 = vmatmul.mubr.msk.f32.gmra.mrb[98].mxu1 %vm3745_vm2, %v3917_v54  ;;  %v4040_v54 = vld [vmem:[#allocation14 + $0x138] sm:$0xff] }
 0x76a   :  { %6874 = vmatpush3.bf16.msra.mxu1 %v6873_v14  ;;  %v6913_v32 = vpack.c.bf16 %v4040_v54, %v4039_v33  ;;  %v4091_v33 = vld [vmem:[#allocation14 + $0x2d0] sm:$0xff]  ;;  %v4092_v54 = vld [vmem:[#allocation14 + $0x2d8] sm:$0xff] }
 0x76b   :  { %6876 = vmatprep.subr.bf16.mxu1 %v6875_v25  ;;  %v4057_v25 = vld [vmem:[#allocation14 + $0x1c0] sm:$0xff] }
 0x76c   :  { %v6915_v39 = vpack.c.bf16 %v4058_v38, %v4057_v25  ;;  %v6951_v25 = vpack.c.bf16 %v4092_v54, %v4091_v33  ;;  %v4075_v38 = vld [vmem:[#allocation14 + $0x250] sm:$0xff] }
 0x76d   :  { %v4380_v33 = vld [vmem:[#allocation19 + $0x188] sm:$0xff] }
 0x76e   :  { %6878 = vmatpush3.bf16.msra.mxu1 %v6877_v53  ;;  %v4041_v53 = vld [vmem:[#allocation14 + $0x140] sm:$0xff] }
 0x76f   :  { %6880 = vmatprep.subr.bf16.mxu1 %v6879_v34  ;;  %v4042_v34 = vld [vmem:[#allocation14 + $0x148] sm:$0xff] }
 0x770   :  { %v6917_v44 = vpack.c.bf16 %v4042_v34, %v4041_v53 }
 0x772   :  { %6882 = vmatpush3.bf16.msra.mxu1 %v6881_v26 }
 0x773   :  { %6884 = vmatprep.subr.bf16.mxu1 %v6883_v2  ;;  %v6919_v2 = vpack.c.bf16 %v4060_v10, %v4059_v48  ;;  %v4078_v48 = vld [vmem:[#allocation14 + $0x268] sm:$0xff]  ;;  %v4095_v10 = vld [vmem:[#allocation14 + $0x2f0] sm:$0xff] }
 0x776   :  { %6886 = vmatpush3.bf16.msra.mxu1 %v6885_v8  ;;  %v4062_v8 = vld [vmem:[#allocation14 + $0x1e8] sm:$0xff] }
 0x777   :  { %6888 = vmatprep.subr.bf16.mxu1 %v6887_v56  ;;  %v6921_v56 = vpack.c.bf16 %v4044_v7, %v4043_v11  ;;  %v6923_v27 = vpack.c.bf16 %v4062_v8, %v4061_v16  ;;  %v4079_v7 = vld [vmem:[#allocation14 + $0x270] sm:$0xff] }
 0x778   :  { %v4332_v8 = vld [vmem:[#allocation19 + $0x8] sm:$0xff] }
 0x77a   :  { %6890 = vmatpush3.bf16.msra.mxu1 %v6889_v28 }
 0x77b   :  { %6892 = vmatprep.subr.bf16.mxu1 %v6891_v6  ;;  %v4063_v6 = vld [vmem:[#allocation14 + $0x1f0] sm:$0xff] }
 0x77c   :  { %v6927_v23 = vpack.c.bf16 %v4064_v36, %v4063_v6  ;;  %v6965_v6 = vpack.c.bf16 %v4336_v43, %v4331_v57  ;;  %v4342_v36 = vld [vmem:[#allocation19 + $0x58] sm:$0xff]  ;;  %v4400_v43 = vld [vmem:[#allocation19 + $0x228] sm:$0xff] }
 0x77e   :  { %6894 = vmatpush3.bf16.msra.mxu1 %v6893_v58  ;;  %v4048_v58 = vld [vmem:[#allocation14 + $0x178] sm:$0xff] }
 0x77f   :  { %6896 = vmatprep.subr.bf16.mxu1 %v6895_v59  ;;  %v4081_v59 = vld [vmem:[#allocation14 + $0x280] sm:$0xff]  ;;  %v6929_v50 = vpack.c.bf16 %v4048_v58, %v4047_v12 }
 0x780   :  { %v4346_v58 = vld [vmem:[#allocation19 + $0x78] sm:$0xff] }
 0x782   :  { %6898 = vmatpush3.bf16.msra.mxu1 %v6897_v13  ;;  %v6931_v13 = vpack.c.bf16 %v4082_v21, %v4081_v59  ;;  %v4340_v59 = vld [vmem:[#allocation19 + $0x48] sm:$0xff] }
 0x783   :  { %6900 = vmatprep.subr.bf16.mxu1 %v6899_v41  ;;  %v4083_v41 = vld [vmem:[#allocation14 + $0x290] sm:$0xff] }
 0x784   :  { %v6935_v0 = vpack.c.bf16 %v4084_v1, %v4083_v41  ;;  %v4345_v41 = vld [vmem:[#allocation19 + $0x70] sm:$0xff]  ;;  %v4350_v1 = vld [vmem:[#allocation19 + $0x98] sm:$0xff] }
 0x828   :  { %v3818_v62 = vpop.f32.mrb[88].mxu1 }
 0x829   :  { %v3820_v3 = vpop.f32.mrb[89].mxu1 }
 0x82a   :  { %4168 = vmatprep.mubr.f32.mxu1 %v3820_v3  ;;  %v4086_v3 = vld [vmem:[#allocation14 + $0x2a8] sm:$0xff] }
 0x82b   :  { %4169 = vmatmul.mubr.f32.vlgmr.msra.gmra.mrb[100].mxu1 %v3818_v62  ;;  %v4068_v62 = vld [vmem:[#allocation14 + $0x218] sm:$0xff] }
 0x82c   :  { %6902 = vmatpush3.bf16.msra.mxu1 %v6901_v37  ;;  %v3824_v4 = vpop.f32.mrb[90].mxu1  ;;  %v4085_v37 = vld [vmem:[#allocation14 + $0x2a0] sm:$0xff] }
 0x82d   :  { %6904 = vmatprep.subr.bf16.mxu1 %v6903_v22  ;;  %v3826_v24 = vpop.f32.mrb[91].mxu1  ;;  %v6937_v22 = vpack.c.bf16 %v4068_v62, %v4067_v52  ;;  %v6939_v29 = vpack.c.bf16 %v4086_v3, %v4085_v37  ;;  %v4362_v52 = vld [vmem:[#allocation19 + $0xf8] sm:$0xff]  ;;  %v4367_v62 = vld [vmem:[#allocation19 + $0x120] sm:$0xff]  ;;  %v4361_v37 = vld [vmem:[#allocation19 + $0xf0] sm:$0xff] }
 0x82e   :  { %4173 = vmatprep.mubr.f32.mxu1 %v3826_v24  ;;  %v4089_v24 = vld [vmem:[#allocation14 + $0x2c0] sm:$0xff]  ;;  %v6975_v3 = vpack.c.bf16 %v4367_v62, %v4362_v52 }
 0x82f   :  { %4174 = vmatmul.mubr.f32.gmra.mrb[102].mxu1 %v3824_v4  ;;  %v6941_v4 = vpack.c.bf16 %v4070_v63, %v4069_v31  ;;  %v4360_v31 = vld [vmem:[#allocation19 + $0xe8] sm:$0xff] }
 0x830   :  { %6906 = vmatpush3.bf16.msra.mxu1 %v6905_v42  ;;  %v3904_v30 = vpop.f32.mrb[92].mxu1  ;;  %v4088_v42 = vld [vmem:[#allocation14 + $0x2b8] sm:$0xff] }
 0x831   :  { %6908 = vmatprep.subr.bf16.mxu1 %v6907_v49  ;;  %v3906_v14 = vpop.f32.mrb[93].mxu1  ;;  %v6943_v49 = vpack.c.bf16 %v4088_v42, %v4087_v19  ;;  %v4372_v19 = vld [vmem:[#allocation19 + $0x148] sm:$0xff]  ;;  %v4377_v42 = vld [vmem:[#allocation19 + $0x170] sm:$0xff] }
 0x832   :  { %4243 = vmatprep.mubr.f32.mxu1 %v3906_v14  ;;  %v6979_v17 = vpack.c.bf16 %v4377_v42, %v4372_v19  ;;  %v4333_v19 = vld [vmem:[#allocation19 + $0x10] sm:$0xff]  ;;  %v4338_v42 = vld [vmem:[#allocation19 + $0x38] sm:$0xff] }
 0x834   :  { %6910 = vmatpush3.bf16.msra.mxu1 %v6909_v61  ;;  %v3910_v35 = vpop.f32.mrb[94].mxu1  ;;  %v6947_v61 = vpack.c.bf16 %v4090_v51, %v4089_v24  ;;  %v4371_v24 = vld [vmem:[#allocation19 + $0x140] sm:$0xff]  ;;  %v4376_v51 = vld [vmem:[#allocation19 + $0x168] sm:$0xff] }
 0x835   :  { %6912 = vmatprep.subr.bf16.mxu1 %v6911_v20  ;;  %v3912_v18 = vpop.f32.mrb[95].mxu1  ;;  %v4074_v20 = vld [vmem:[#allocation14 + $0x248] sm:$0xff]  ;;  %v6981_v54 = vpack.c.bf16 %v4376_v51, %v4371_v24  ;;  %v6997_v51 = vpack.c.bf16 %v4338_v42, %v4333_v19 }
 0x838   :  { %6914 = vmatpush3.bf16.msra.mxu1 %v6913_v32  ;;  %v8804_v26 = vpop.f32.mrb[96].mxu1  ;;  %v4076_v32 = vld [vmem:[#allocation14 + $0x258] sm:$0xff] }
 0x839   :  { %6916 = vmatprep.subr.bf16.mxu1 %v6915_v39  ;;  %v3992_v55 = vpop.f32.mrb[97].mxu1  ;;  %v4094_v39 = vld [vmem:[#allocation14 + $0x2e8] sm:$0xff]  ;;  %v6953_v53 = vpack.c.bf16 %v4076_v32, %v4075_v38 }
 0x83a   :  { %v4386_v38 = vld [vmem:[#allocation19 + $0x1b8] sm:$0xff] }
 0x83c   :  { %6918 = vmatpush3.bf16.msra.mxu1 %v6917_v44  ;;  %v8806_v40 = vpop.f32.mrb[98].mxu1  ;;  %v4096_v44 = vld [vmem:[#allocation14 + $0x2f8] sm:$0xff] }
 0x83d   :  { %6920 = vmatprep.subr.bf16.mxu1 %v6919_v2  ;;  %v8808_v28 = vpop.f32.mrb[99].mxu1  ;;  %v6959_v11 = vpack.c.bf16 %v4096_v44, %v4095_v10  ;;  %v4385_v10 = vld [vmem:[#allocation19 + $0x1b0] sm:$0xff] }
 0x840   :  { %6922 = vmatpush3.bf16.msra.mxu1 %v6921_v56  ;;  %v4337_v56 = vld [vmem:[#allocation19 + $0x30] sm:$0xff] }
 0x841   :  { %6924 = vmatprep.subr.bf16.mxu1 %v6923_v27  ;;  %v6963_v27 = vpack.c.bf16 %v4337_v56, %v4332_v8  ;;  %v4401_v8 = vld [vmem:[#allocation19 + $0x230] sm:$0xff]  ;;  %v4406_v56 = vld [vmem:[#allocation19 + $0x258] sm:$0xff] }
 0x842   :  { %v6993_v57 = vpack.c.bf16 %v4406_v56, %v4401_v8  ;;  %v4373_v8 = vld [vmem:[#allocation19 + $0x150] sm:$0xff]  ;;  %v4378_v56 = vld [vmem:[#allocation19 + $0x178] sm:$0xff] }
 0x844   :  { %6926 = vmatpush3.bf16.msra.mxu1 %v6925_v60  ;;  %v4347_v60 = vld [vmem:[#allocation19 + $0x80] sm:$0xff] }
 0x845   :  { %6928 = vmatprep.subr.bf16.mxu1 %v6927_v23  ;;  %v4341_v23 = vld [vmem:[#allocation19 + $0x50] sm:$0xff]  ;;  %v6967_v12 = vpack.c.bf16 %v4347_v60, %v4342_v36  ;;  %v4334_v36 = vld [vmem:[#allocation19 + $0x18] sm:$0xff]  ;;  %v4339_v60 = vld [vmem:[#allocation19 + $0x40] sm:$0xff] }
 0x848   :  { %6930 = vmatpush3.bf16.msra.mxu1 %v6929_v50  ;;  %v4357_v50 = vld [vmem:[#allocation19 + $0xd0] sm:$0xff] }
 0x849   :  { %6932 = vmatprep.subr.bf16.mxu1 %v6931_v13  ;;  %v4351_v13 = vld [vmem:[#allocation19 + $0xa0] sm:$0xff] }
 0x84b   :  { %4244 = vmatmul.mubr.f32.vlgmr.msra.gmra.mrb[104].mxu1 %v3904_v30  ;;  %v4073_v30 = vld [vmem:[#allocation14 + $0x240] sm:$0xff] }
 0x84c   :  { %6934 = vmatpush3.bf16.msra.mxu1 %v6933_v45  ;;  %4248 = vmatprep.mubr.f32.mxu1 %v3912_v18  ;;  %v6949_v14 = vpack.c.bf16 %v4074_v20, %v4073_v30  ;;  %v4077_v18 = vld [vmem:[#allocation14 + $0x260] sm:$0xff]  ;;  %v6973_v45 = vpack.c.bf16 %v4356_v15, %v4351_v13  ;;  %v4387_v30 = vld [vmem:[#allocation19 + $0x1c0] sm:$0xff] }
 0x84d   :  { %6936 = vmatprep.subr.bf16.mxu1 %v6935_v0  ;;  %v6957_v2 = vpack.c.bf16 %v4078_v48, %v4077_v18  ;;  %v7031_v0 = vpack.c.bf16 %v4350_v1, %v4345_v41  ;;  %v4375_v20 = vld [vmem:[#allocation19 + $0x160] sm:$0xff]  ;;  %v4396_v48 = vld [vmem:[#allocation19 + $0x208] sm:$0xff] }
 0x84e   :  { %v7043_v32 = vpack.c.bf16 %v4380_v33, %v4375_v20  ;;  %v4391_v18 = vld [vmem:[#allocation19 + $0x1e0] sm:$0xff]  ;;  %v4348_v33 = vld [vmem:[#allocation19 + $0x88] sm:$0xff] }
 0x84f   :  { %4249 = vmatmul.mubr.f32.gmra.mrb[106].mxu1 %v3910_v35  ;;  %v4093_v35 = vld [vmem:[#allocation14 + $0x2e0] sm:$0xff]  ;;  %v6989_v44 = vpack.c.bf16 %v4396_v48, %v4391_v18  ;;  %v4343_v20 = vld [vmem:[#allocation19 + $0x60] sm:$0xff] }
 0x850   :  { %6938 = vmatpush3.bf16.msra.mxu1 %v6937_v22  ;;  %4318 = vmatprep.mubr.f32.mxu1 %v3992_v55  ;;  %v6955_v34 = vpack.c.bf16 %v4094_v39, %v4093_v35  ;;  %v4080_v55 = vld [vmem:[#allocation14 + $0x278] sm:$0xff]  ;;  %v4366_v22 = vld [vmem:[#allocation19 + $0x118] sm:$0xff] }
 0x851   :  { %6940 = vmatprep.subr.bf16.mxu1 %v6939_v29  ;;  %v6961_v16 = vpack.c.bf16 %v4080_v55, %v4079_v7  ;;  %v4355_v29 = vld [vmem:[#allocation19 + $0xc0] sm:$0xff]  ;;  %v6977_v5 = vpack.c.bf16 %v4366_v22, %v4361_v37  ;;  %v4392_v35 = vld [vmem:[#allocation19 + $0x1e8] sm:$0xff]  ;;  %v4397_v39 = vld [vmem:[#allocation19 + $0x210] sm:$0xff] }
 0x852   :  { %v7035_v63 = vpack.c.bf16 %v4360_v31, %v4355_v29  ;;  %v4402_v7 = vld [vmem:[#allocation19 + $0x238] sm:$0xff]  ;;  %v4407_v55 = vld [vmem:[#allocation19 + $0x260] sm:$0xff]  ;;  %v4369_v18 = vld [vmem:[#allocation19 + $0x130] sm:$0xff] }
 0x854   :  { %6942 = vmatpush3.bf16.msra.mxu1 %v6941_v4  ;;  %v4365_v4 = vld [vmem:[#allocation19 + $0x110] sm:$0xff] }
 0x855   :  { %6944 = vmatprep.subr.bf16.mxu1 %v6943_v49  ;;  %v4370_v49 = vld [vmem:[#allocation19 + $0x138] sm:$0xff] }
 0x858   :  { %6946 = vmatpush3.bf16.msra.mxu1 %v6945_v46  ;;  %v7039_v46 = vpack.c.bf16 %v4370_v49, %v4365_v4  ;;  %v4344_v4 = vld [vmem:[#allocation19 + $0x68] sm:$0xff]  ;;  %v4349_v49 = vld [vmem:[#allocation19 + $0x90] sm:$0xff] }
 0x859   :  { %6948 = vmatprep.subr.bf16.mxu1 %v6947_v61  ;;  %v4382_v61 = vld [vmem:[#allocation19 + $0x198] sm:$0xff] }
 0x85c   :  { %6950 = vmatpush3.bf16.msra.mxu1 %v6949_v14  ;;  %v6983_v14 = vpack.c.bf16 %v4387_v30, %v4382_v61  ;;  %v6999_v30 = vpack.c.bf16 %v4349_v49, %v4344_v4  ;;  %v4642_v4 = vld [vmem:[#allocation17 + $0x8] sm:$0xff]  ;;  %v4640_v49 = vld [vmem:[#allocation17] sm:$0xff] }
 0x85d   :  { %6952 = vmatprep.subr.bf16.mxu1 %v6951_v25  ;;  %v4381_v25 = vld [vmem:[#allocation19 + $0x190] sm:$0xff] }
 0x860   :  { %6954 = vmatpush3.bf16.msra.mxu1 %v6953_v53  ;;  %v6985_v53 = vpack.c.bf16 %v4386_v38, %v4381_v25  ;;  %v7001_v38 = vpack.c.bf16 %v4348_v33, %v4343_v20  ;;  %v4867_v20 = vld [vmem:[#allocation17 + $0x18] sm:$0xff]  ;;  %v4943_v33 = vld [vmem:[#allocation17 + $0x20] sm:$0xff] }
 0x861   :  { %6956 = vmatprep.subr.bf16.mxu1 %v6955_v34  ;;  %v6987_v34 = vpack.c.bf16 %v4397_v39, %v4392_v35  ;;  %v4353_v39 = vld [vmem:[#allocation19 + $0xb0] sm:$0xff] }
 0x864   :  { %6958 = vmatpush3.bf16.msra.mxu1 %v6957_v2  ;;  %v4390_v2 = vld [vmem:[#allocation19 + $0x1d8] sm:$0xff] }
 0x865   :  { %6960 = vmatprep.subr.bf16.mxu1 %v6959_v11  ;;  %v7047_v11 = vpack.c.bf16 %v4390_v2, %v4385_v10  ;;  %v4368_v2 = vld [vmem:[#allocation19 + $0x128] sm:$0xff] }
 0x868   :  { %6962 = vmatpush3.bf16.msra.mxu1 %v6961_v16  ;;  %v6991_v16 = vpack.c.bf16 %v4407_v55, %v4402_v7  ;;  %v4379_v7 = vld [vmem:[#allocation19 + $0x180] sm:$0xff] }
 0x869   :  { %6964 = vmatprep.subr.bf16.mxu1 %v6963_v27  ;;  %v4395_v27 = vld [vmem:[#allocation19 + $0x200] sm:$0xff] }
 0x86b   :  { %4319 = vmatmul.mubr.f32.vlgmr.msra.gmra.mrb[108].mxu1 %v8804_v26  ;;  %v4335_v26 = vld [vmem:[#allocation19 + $0x20] sm:$0xff] }
 0x86c   :  { %4323 = vmatprep.mubr.f32.mxu1 %v8808_v28  ;;  %6966 = vmatpush1.bf16.msra.mxu1 %v6965_v6  ;;  %v6969_v28 = vpack.c.bf16 %v4346_v58, %v4341_v23  ;;  %v7027_v21 = vpack.c.bf16 %v4340_v59, %v4335_v26  ;;  %v7051_v6 = vpack.c.bf16 %v4400_v43, %v4395_v27  ;;  %v4410_v58 = vld [vmem:[#allocation19 + $0x278] sm:$0xff]  ;;  %v4384_v27 = vld [vmem:[#allocation19 + $0x1a8] sm:$0xff] }
 0x86d   :  { %6968 = vmatprep.subr.bf16.mxu1 %v6967_v12  ;;  %v6995_v23 = vpack.c.bf16 %v4339_v60, %v4334_v36  ;;  %v4405_v12 = vld [vmem:[#allocation19 + $0x250] sm:$0xff]  ;;  %v7013_v43 = vpack.c.bf16 %v4378_v56, %v4373_v8  ;;  %v4383_v36 = vld [vmem:[#allocation19 + $0x1a0] sm:$0xff]  ;;  %v4388_v60 = vld [vmem:[#allocation19 + $0x1c8] sm:$0xff] }
 0x86e   :  { %7028 = vmatprep.subr.bf16.mxu0 %v7027_v21  ;;  %v7055_v26 = vpack.c.bf16 %v4410_v58, %v4405_v12  ;;  %v4399_v12 = vld [vmem:[#allocation19 + $0x220] sm:$0xff]  ;;  %v7017_v58 = vpack.c.bf16 %v4388_v60, %v4383_v36 }
 0x86f   :  { %4324 = vmatmul.mubr.f32.gmra.mrb[110].mxu1 %v8806_v40  ;;  %v4352_v40 = vld [vmem:[#allocation19 + $0xa8] sm:$0xff]  ;;  %7030 = vmatpush3.bf16.msra.mxu0 %v7027_v21  ;;  %v5042_v8 = vld [vmem:[%s8955_s13 + $0x78] sm:$0xff] }
 0x870   :  { %4475 = vmatprep.mubr.f32.mxu1 %v7634_v47  ;;  %v6971_v9 = vpack.c.bf16 %v4357_v50, %v4352_v40  ;;  %6970 = vmatpush1.bf16.msra.mxu1 %v6969_v28 }
 0x871   :  { %7032 = vmatprep.subr.bf16.mxu0 %v7031_v0 }
 0x872   :  { %6972 = vmatprep.subr.bf16.mxu1 %v6971_v9  ;;  %v5304_v9 = vld [vmem:[#allocation16] ss:$0 sm:$0xff] }
 0x873   :  { %7034 = vmatpush3.bf16.msra.mxu0 %v7031_v0 }
 0x874   :  { %6974 = vmatpush1.bf16.msra.mxu1 %v6973_v45  ;;  %7036 = vmatprep.subr.bf16.mxu0 %v7035_v63 }
 0x875   :  { %6976 = vmatprep.subr.bf16.mxu1 %v6975_v3 }
 0x877   :  { %7038 = vmatpush3.bf16.msra.mxu0 %v7035_v63 }
 0x878   :  { %6978 = vmatpush1.bf16.msra.mxu1 %v6977_v5  ;;  %7040 = vmatprep.subr.bf16.mxu0 %v7039_v46 }
 0x879   :  { %6980 = vmatprep.subr.bf16.mxu1 %v6979_v17 }
 0x87b   :  { %7042 = vmatpush3.bf16.msra.mxu0 %v7039_v46 }
 0x87c   :  { %6982 = vmatpush1.bf16.msra.mxu1 %v6981_v54  ;;  %7044 = vmatprep.subr.bf16.mxu0 %v7043_v32  ;;  %v4354_v54 = vld [vmem:[#allocation19 + $0xb8] sm:$0xff] }
 0x87d   :  { %6984 = vmatprep.subr.bf16.mxu1 %v6983_v14  ;;  %v4359_v14 = vld [vmem:[#allocation19 + $0xe0] sm:$0xff] }
 0x87e   :  { %v7003_v35 = vpack.c.bf16 %v4359_v14, %v4354_v54  ;;  %v5029_v54 = vld [vmem:[%s8955_s13 + $0x10] sm:$0xff]  ;;  %v5030_v14 = vld [vmem:[%s8955_s13 + $0x18] sm:$0xff] }
 0x87f   :  { %7046 = vmatpush3.bf16.msra.mxu0 %v7043_v32 }
 0x880   :  { %6986 = vmatpush1.bf16.msra.mxu1 %v6985_v53  ;;  %7048 = vmatprep.subr.bf16.mxu0 %v7047_v11  ;;  %v4358_v53 = vld [vmem:[#allocation19 + $0xd8] sm:$0xff] }
 0x881   :  { %6988 = vmatprep.subr.bf16.mxu1 %v6987_v34  ;;  %v4364_v34 = vld [vmem:[#allocation19 + $0x108] sm:$0xff]  ;;  %v7005_v48 = vpack.c.bf16 %v4358_v53, %v4353_v39  ;;  %v5034_v39 = vld [vmem:[%s8955_s13 + $0x38] sm:$0xff] }
 0x882   :  { %v7007_v10 = vpack.c.bf16 %v4369_v18, %v4364_v34  ;;  %v5035_v34 = vld [vmem:[%s8955_s13 + $0x40] sm:$0xff]  ;;  %v5036_v18 = vld [vmem:[%s8955_s13 + $0x48] sm:$0xff] }
 0x883   :  { %7050 = vmatpush3.bf16.msra.mxu0 %v7047_v11  ;;  %v4374_v11 = vld [vmem:[#allocation19 + $0x158] sm:$0xff] }
 0x884   :  { %6990 = vmatpush1.bf16.msra.mxu1 %v6989_v44  ;;  %7052 = vmatprep.subr.bf16.mxu0 %v7051_v6  ;;  %v4363_v44 = vld [vmem:[#allocation19 + $0x100] sm:$0xff] }
 0x885   :  { %6992 = vmatprep.subr.bf16.mxu1 %v6991_v16  ;;  %v7009_v55 = vpack.c.bf16 %v4368_v2, %v4363_v44  ;;  %v7011_v16 = vpack.c.bf16 %v4379_v7, %v4374_v11  ;;  %v5038_v44 = vld [vmem:[%s8955_s13 + $0x58] sm:$0xff]  ;;  %v5039_v11 = vld [vmem:[%s8955_s13 + $0x60] sm:$0xff]  ;;  %v5040_v7 = vld [vmem:[%s8955_s13 + $0x68] sm:$0xff] }
 0x887   :  { %7054 = vmatpush3.bf16.msra.mxu0 %v7051_v6 }
 0x888   :  { %6994 = vmatpush1.bf16.msra.mxu1 %v6993_v57  ;;  %7056 = vmatprep.subr.bf16.mxu0 %v7055_v26  ;;  %v4389_v57 = vld [vmem:[#allocation19 + $0x1d0] sm:$0xff] }
 0x889   :  { %6996 = vmatprep.subr.bf16.mxu1 %v6995_v23  ;;  %v7015_v6 = vpack.c.bf16 %v4389_v57, %v4384_v27  ;;  %v4394_v23 = vld [vmem:[#allocation19 + $0x1f8] sm:$0xff]  ;;  %v5121_v27 = vld [vmem:[%s8957_s15] sm:$0xff]  ;;  %v5122_v57 = vld [vmem:[%s8957_s15 + $0x8] sm:$0xff] }
 0x88b   :  { %7058 = vmatpush3.bf16.msra.mxu0 %v7055_v26  ;;  %v7019_v26 = vpack.c.bf16 %v4399_v12, %v4394_v23 }
 0x8fe   :  { %v5346_v59 = vpop.f32.mrb[100].mxu1 }
 0x8ff   :  { %v5347_v28 = vpop.f32.mrb[101].mxu1 }
 0x900   :  { %v5348_v21 = vadd.f32 %v5347_v28, %v5346_v59  ;;  %v4393_v59 = vld [vmem:[#allocation19 + $0x1f0] sm:$0xff]  ;;  %v4398_v28 = vld [vmem:[#allocation19 + $0x218] sm:$0xff] }
 0x902   :  { %v5349_v40 = vpop.f32.mrb[102].mxu1  ;;  %v4171_v1 = vadd.f32 %v5348_v21, %v5304_v9  ;;  %v4404_v21 = vld [vmem:[#allocation19 + $0x248] sm:$0xff] }
 0x903   :  { %v5350_v50 = vpop.f32.mrb[103].mxu1 }
 0x904   :  { %v5351_v13 = vadd.f32 %v5350_v50, %v5349_v40  ;;  %v4409_v40 = vld [vmem:[#allocation19 + $0x270] sm:$0xff]  ;;  %v7021_v50 = vpack.c.bf16 %v4398_v28, %v4393_v59 }
 0x906   :  { %v4176_v37 = vadd.f32 %v5351_v13, %v5304_v9  ;;  %v7023_v13 = vpack.c.bf16 %v4409_v40, %v4404_v21  ;;  %v4403_v9 = vld [vmem:[#allocation19 + $0x240] sm:$0xff] }
 0x91e   :  { %v5384_v15 = vpop.f32.mrb[104].mxu1 }
 0x91f   :  { %v5385_v41 = vpop.f32.mrb[105].mxu1 }
 0x920   :  { %v5386_v45 = vadd.f32 %v5385_v41, %v5384_v15  ;;  %v4408_v15 = vld [vmem:[#allocation19 + $0x268] sm:$0xff] }
 0x921   :  { %v7025_v41 = vpack.c.bf16 %v4408_v15, %v4403_v9 }
 0x922   :  { %v4246_v0 = vadd.f32 %v5386_v45, %v4171_v1  ;;  %v5387_v52 = vpop.f32.mrb[106].mxu1  ;;  %v7635_v1 = vmov 0.0|0.0   ;;  %v5027_v45 = vld [vmem:[%s8955_s13] sm:$0xff] }
 0x923   :  { %v5388_v62 = vpop.f32.mrb[107].mxu1  ;;  %7074 = vmatprep.subr.bf16.mxu0 %v7635_v1 }
 0x924   :  { %v5389_v3 = vadd.f32 %v5388_v62, %v5387_v52 }
 0x926   :  { %v4251_v22 = vadd.f32 %v5389_v3, %v4176_v37 }
 0x93e   :  { %v5422_v29 = vpop.f32.mrb[108].mxu1 }
 0x93f   :  { %v5423_v31 = vpop.f32.mrb[109].mxu1 }
 0x940   :  { %v5424_v63 = vadd.f32 %v5423_v31, %v5422_v29 }
 0x942   :  { %v4321_v5 = vadd.f32 %v5424_v63, %v4246_v0  ;;  %v5425_v17 = vpop.f32.mrb[110].mxu1  ;;  %v5028_v0 = vld [vmem:[%s8955_s13 + $0x8] sm:$0xff] }
 0x943   :  { %v5426_v24 = vpop.f32.mrb[111].mxu1  ;;  %v7075_v52 = vpack.c.bf16 %v5028_v0, %v5027_v45  ;;  %v5123_v0 = vld [vmem:[%s8957_s15 + $0x10] sm:$0xff] }
 0x944   :  { %v8814_v46 = vmax.f32 %v4321_v5, 0.0  ;;  %v5427_v61 = vadd.f32 %v5426_v24, %v5425_v17 }
 0x946   :  { %v4326_v25 = vadd.f32 %v5427_v61, %v4251_v22  ;;  %4476 = vmatmul.mubr.f32.vlgmr.msra.gmra.mrb[112].mxu1 %v8814_v46  ;;  %5519 = vmatprep.mubr.f32.mxu0 %v8814_v46 }
 0x947   :  { %6998 = vmatpush1.bf16.msra.mxu1 %v6997_v51  ;;  %4481 = vmatprep.mubr.f32.mxu1 %v7634_v47 }
 0x948   :  { %v4330_v32 = vmax.f32 %v4326_v25, 0.0  ;;  %7000 = vmatprep.subr.bf16.mxu1 %v6999_v30  ;;  %v4791_v30 = vld [vmem:[#allocation17 + $0x10] sm:$0xff]  ;;  %v7078_v25 = vpack.c.bf16 %v5030_v14, %v5029_v54 }
 0x94a   :  { %4482 = vmatmul.mubr.f32.gmra.mrb[114].mxu1 %v4330_v32  ;;  %5520 = vmatmul.mubr.f32.vlgmr.msra.gmra.mrb[60].mxu0 %v4330_v32 }
 0x94b   :  { %7002 = vmatpush1.bf16.msra.mxu1 %v7001_v38  ;;  %4552 = vmatprep.mubr.f32.mxu1 %v7634_v47  ;;  %v5031_v38 = vld [vmem:[%s8955_s13 + $0x20] sm:$0xff] }
 0x94c   :  { %7004 = vmatprep.subr.bf16.mxu1 %v7003_v35  ;;  %5589 = vmatprep.mubr.msk.f32.mxu0 %vm7636_vm3, %v7634_v47  ;;  %v5033_v35 = vld [vmem:[%s8955_s13 + $0x30] sm:$0xff] }
 0x94d   :  { %7076 = vmatpush3.bf16.msra.mxu0 %v7075_v52  ;;  %v7084_v53 = vpack.c.bf16 %v5034_v39, %v5033_v35  ;;  %v5124_v52 = vld [vmem:[%s8957_s15 + $0x18] sm:$0xff] }
 0x94e   :  { %7077 = vmatprep.subr.bf16.mxu0 %v7635_v1 }
 0x94f   :  { %7006 = vmatpush1.bf16.msra.mxu1 %v7005_v48  ;;  %v7087_v48 = vpack.c.bf16 %v5036_v18, %v5035_v34 }
 0x950   :  { %7008 = vmatprep.subr.bf16.mxu1 %v7007_v10  ;;  %v5037_v10 = vld [vmem:[%s8955_s13 + $0x50] sm:$0xff] }
 0x951   :  { %7079 = vmatpush3.bf16.msra.mxu0 %v7078_v25  ;;  %v7090_v2 = vpack.c.bf16 %v5038_v44, %v5037_v10 }
 0x952   :  { %7080 = vmatprep.subr.bf16.mxu0 %v7635_v1 }
 0x953   :  { %7010 = vmatpush1.bf16.msra.mxu1 %v7009_v55  ;;  %v7093_v55 = vpack.c.bf16 %v5040_v7, %v5039_v11 }
 0x954   :  { %7012 = vmatprep.subr.bf16.mxu1 %v7011_v16  ;;  %v5041_v16 = vld [vmem:[%s8955_s13 + $0x70] sm:$0xff] }
 0x955   :  { %v7096_v56 = vpack.c.bf16 %v5042_v8, %v5041_v16 }
 0x957   :  { %7014 = vmatpush1.bf16.msra.mxu1 %v7013_v43  ;;  %v7099_v43 = vpack.c.bf16 %v5122_v57, %v5121_v27 }
 0x958   :  { %7016 = vmatprep.subr.bf16.mxu1 %v7015_v6 }
 0x95b   :  { %7018 = vmatpush1.bf16.msra.mxu1 %v7017_v58 }
 0x95c   :  { %7020 = vmatprep.subr.bf16.mxu1 %v7019_v26 }
 0x95f   :  { %7022 = vmatpush1.bf16.msra.mxu1 %v7021_v50 }
 0x960   :  { %7024 = vmatprep.subr.bf16.mxu1 %v7023_v13  ;;  %v5310_v13 = vld [vmem:[#allocation20] ss:$0 sm:$0xff] }
 0x963   :  { %7026 = vmatpush1.bf16.msra.mxu1 %v7025_v41 }
 0x964   :  { %7059 = vmatprep.subr.bf16.mxu1 %v7635_v1 }
 0x966   :  { %4553 = vmatmul.mubr.f32.vlgmr.msra.gmra.mrb[116].mxu1 %v8814_v46 }
 0x967   :  { %4558 = vmatprep.mubr.f32.mxu1 %v7634_v47 }
 0x96a   :  { %4559 = vmatmul.mubr.f32.gmra.mrb[118].mxu1 %v4330_v32 }
 0x96b   :  { %5526 = vmatprep.mubr.msk.f32.mxu1 %vm7636_vm3, %v7634_v47 }
 0xa19   :  { %v4477_v62 = vpop.f32.mrb[112].mxu1 }
 0xa1a   :  { %v4479_v37 = vpop.f32.mrb[113].mxu1 }
 0xa1d   :  { %v4483_v3 = vpop.f32.mrb[114].mxu1  ;;  %v5521_v22 = vpop.f32.mrb[60].mxu0 }
 0xa1e   :  { %v7063_v29 = vpack.c.bf16 %v4483_v3, %v4477_v62  ;;  %v4485_v31 = vpop.f32.mrb[115].mxu1  ;;  %v4631_v63 = vpop.f32.mrb[61].mxu0  ;;  %v7102_v62 = vpack.c.bf16 %v5124_v52, %v5123_v0  ;;  %v5126_v3 = vld [vmem:[%s8957_s15 + $0x28] sm:$0xff] }
 0xa1f   :  { %v7060_v19 = vpack.c.bf16 %v4485_v31, %v4479_v37  ;;  %v7072_v42 = vpack.c.bf16 %v5521_v22, %v4631_v63  ;;  %v5125_v37 = vld [vmem:[%s8957_s15 + $0x20] sm:$0xff]  ;;  %v5128_v31 = vld [vmem:[%s8957_s15 + $0x38] sm:$0xff] }
 0xa20   :  { %v7105_v22 = vpack.c.bf16 %v5126_v3, %v5125_v37 }
 0xa21   :  { %7061 = vmatpush3.bf16.msra.mxu1 %v7060_v19  ;;  %v5311_v19 = vld [vmem:[#allocation22] ss:$0 sm:$0xff] }
 0xa22   :  { %7062 = vmatprep.subr.bf16.mxu1 %v7635_v1 }
 0xa24   :  { %5527 = vmatmul.mubr.msk.f32.vlgmr.msra.gmra.mrb[120].mxu1 %vm4643_vm4, %v4642_v4 }
 0xa25   :  { %7064 = vmatpush3.bf16.msra.mxu1 %v7063_v29  ;;  %5533 = vmatprep.mubr.msk.f32.mxu1 %vm7636_vm3, %v7634_v47  ;;  %v5127_v29 = vld [vmem:[%s8957_s15 + $0x30] sm:$0xff]  ;;  %s7574_s15 = scalar_lea.vmem %s5219_s26, 32 }
 0xa26   :  { %7065 = vmatprep.subr.bf16.mxu1 %v7635_v1  ;;  %v7108_v63 = vpack.c.bf16 %v5128_v31, %v5127_v29  ;;  %p7575_p0 = scmp.ne.s32.totalorder %s5219_s26, %s7574_s15  ;;  %p7580_p2 = scmp.lt.s32.totalorder %s7574_s15, %s7574_s15 }
 0xa28   :  { %5534 = vmatmul.mubr.msk.f32.vlgmr.msra.gmra.mrb[122].mxu1 %vm4643_vm4, %v4640_v49  ;;  %p7581_p3 = por %p7580_p2, %p7579_p1 }
 0xa29   :  { %5540 = vmatprep.mubr.msk.f32.mxu1 %vm7636_vm3, %v7634_v47 }
 0xa2a   :  { %p7582_p4 = pnand %p7581_p3, %p7575_p0 }
 0xa39   :  { %v4554_v5 = vpop.f32.mrb[116].mxu1 }
 0xa3a   :  { %v4556_v17 = vpop.f32.mrb[117].mxu1 }
 0xa3d   :  { %v4560_v24 = vpop.f32.mrb[118].mxu1 }
 0xa3e   :  { %v7066_v51 = vpack.c.bf16 %v4560_v24, %v4554_v5  ;;  %v4562_v46 = vpop.f32.mrb[119].mxu1 }
 0xa3f   :  { %v7069_v61 = vpack.c.bf16 %v4562_v46, %v4556_v17  ;;  %v5312_v17 = vld [vmem:[#allocation23] ss:$0 sm:$0xff] }
 0xa40   :  { %7067 = vmatpush3.bf16.msra.mxu1 %v7066_v51 }
 0xa41   :  { %7068 = vmatprep.subr.bf16.mxu1 %v7635_v1 }
 0xa43   :  { %5541 = vmatmul.mubr.msk.f32.vlgmr.msra.gmra.mrb[124].mxu1 %vm4643_vm4, %v4791_v30 }
 0xa44   :  { %7070 = vmatpush3.bf16.msra.mxu1 %v7069_v61  ;;  %5547 = vmatprep.mubr.msk.f32.mxu1 %vm7636_vm3, %v7634_v47 }
 0xa45   :  { %7071 = vmatprep.subr.bf16.mxu1 %v7635_v1 }
 0xa47   :  { %5548 = vmatmul.mubr.msk.f32.vlgmr.msra.gmra.mrb[126].mxu1 %vm4643_vm4, %v4867_v20 }
 0xa48   :  { %7073 = vmatpush3.bf16.msra.mxu1 %v7072_v42  ;;  %5554 = vmatprep.mubr.msk.f32.mxu1 %vm7636_vm3, %v7634_v47 }
 0xa49   :  { %7098 = vmatprep.subr.bf16.mxu1 %v7635_v1 }
 0xa4b   :  { %5555 = vmatmul.mubr.msk.f32.vlgmr.msra.gmra.mrb[128].mxu1 %vm4643_vm4, %v4943_v33 }
 0xa4c   :  { %5608 = vmatprep.mubr.msk.f32.mxu1 %vm7636_vm3, %v7634_v47  ;;  %v5032_v47 = vld [vmem:[%s8955_s13 + $0x28] sm:$0xff]  ;;  %7100 = vmatpush3.bf16.msra.mxu1 %v7099_v43 }
 0xa4d   :  { %v7081_v32 = vpack.c.bf16 %v5032_v47, %v5031_v38  ;;  %7101 = vmatprep.subr.bf16.mxu1 %v7635_v1 }
 0xa4f   :  { %7082 = vmatpush3.bf16.msra.mxu0 %v7081_v32 }
 0xa50   :  { %7083 = vmatprep.subr.bf16.mxu0 %v7635_v1  ;;  %7103 = vmatpush3.bf16.msra.mxu1 %v7102_v62 }
 0xa51   :  { %7104 = vmatprep.subr.bf16.mxu1 %v7635_v1 }
 0xa53   :  { %7085 = vmatpush3.bf16.msra.mxu0 %v7084_v53 }
 0xa54   :  { %7086 = vmatprep.subr.bf16.mxu0 %v7635_v1  ;;  %7106 = vmatpush3.bf16.msra.mxu1 %v7105_v22 }
 0xa55   :  { %7107 = vmatprep.subr.bf16.mxu1 %v7635_v1 }
 0xa57   :  { %7088 = vmatpush3.bf16.msra.mxu0 %v7087_v48 }
 0xa58   :  { %7089 = vmatprep.subr.bf16.mxu0 %v7635_v1  ;;  %7109 = vmatpush3.bf16.msra.mxu1 %v7108_v63 }
 0xa5b   :  { %7091 = vmatpush3.bf16.msra.mxu0 %v7090_v2 }
 0xa5c   :  { %7092 = vmatprep.subr.bf16.mxu0 %v7635_v1 }
 0xa5f   :  { %7094 = vmatpush3.bf16.msra.mxu0 %v7093_v55 }
 0xa60   :  { %7095 = vmatprep.subr.bf16.mxu0 %v7635_v1 }
 0xa63   :  { %7097 = vmatpush3.bf16.msra.mxu0 %v7096_v56 }
 0xaf7   :  { %v4713_v6 = vpop.f32.mrb[120].mxu1 }
 0xaf8   :  { %v5528_v36 = vpop.f32.mrb[121].mxu1 }
 0xafb   :  { %v4786_v60 = vpop.f32.mrb[122].mxu1 }
 0xafc   :  { %v4787_v23 = vadd.f32 %v4786_v60, %v4713_v6  ;;  %v5535_v12 = vpop.f32.mrb[123].mxu1 }
 0xb16   :  { %v4861_v58 = vpop.f32.mrb[124].mxu1 }
 0xb17   :  { %v4865_v26 = vadd.f32 %v4861_v58, %v4787_v23  ;;  %v5542_v59 = vpop.f32.mrb[125].mxu1 }
 0xb1a   :  { %v4937_v28 = vpop.f32.mrb[126].mxu1 }
 0xb1b   :  { %v4941_v21 = vadd.f32 %v4937_v28, %v4865_v26  ;;  %v5549_v40 = vpop.f32.mrb[127].mxu1 }
 0xb1e   :  { %v5013_v50 = vpop.f32.mrb[128].mxu1 }
 0xb1f   :  { %v5017_v9 = vadd.f32 %v5013_v50, %v4941_v21  ;;  %v5556_v15 = vpop.f32.mrb[129].mxu1 }
 0xb21   :  { %v5025_v41 = vadd.f32 %v5310_v13, %v5017_v9 }
 0xb23   :  { %7262 = vtanh.f32 %v5025_v41 }
 0xb2d   :  { %v7263_v45 = vpop.eup %7262 }
 0xb2e   :  { %5590 = vmatmul.mubr.f32.vlgmr.msra.gmra.mrb[62].mxu0 %v7263_v45 }
 0xc01   :  { %v5116_v42 = vpop.f32.mrb[62].mxu0 }
 0xc02   :  { %v5117_v4 = vadd.f32 %v5311_v19, %v5116_v42  ;;  %v5591_v49 = vpop.f32.mrb[63].mxu0 }
 0xc04   :  { %7264 = vtanh.f32 %v5117_v4 }
 0xc0e   :  { %v7265_v5 = vpop.eup %7264 }
 0xc0f   :  { %5609 = vmatmul.mubr.msk.f32.vlgmr.msra.gmra.mrb[130].mxu1 %vm5136_vm5, %v7265_v5 }
 0xce2   :  { %v5206_v24 = vpop.f32.mrb[130].mxu1 }
 0xce3   :  { %v5207_v51 = vadd.f32 %v5312_v17, %v5206_v24  ;;  %v5610_v46 = vpop.f32.mrb[131].mxu1 }
 0xce5   :  { %5211 = vst.msk [vmem:[#allocation25] sm:$0x3] %vm5210_vm6, %v5207_v51 }
 0xce6   :  { %7585 = shalt.err (!%p7582_p4)
}
 0xce7   :  { %s7586_s19 = scalar_lea.hbm %s8959_s17, 32 }
 0xce8   :  { %p7587_p5 = scmp.ne.s32.totalorder %s8959_s17, %s7586_s19  ;;  %p7590_p6 = scmp.lt.u32.totalorder %s7586_s19, %s8959_s17 }
 0xcea   :  { %p7592_p7 = pnand %p7590_p6, %p7587_p5 }
 0xcec   :  { %7595 = shalt.err (!%p7592_p7)
}
 0xced   :  { %5221 = dma.vmem_to_hbm [thread:$0]  %s5219_s26, 32, %s8959_s17, [#allocation4]  }
 0xcee   :  { %7612 = dma.done.wait [#allocation4], 32  }
 0xcef   :  { %7613 = vsyncadd [#allocation4], 4294967264 }
 0xcf0   :  { %5225 = vsyncpa [#allocation3], 1 }
 0xcf1   :  { %5226 = vsyncpa [#allocation6], 1 }
 0xcf2   :  { %5227 = vsyncpa [#allocation9], 1 }
 0xcf3   :  { %5228 = vsyncpa [#allocation12], 1 }
 0xcf4   :  { %5229 = vsyncpa [#allocation15], 1 }
 0xcf5   :  { %5230 = vsyncpa [#allocation18], 1 }
 0xcf6   :  { %5231 = vsyncpa [#allocation21], 1 }
 0xcf7   :  { %5232 = vsyncpa [#allocation24], 1 }
 0xcf8   :  { %5233 = vsyncpa [#allocation4], 1 }

</bundles_post_ra>
